<compile_context>
chip_gen: v5e
topology: v5e:2x2
jax: 0.10.0
libtpu: 0.0.40
codegen_flags: <defaults>
</compile_context>

<pallas_src>
import numpy as np
import jax
import jax.numpy as jnp
from jax.experimental import pallas as pl
from jax.experimental.pallas import tpu as pltpu

# ---- model hyperparameters (small, consistent with the module) ----
VOCAB_SIZE = 50
EMBED = 32
NUM_HEADS = 4
HEAD_DIM = EMBED // NUM_HEADS
HIDDEN = 64
NUM_LAYERS = 2
SEQ_LEN = 8
BATCH = 2
LN_EPS = 1e-5
NEG_INF = -1e30

# ---- packed-parameter slab layouts ----
# Every in-kernel slice of these slabs starts at lane 0 and at a sublane
# offset that is a multiple of 8, so no relayout/rotation is needed.
#
# "vecs" slab: (L, VEC_ROWS, 128); one small vector per sublane row.
ROW_BQ = 0                        # rows 0..3   : per-head q bias (D lanes)
ROW_BK = NUM_HEADS                # rows 4..7   : per-head k bias
ROW_BV = 2 * NUM_HEADS            # rows 8..11  : per-head v bias
ROW_BO = 3 * NUM_HEADS            # row 12      : out-proj bias   (E lanes)
ROW_B1 = ROW_BO + 1               # row 13      : ffn b1          (HIDDEN lanes)
ROW_B2 = ROW_BO + 2               # row 14      : ffn b2          (E lanes)
ROW_LN1G = ROW_BO + 3             # rows 15..18 : LayerNorm vectors
ROW_LN1B = ROW_BO + 4
ROW_LN2G = ROW_BO + 5
ROW_LN2B = ROW_BO + 6
VEC_ROWS = 24
VEC_LANES = 128

# "wslab" slab: (L, 128, 64); W1 / W2 / Wo stacked along the sublane axis.
W1_ROW = 0                        # rows  0..31  : W1 (E, HIDDEN)
W2_ROW = EMBED                    # rows 32..95  : W2 (HIDDEN, E)
WO_ROW = EMBED + HIDDEN           # rows 96..127 : Wo (E, E)
WSLAB_ROWS = 2 * EMBED + HIDDEN   # 128
WSLAB_LANES = HIDDEN              # 64


def _layer_norm(h, gamma, beta):
    mu = jnp.mean(h, axis=-1, keepdims=True)
    var = jnp.mean((h - mu) ** 2, axis=-1, keepdims=True)
    return (h - mu) * jax.lax.rsqrt(var + LN_EPS) * gamma + beta


def _encoder_kernel(tok_ref, emb_ref, pe_ref, wqkv_ref, vecs_ref, wslab_ref,
                    out_ref):
    """Whole TransformerEncoder forward for the full batch (no grid)."""
    B, S, E, H, D, V = BATCH, SEQ_LEN, EMBED, NUM_HEADS, HEAD_DIM, VOCAB_SIZE
    N = B * S
    f32 = jnp.float32

    def vec(l, r, n):                                  # (1, n) slice at lane 0
        return vecs_ref[l, r:r + 1, :n]

    def w_qkv(l, proj, h):                             # leading-dim index, free
        return wqkv_ref[(l * 3 + proj) * H + h]        # (E, D)

    # ---- embedding lookup (one-hot matmul keeps it on the MXU) + pos enc ----
    tok = tok_ref[...]                                             # (N, 1) i32
    vocab_ids = jax.lax.broadcasted_iota(jnp.int32, (N, V), 1)
    one_hot = (vocab_ids == tok).astype(f32)                       # (N, V)
    x = jnp.dot(one_hot, emb_ref[...], preferred_element_type=f32)  # (N, E)
    # (N,E)->(B,S,E) is a layout-preserving sublane split; add pe in-kernel.
    x = (x.reshape(B, S, E) + pe_ref[...][None, :, :]).reshape(N, E)

    # causal mask, shared across layers / heads / batch
    row = jax.lax.broadcasted_iota(jnp.int32, (S, S), 0)
    col = jax.lax.broadcasted_iota(jnp.int32, (S, S), 1)
    causal = (col <= row)[None]                                    # (1, S, S)
    scale = 1.0 / (D ** 0.5)

    for l in range(NUM_LAYERS):                        # static unroll
        # ---- masked multi-head attention, head-major, no lane slicing ----
        attn = None
        for h in range(H):
            q = jnp.dot(x, w_qkv(l, 0, h), preferred_element_type=f32)
            k = jnp.dot(x, w_qkv(l, 1, h), preferred_element_type=f32)
            v = jnp.dot(x, w_qkv(l, 2, h), preferred_element_type=f32)
            q = (q + vec(l, ROW_BQ + h, D)).reshape(B, S, D)
            k = (k + vec(l, ROW_BK + h, D)).reshape(B, S, D)
            v = (v + vec(l, ROW_BV + h, D)).reshape(B, S, D)

            s = jnp.einsum('bqd,bkd->bqk', q, k,
                           preferred_element_type=f32) * scale
            s = jnp.where(causal, s, NEG_INF)
            m = jnp.max(s, axis=-1, keepdims=True)
            e = jnp.exp(s - m)
            p = e * pl.reciprocal(jnp.sum(e, axis=-1, keepdims=True),
                                  approx=False)
            o = jnp.einsum('bqk,bkd->bqd', p, v,
                           preferred_element_type=f32)             # (B,S,D)

            # fold head back through a sublane-aligned row slice of Wo
            wo_h = wslab_ref[l, WO_ROW + h * D:WO_ROW + (h + 1) * D, :E]
            contrib = jnp.dot(o.reshape(N, D), wo_h,
                              preferred_element_type=f32)          # (N, E)
            attn = contrib if attn is None else attn + contrib
        attn = attn + vec(l, ROW_BO, E)

        # ---- residual + LayerNorm 1 ----
        h1 = _layer_norm(x + attn, vec(l, ROW_LN1G, E), vec(l, ROW_LN1B, E))

        # ---- feed-forward ----
        w1 = wslab_ref[l, W1_ROW:W1_ROW + E, :HIDDEN]
        w2 = wslab_ref[l, W2_ROW:W2_ROW + HIDDEN, :E]
        ff = jnp.dot(h1, w1, preferred_element_type=f32) + vec(l, ROW_B1, HIDDEN)
        ff = jnp.maximum(ff, 0.0)
        ff = jnp.dot(ff, w2, preferred_element_type=f32) + vec(l, ROW_B2, E)

        # ---- residual + LayerNorm 2 ----
        x = _layer_norm(h1 + ff, vec(l, ROW_LN2G, E), vec(l, ROW_LN2B, E))

    # TODO(synk): at scaled-up sizes write a lane-dense (rows, 128) output.
    out_ref[...] = x.reshape(B, S, E)


def transformer_encoder(tokens, packed):
    """tokens: (B, S) int32 -> (B, S, E) float32."""
    B, S = tokens.shape
    tok2d = tokens.reshape(B * S, 1).astype(jnp.int32)
    vmem = lambda: pl.BlockSpec(memory_space=pltpu.MemorySpace.VMEM)
    return pl.pallas_call(
        _encoder_kernel,
        out_shape=jax.ShapeDtypeStruct((B, S, EMBED), jnp.float32),
        in_specs=[vmem() for _ in range(6)],
        out_specs=vmem(),
    )(tok2d, packed["embedding"], packed["pos_enc"],
      packed["wqkv"], packed["vecs"], packed["wslab"])


def make_positional_encoding(seq_len, embed_size):
    pos = np.arange(seq_len, dtype=np.float32)[:, None]
    div = np.exp(np.arange(0, embed_size, 2, dtype=np.float32)
                 * -(np.log(10000.0) / embed_size))
    pe = np.zeros((seq_len, embed_size), dtype=np.float32)
    pe[:, 0::2] = np.sin(pos * div)
    pe[:, 1::2] = np.cos(pos * div)
    return jnp.asarray(pe)


def init_params(key):
    """Raw (un-packed) parameters in the natural PyTorch layout."""
    L, E, Hd = NUM_LAYERS, EMBED, HIDDEN
    ks = jax.random.split(key, 14)
    w = lambda k, shape: 0.02 * jax.random.normal(k, shape, jnp.float32)
    return {
        "embedding": w(ks[0], (VOCAB_SIZE, E)),
        "pos_enc": make_positional_encoding(SEQ_LEN, E),
        "wq": w(ks[1], (L, E, E)), "bq": w(ks[2], (L, E)),
        "wk": w(ks[3], (L, E, E)), "bk": w(ks[4], (L, E)),
        "wv": w(ks[5], (L, E, E)), "bv": w(ks[6], (L, E)),
        "wo": w(ks[7], (L, E, E)), "bo": w(ks[8], (L, E)),
        "w1": w(ks[9], (L, E, Hd)), "b1": w(ks[10], (L, Hd)),
        "w2": w(ks[11], (L, Hd, E)), "b2": w(ks[12], (L, E)),
        "ln1_g": jnp.ones((L, E), jnp.float32),
        "ln1_b": jnp.zeros((L, E), jnp.float32),
        "ln2_g": jnp.ones((L, E), jnp.float32),
        "ln2_b": jnp.zeros((L, E), jnp.float32),
    }


def pack_params(raw):
    """Pack raw params into the 6 slabs consumed by the kernel."""
    L, E, Hd, H, D = NUM_LAYERS, EMBED, HIDDEN, NUM_HEADS, HEAD_DIM

    def head_major(wm):                 # (L, E, E) -> (L, H, E, D)
        return wm.reshape(L, E, H, D).transpose(0, 2, 1, 3)

    wqkv = jnp.stack([head_major(raw["wq"]), head_major(raw["wk"]),
                      head_major(raw["wv"])], axis=1)        # (L, 3, H, E, D)
    wqkv = wqkv.reshape(L * 3 * H, E, D)

    vecs = jnp.zeros((L, VEC_ROWS, VEC_LANES), jnp.float32)
    vecs = vecs.at[:, ROW_BQ:ROW_BQ + H, :D].set(raw["bq"].reshape(L, H, D))
    vecs = vecs.at[:, ROW_BK:ROW_BK + H, :D].set(raw["bk"].reshape(L, H, D))
    vecs = vecs.at[:, ROW_BV:ROW_BV + H, :D].set(raw["bv"].reshape(L, H, D))
    vecs = vecs.at[:, ROW_BO, :E].set(raw["bo"])
    vecs = vecs.at[:, ROW_B1, :Hd].set(raw["b1"])
    vecs = vecs.at[:, ROW_B2, :E].set(raw["b2"])
    vecs = vecs.at[:, ROW_LN1G, :E].set(raw["ln1_g"])
    vecs = vecs.at[:, ROW_LN1B, :E].set(raw["ln1_b"])
    vecs = vecs.at[:, ROW_LN2G, :E].set(raw["ln2_g"])
    vecs = vecs.at[:, ROW_LN2B, :E].set(raw["ln2_b"])

    wslab = jnp.zeros((L, WSLAB_ROWS, WSLAB_LANES), jnp.float32)
    wslab = wslab.at[:, W1_ROW:W1_ROW + E, :Hd].set(raw["w1"])
    wslab = wslab.at[:, W2_ROW:W2_ROW + Hd, :E].set(raw["w2"])
    wslab = wslab.at[:, WO_ROW:WO_ROW + E, :E].set(raw["wo"])

    return {"embedding": raw["embedding"], "pos_enc": raw["pos_enc"],
            "wqkv": wqkv, "vecs": vecs, "wslab": wslab}


def reference_forward(tokens, raw):
    """Pure-JAX reference of the PyTorch module (eval mode)."""
    B, S = tokens.shape
    E, H, D = EMBED, NUM_HEADS, HEAD_DIM
    hp = jax.lax.Precision.HIGHEST
    x = raw["embedding"][tokens] + raw["pos_enc"][:S][None]
    allowed = jnp.tril(jnp.ones((S, S), dtype=jnp.bool_))
    for l in range(NUM_LAYERS):
        q = jnp.einsum('bse,ef->bsf', x, raw["wq"][l], precision=hp) + raw["bq"][l]
        k = jnp.einsum('bse,ef->bsf', x, raw["wk"][l], precision=hp) + raw["bk"][l]
        v = jnp.einsum('bse,ef->bsf', x, raw["wv"][l], precision=hp) + raw["bv"][l]
        q = q.reshape(B, S, H, D).transpose(0, 2, 1, 3)
        k = k.reshape(B, S, H, D).transpose(0, 2, 1, 3)
        v = v.reshape(B, S, H, D).transpose(0, 2, 1, 3)
        s = jnp.einsum('bhqd,bhkd->bhqk', q, k, precision=hp) / (D ** 0.5)
        s = jnp.where(allowed[None, None], s, NEG_INF)
        p = jax.nn.softmax(s, axis=-1)
        o = jnp.einsum('bhqk,bhkd->bhqd', p, v, precision=hp)
        o = o.transpose(0, 2, 1, 3).reshape(B, S, E)
        attn = jnp.einsum('bse,ef->bsf', o, raw["wo"][l], precision=hp) + raw["bo"][l]
        x = _layer_norm(x + attn, raw["ln1_g"][l], raw["ln1_b"][l])
        ff = jnp.einsum('bse,eh->bsh', x, raw["w1"][l], precision=hp) + raw["b1"][l]
        ff = jnp.maximum(ff, 0.0)
        ff = jnp.einsum('bsh,he->bse', ff, raw["w2"][l], precision=hp) + raw["b2"][l]
        x = _layer_norm(x + ff, raw["ln2_g"][l], raw["ln2_b"][l])
    return x


if __name__ == "__main__":
    key = jax.random.PRNGKey(0)
    key, k_tok = jax.random.split(key)
    tokens = jax.random.randint(k_tok, (BATCH, SEQ_LEN), 0, VOCAB_SIZE,
                                dtype=jnp.int32)
    raw = init_params(key)
    packed = pack_params(raw)

    out = jax.jit(transformer_encoder)(tokens, packed)
    jax.block_until_ready(out)

    assert out.shape == (BATCH, SEQ_LEN, EMBED)
    assert bool(jnp.all(jnp.isfinite(out)))
    ref = reference_forward(tokens, raw)
    assert bool(jnp.allclose(out, ref, atol=1e-3, rtol=1e-3)), \
        float(jnp.max(jnp.abs(out - ref)))
    print("KERNEL_OK")
</pallas_src>

<mosaic_0001>
module attributes {stable_mosaic.version = 11 : i64} {
  func.func @_encoder_kernel(%arg0: memref<16x1xi32, #tpu.memory_space<vmem>>, %arg1: memref<50x32xf32, #tpu.memory_space<vmem>>, %arg2: memref<8x32xf32, #tpu.memory_space<vmem>>, %arg3: memref<24x32x8xf32, #tpu.memory_space<vmem>>, %arg4: memref<2x24x128xf32, #tpu.memory_space<vmem>>, %arg5: memref<2x128x64xf32, #tpu.memory_space<vmem>>, %arg6: memref<2x8x32xf32, #tpu.memory_space<vmem>>) attributes {dimension_semantics = [], scalar_prefetch = 0 : i64, scratch_operands = 0 : i64, tpu.core_type = #tpu.core_type<tc>} {
    %c0 = arith.constant 0 : index
    %c0_0 = arith.constant 0 : index
    %0 = vector.load %arg0[%c0, %c0_0] : memref<16x1xi32, #tpu.memory_space<vmem>>, vector<16x1xi32>
    %1 = tpu.iota {dimensions = array<i32: 1>} : vector<16x50xi32>
    %2 = vector.broadcast %0 : vector<16x1xi32> to vector<16x50xi32>
    %3 = arith.cmpi eq, %1, %2 : vector<16x50xi32>
    %4 = arith.extui %3 : vector<16x50xi1> to vector<16x50xi32>
    %5 = arith.sitofp %4 : vector<16x50xi32> to vector<16x50xf32>
    %c0_1 = arith.constant 0 : index
    %c0_2 = arith.constant 0 : index
    %6 = vector.load %arg1[%c0_1, %c0_2] : memref<50x32xf32, #tpu.memory_space<vmem>>, vector<50x32xf32>
    %cst = arith.constant dense<0.000000e+00> : vector<16x32xf32>
    %7 = tpu.matmul %5, %6, %cst {dimension_numbers = #tpu.dot_dimension_numbers<[1], [0], [0], [1], [0, 0, 1, 1], [], []>} : vector<16x50xf32>, vector<50x32xf32>, vector<16x32xf32> -> vector<16x32xf32>
    %8 = vector.shape_cast %7 : vector<16x32xf32> to vector<2x8x32xf32>
    %c0_3 = arith.constant 0 : index
    %c0_4 = arith.constant 0 : index
    %9 = vector.load %arg2[%c0_3, %c0_4] : memref<8x32xf32, #tpu.memory_space<vmem>>, vector<8x32xf32>
    %10 = vector.shape_cast %9 : vector<8x32xf32> to vector<1x8x32xf32>
    %11 = vector.broadcast %10 : vector<1x8x32xf32> to vector<2x8x32xf32>
    %12 = arith.addf %8, %11 : vector<2x8x32xf32>
    %13 = vector.shape_cast %12 : vector<2x8x32xf32> to vector<16x32xf32>
    %14 = tpu.iota {dimensions = array<i32: 0>} : vector<8x8xi32>
    %15 = tpu.iota {dimensions = array<i32: 1>} : vector<8x8xi32>
    %16 = arith.cmpi sle, %15, %14 : vector<8x8xi32>
    %17 = vector.shape_cast %16 : vector<8x8xi1> to vector<1x8x8xi1>
    %c0_5 = arith.constant 0 : index
    %c0_6 = arith.constant 0 : index
    %c0_7 = arith.constant 0 : index
    %18 = vector.load %arg3[%c0_5, %c0_6, %c0_7] : memref<24x32x8xf32, #tpu.memory_space<vmem>>, vector<1x32x8xf32>
    %19 = vector.shape_cast %18 : vector<1x32x8xf32> to vector<32x8xf32>
    %cst_8 = arith.constant dense<0.000000e+00> : vector<16x8xf32>
    %20 = tpu.matmul %13, %19, %cst_8 {dimension_numbers = #tpu.dot_dimension_numbers<[1], [0], [0], [1], [0, 0, 1, 1], [], []>} : vector<16x32xf32>, vector<32x8xf32>, vector<16x8xf32> -> vector<16x8xf32>
    %c4 = arith.constant 4 : index
    %c0_9 = arith.constant 0 : index
    %c0_10 = arith.constant 0 : index
    %21 = vector.load %arg3[%c4, %c0_9, %c0_10] : memref<24x32x8xf32, #tpu.memory_space<vmem>>, vector<1x32x8xf32>
    %22 = vector.shape_cast %21 : vector<1x32x8xf32> to vector<32x8xf32>
    %cst_11 = arith.constant dense<0.000000e+00> : vector<16x8xf32>
    %23 = tpu.matmul %13, %22, %cst_11 {dimension_numbers = #tpu.dot_dimension_numbers<[1], [0], [0], [1], [0, 0, 1, 1], [], []>} : vector<16x32xf32>, vector<32x8xf32>, vector<16x8xf32> -> vector<16x8xf32>
    %c8 = arith.constant 8 : index
    %c0_12 = arith.constant 0 : index
    %c0_13 = arith.constant 0 : index
    %24 = vector.load %arg3[%c8, %c0_12, %c0_13] : memref<24x32x8xf32, #tpu.memory_space<vmem>>, vector<1x32x8xf32>
    %25 = vector.shape_cast %24 : vector<1x32x8xf32> to vector<32x8xf32>
    %cst_14 = arith.constant dense<0.000000e+00> : vector<16x8xf32>
    %26 = tpu.matmul %13, %25, %cst_14 {dimension_numbers = #tpu.dot_dimension_numbers<[1], [0], [0], [1], [0, 0, 1, 1], [], []>} : vector<16x32xf32>, vector<32x8xf32>, vector<16x8xf32> -> vector<16x8xf32>
    %c0_15 = arith.constant 0 : index
    %c0_16 = arith.constant 0 : index
    %c0_17 = arith.constant 0 : index
    %27 = vector.load %arg4[%c0_15, %c0_16, %c0_17] : memref<2x24x128xf32, #tpu.memory_space<vmem>>, vector<1x1x8xf32>
    %28 = vector.shape_cast %27 : vector<1x1x8xf32> to vector<1x8xf32>
    %29 = vector.broadcast %28 : vector<1x8xf32> to vector<16x8xf32>
    %30 = arith.addf %20, %29 : vector<16x8xf32>
    %31 = vector.shape_cast %30 : vector<16x8xf32> to vector<2x8x8xf32>
    %c0_18 = arith.constant 0 : index
    %c4_19 = arith.constant 4 : index
    %c0_20 = arith.constant 0 : index
    %32 = vector.load %arg4[%c0_18, %c4_19, %c0_20] : memref<2x24x128xf32, #tpu.memory_space<vmem>>, vector<1x1x8xf32>
    %33 = vector.shape_cast %32 : vector<1x1x8xf32> to vector<1x8xf32>
    %34 = vector.broadcast %33 : vector<1x8xf32> to vector<16x8xf32>
    %35 = arith.addf %23, %34 : vector<16x8xf32>
    %36 = vector.shape_cast %35 : vector<16x8xf32> to vector<2x8x8xf32>
    %c0_21 = arith.constant 0 : index
    %c8_22 = arith.constant 8 : index
    %c0_23 = arith.constant 0 : index
    %37 = vector.load %arg4[%c0_21, %c8_22, %c0_23] : memref<2x24x128xf32, #tpu.memory_space<vmem>>, vector<1x1x8xf32>
    %38 = vector.shape_cast %37 : vector<1x1x8xf32> to vector<1x8xf32>
    %39 = vector.broadcast %38 : vector<1x8xf32> to vector<16x8xf32>
    %40 = arith.addf %26, %39 : vector<16x8xf32>
    %41 = vector.shape_cast %40 : vector<16x8xf32> to vector<2x8x8xf32>
    "tpu.trace_start"() <{level = 10 : i32, message = "bqd,bkd->bqk"}> : () -> ()
    %cst_24 = arith.constant dense<0.000000e+00> : vector<2x8x8xf32>
    %42 = tpu.matmul %31, %36, %cst_24 {dimension_numbers = #tpu.dot_dimension_numbers<[2], [2], [1], [1], [0, 0, 0, 1, 1, 1], [0], [0]>} : vector<2x8x8xf32>, vector<2x8x8xf32>, vector<2x8x8xf32> -> vector<2x8x8xf32>
    "tpu.trace_stop"() : () -> ()
    %cst_25 = arith.constant 0.353553385 : f32
    %43 = vector.broadcast %cst_25 : f32 to vector<2x8x8xf32>
    %44 = arith.mulf %42, %43 : vector<2x8x8xf32>
    %cst_26 = arith.constant -1.000000e+30 : f32
    %45 = vector.shape_cast %17 : vector<1x8x8xi1> to vector<1x8x8xi1>
    %46 = vector.broadcast %45 : vector<1x8x8xi1> to vector<2x8x8xi1>
    %47 = vector.broadcast %cst_26 : f32 to vector<2x8x8xf32>
    %48 = arith.select %46, %44, %47 : vector<2x8x8xi1>, vector<2x8x8xf32>
    %cst_27 = arith.constant dense<0xFF800000> : vector<2x8xf32>
    %49 = vector.multi_reduction <maximumf>, %48, %cst_27 [2] : vector<2x8x8xf32> to vector<2x8xf32>
    %50 = vector.shape_cast %49 : vector<2x8xf32> to vector<2x8x1xf32>
    %51 = vector.broadcast %50 : vector<2x8x1xf32> to vector<2x8x8xf32>
    %52 = arith.subf %48, %51 : vector<2x8x8xf32>
    %53 = math.exp %52 : vector<2x8x8xf32>
    %cst_28 = arith.constant dense<0.000000e+00> : vector<2x8xf32>
    %54 = vector.multi_reduction <add>, %53, %cst_28 [2] : vector<2x8x8xf32> to vector<2x8xf32>
    %55 = vector.shape_cast %54 : vector<2x8xf32> to vector<2x8x1xf32>
    %56 = tpu.reciprocal %55 : vector<2x8x1xf32> -> vector<2x8x1xf32>
    %57 = vector.broadcast %56 : vector<2x8x1xf32> to vector<2x8x8xf32>
    %58 = arith.mulf %53, %57 : vector<2x8x8xf32>
    "tpu.trace_start"() <{level = 10 : i32, message = "bqk,bkd->bqd"}> : () -> ()
    %cst_29 = arith.constant dense<0.000000e+00> : vector<2x8x8xf32>
    %59 = tpu.matmul %58, %41, %cst_29 {dimension_numbers = #tpu.dot_dimension_numbers<[2], [1], [1], [2], [0, 0, 0, 1, 1, 2], [0], [0]>} : vector<2x8x8xf32>, vector<2x8x8xf32>, vector<2x8x8xf32> -> vector<2x8x8xf32>
    "tpu.trace_stop"() : () -> ()
    %c0_30 = arith.constant 0 : index
    %c96 = arith.constant 96 : index
    %c0_31 = arith.constant 0 : index
    %60 = vector.load %arg5[%c0_30, %c96, %c0_31] : memref<2x128x64xf32, #tpu.memory_space<vmem>>, vector<1x8x32xf32>
    %61 = vector.shape_cast %60 : vector<1x8x32xf32> to vector<8x32xf32>
    %62 = vector.shape_cast %59 : vector<2x8x8xf32> to vector<16x8xf32>
    %cst_32 = arith.constant dense<0.000000e+00> : vector<16x32xf32>
    %63 = tpu.matmul %62, %61, %cst_32 {dimension_numbers = #tpu.dot_dimension_numbers<[1], [0], [0], [1], [0, 0, 1, 1], [], []>} : vector<16x8xf32>, vector<8x32xf32>, vector<16x32xf32> -> vector<16x32xf32>
    %c1 = arith.constant 1 : index
    %c0_33 = arith.constant 0 : index
    %c0_34 = arith.constant 0 : index
    %64 = vector.load %arg3[%c1, %c0_33, %c0_34] : memref<24x32x8xf32, #tpu.memory_space<vmem>>, vector<1x32x8xf32>
    %65 = vector.shape_cast %64 : vector<1x32x8xf32> to vector<32x8xf32>
    %cst_35 = arith.constant dense<0.000000e+00> : vector<16x8xf32>
    %66 = tpu.matmul %13, %65, %cst_35 {dimension_numbers = #tpu.dot_dimension_numbers<[1], [0], [0], [1], [0, 0, 1, 1], [], []>} : vector<16x32xf32>, vector<32x8xf32>, vector<16x8xf32> -> vector<16x8xf32>
    %c5 = arith.constant 5 : index
    %c0_36 = arith.constant 0 : index
    %c0_37 = arith.constant 0 : index
    %67 = vector.load %arg3[%c5, %c0_36, %c0_37] : memref<24x32x8xf32, #tpu.memory_space<vmem>>, vector<1x32x8xf32>
    %68 = vector.shape_cast %67 : vector<1x32x8xf32> to vector<32x8xf32>
    %cst_38 = arith.constant dense<0.000000e+00> : vector<16x8xf32>
    %69 = tpu.matmul %13, %68, %cst_38 {dimension_numbers = #tpu.dot_dimension_numbers<[1], [0], [0], [1], [0, 0, 1, 1], [], []>} : vector<16x32xf32>, vector<32x8xf32>, vector<16x8xf32> -> vector<16x8xf32>
    %c9 = arith.constant 9 : index
    %c0_39 = arith.constant 0 : index
    %c0_40 = arith.constant 0 : index
    %70 = vector.load %arg3[%c9, %c0_39, %c0_40] : memref<24x32x8xf32, #tpu.memory_space<vmem>>, vector<1x32x8xf32>
    %71 = vector.shape_cast %70 : vector<1x32x8xf32> to vector<32x8xf32>
    %cst_41 = arith.constant dense<0.000000e+00> : vector<16x8xf32>
    %72 = tpu.matmul %13, %71, %cst_41 {dimension_numbers = #tpu.dot_dimension_numbers<[1], [0], [0], [1], [0, 0, 1, 1], [], []>} : vector<16x32xf32>, vector<32x8xf32>, vector<16x8xf32> -> vector<16x8xf32>
    %c0_42 = arith.constant 0 : index
    %c1_43 = arith.constant 1 : index
    %c0_44 = arith.constant 0 : index
    %73 = vector.load %arg4[%c0_42, %c1_43, %c0_44] : memref<2x24x128xf32, #tpu.memory_space<vmem>>, vector<1x1x8xf32>
    %74 = vector.shape_cast %73 : vector<1x1x8xf32> to vector<1x8xf32>
    %75 = vector.broadcast %74 : vector<1x8xf32> to vector<16x8xf32>
    %76 = arith.addf %66, %75 : vector<16x8xf32>
    %77 = vector.shape_cast %76 : vector<16x8xf32> to vector<2x8x8xf32>
    %c0_45 = arith.constant 0 : index
    %c5_46 = arith.constant 5 : index
    %c0_47 = arith.constant 0 : index
    %78 = vector.load %arg4[%c0_45, %c5_46, %c0_47] : memref<2x24x128xf32, #tpu.memory_space<vmem>>, vector<1x1x8xf32>
    %79 = vector.shape_cast %78 : vector<1x1x8xf32> to vector<1x8xf32>
    %80 = vector.broadcast %79 : vector<1x8xf32> to vector<16x8xf32>
    %81 = arith.addf %69, %80 : vector<16x8xf32>
    %82 = vector.shape_cast %81 : vector<16x8xf32> to vector<2x8x8xf32>
    %c0_48 = arith.constant 0 : index
    %c9_49 = arith.constant 9 : index
    %c0_50 = arith.constant 0 : index
    %83 = vector.load %arg4[%c0_48, %c9_49, %c0_50] : memref<2x24x128xf32, #tpu.memory_space<vmem>>, vector<1x1x8xf32>
    %84 = vector.shape_cast %83 : vector<1x1x8xf32> to vector<1x8xf32>
    %85 = vector.broadcast %84 : vector<1x8xf32> to vector<16x8xf32>
    %86 = arith.addf %72, %85 : vector<16x8xf32>
    %87 = vector.shape_cast %86 : vector<16x8xf32> to vector<2x8x8xf32>
    "tpu.trace_start"() <{level = 10 : i32, message = "bqd,bkd->bqk"}> : () -> ()
    %cst_51 = arith.constant dense<0.000000e+00> : vector<2x8x8xf32>
    %88 = tpu.matmul %77, %82, %cst_51 {dimension_numbers = #tpu.dot_dimension_numbers<[2], [2], [1], [1], [0, 0, 0, 1, 1, 1], [0], [0]>} : vector<2x8x8xf32>, vector<2x8x8xf32>, vector<2x8x8xf32> -> vector<2x8x8xf32>
    "tpu.trace_stop"() : () -> ()
    %cst_52 = arith.constant 0.353553385 : f32
    %89 = vector.broadcast %cst_52 : f32 to vector<2x8x8xf32>
    %90 = arith.mulf %88, %89 : vector<2x8x8xf32>
    %cst_53 = arith.constant -1.000000e+30 : f32
    %91 = vector.shape_cast %17 : vector<1x8x8xi1> to vector<1x8x8xi1>
    %92 = vector.broadcast %91 : vector<1x8x8xi1> to vector<2x8x8xi1>
    %93 = vector.broadcast %cst_53 : f32 to vector<2x8x8xf32>
    %94 = arith.select %92, %90, %93 : vector<2x8x8xi1>, vector<2x8x8xf32>
    %cst_54 = arith.constant dense<0xFF800000> : vector<2x8xf32>
    %95 = vector.multi_reduction <maximumf>, %94, %cst_54 [2] : vector<2x8x8xf32> to vector<2x8xf32>
    %96 = vector.shape_cast %95 : vector<2x8xf32> to vector<2x8x1xf32>
    %97 = vector.broadcast %96 : vector<2x8x1xf32> to vector<2x8x8xf32>
    %98 = arith.subf %94, %97 : vector<2x8x8xf32>
    %99 = math.exp %98 : vector<2x8x8xf32>
    %cst_55 = arith.constant dense<0.000000e+00> : vector<2x8xf32>
    %100 = vector.multi_reduction <add>, %99, %cst_55 [2] : vector<2x8x8xf32> to vector<2x8xf32>
    %101 = vector.shape_cast %100 : vector<2x8xf32> to vector<2x8x1xf32>
    %102 = tpu.reciprocal %101 : vector<2x8x1xf32> -> vector<2x8x1xf32>
    %103 = vector.broadcast %102 : vector<2x8x1xf32> to vector<2x8x8xf32>
    %104 = arith.mulf %99, %103 : vector<2x8x8xf32>
    "tpu.trace_start"() <{level = 10 : i32, message = "bqk,bkd->bqd"}> : () -> ()
    %cst_56 = arith.constant dense<0.000000e+00> : vector<2x8x8xf32>
    %105 = tpu.matmul %104, %87, %cst_56 {dimension_numbers = #tpu.dot_dimension_numbers<[2], [1], [1], [2], [0, 0, 0, 1, 1, 2], [0], [0]>} : vector<2x8x8xf32>, vector<2x8x8xf32>, vector<2x8x8xf32> -> vector<2x8x8xf32>
    "tpu.trace_stop"() : () -> ()
    %c0_57 = arith.constant 0 : index
    %c104 = arith.constant 104 : index
    %c0_58 = arith.constant 0 : index
    %106 = vector.load %arg5[%c0_57, %c104, %c0_58] : memref<2x128x64xf32, #tpu.memory_space<vmem>>, vector<1x8x32xf32>
    %107 = vector.shape_cast %106 : vector<1x8x32xf32> to vector<8x32xf32>
    %108 = vector.shape_cast %105 : vector<2x8x8xf32> to vector<16x8xf32>
    %cst_59 = arith.constant dense<0.000000e+00> : vector<16x32xf32>
    %109 = tpu.matmul %108, %107, %cst_59 {dimension_numbers = #tpu.dot_dimension_numbers<[1], [0], [0], [1], [0, 0, 1, 1], [], []>} : vector<16x8xf32>, vector<8x32xf32>, vector<16x32xf32> -> vector<16x32xf32>
    %110 = arith.addf %63, %109 : vector<16x32xf32>
    %c2 = arith.constant 2 : index
    %c0_60 = arith.constant 0 : index
    %c0_61 = arith.constant 0 : index
    %111 = vector.load %arg3[%c2, %c0_60, %c0_61] : memref<24x32x8xf32, #tpu.memory_space<vmem>>, vector<1x32x8xf32>
    %112 = vector.shape_cast %111 : vector<1x32x8xf32> to vector<32x8xf32>
    %cst_62 = arith.constant dense<0.000000e+00> : vector<16x8xf32>
    %113 = tpu.matmul %13, %112, %cst_62 {dimension_numbers = #tpu.dot_dimension_numbers<[1], [0], [0], [1], [0, 0, 1, 1], [], []>} : vector<16x32xf32>, vector<32x8xf32>, vector<16x8xf32> -> vector<16x8xf32>
    %c6 = arith.constant 6 : index
    %c0_63 = arith.constant 0 : index
    %c0_64 = arith.constant 0 : index
    %114 = vector.load %arg3[%c6, %c0_63, %c0_64] : memref<24x32x8xf32, #tpu.memory_space<vmem>>, vector<1x32x8xf32>
    %115 = vector.shape_cast %114 : vector<1x32x8xf32> to vector<32x8xf32>
    %cst_65 = arith.constant dense<0.000000e+00> : vector<16x8xf32>
    %116 = tpu.matmul %13, %115, %cst_65 {dimension_numbers = #tpu.dot_dimension_numbers<[1], [0], [0], [1], [0, 0, 1, 1], [], []>} : vector<16x32xf32>, vector<32x8xf32>, vector<16x8xf32> -> vector<16x8xf32>
    %c10 = arith.constant 10 : index
    %c0_66 = arith.constant 0 : index
    %c0_67 = arith.constant 0 : index
    %117 = vector.load %arg3[%c10, %c0_66, %c0_67] : memref<24x32x8xf32, #tpu.memory_space<vmem>>, vector<1x32x8xf32>
    %118 = vector.shape_cast %117 : vector<1x32x8xf32> to vector<32x8xf32>
    %cst_68 = arith.constant dense<0.000000e+00> : vector<16x8xf32>
    %119 = tpu.matmul %13, %118, %cst_68 {dimension_numbers = #tpu.dot_dimension_numbers<[1], [0], [0], [1], [0, 0, 1, 1], [], []>} : vector<16x32xf32>, vector<32x8xf32>, vector<16x8xf32> -> vector<16x8xf32>
    %c0_69 = arith.constant 0 : index
    %c2_70 = arith.constant 2 : index
    %c0_71 = arith.constant 0 : index
    %120 = vector.load %arg4[%c0_69, %c2_70, %c0_71] : memref<2x24x128xf32, #tpu.memory_space<vmem>>, vector<1x1x8xf32>
    %121 = vector.shape_cast %120 : vector<1x1x8xf32> to vector<1x8xf32>
    %122 = vector.broadcast %121 : vector<1x8xf32> to vector<16x8xf32>
    %123 = arith.addf %113, %122 : vector<16x8xf32>
    %124 = vector.shape_cast %123 : vector<16x8xf32> to vector<2x8x8xf32>
    %c0_72 = arith.constant 0 : index
    %c6_73 = arith.constant 6 : index
    %c0_74 = arith.constant 0 : index
    %125 = vector.load %arg4[%c0_72, %c6_73, %c0_74] : memref<2x24x128xf32, #tpu.memory_space<vmem>>, vector<1x1x8xf32>
    %126 = vector.shape_cast %125 : vector<1x1x8xf32> to vector<1x8xf32>
    %127 = vector.broadcast %126 : vector<1x8xf32> to vector<16x8xf32>
    %128 = arith.addf %116, %127 : vector<16x8xf32>
    %129 = vector.shape_cast %128 : vector<16x8xf32> to vector<2x8x8xf32>
    %c0_75 = arith.constant 0 : index
    %c10_76 = arith.constant 10 : index
    %c0_77 = arith.constant 0 : index
    %130 = vector.load %arg4[%c0_75, %c10_76, %c0_77] : memref<2x24x128xf32, #tpu.memory_space<vmem>>, vector<1x1x8xf32>
    %131 = vector.shape_cast %130 : vector<1x1x8xf32> to vector<1x8xf32>
    %132 = vector.broadcast %131 : vector<1x8xf32> to vector<16x8xf32>
    %133 = arith.addf %119, %132 : vector<16x8xf32>
    %134 = vector.shape_cast %133 : vector<16x8xf32> to vector<2x8x8xf32>
    "tpu.trace_start"() <{level = 10 : i32, message = "bqd,bkd->bqk"}> : () -> ()
    %cst_78 = arith.constant dense<0.000000e+00> : vector<2x8x8xf32>
    %135 = tpu.matmul %124, %129, %cst_78 {dimension_numbers = #tpu.dot_dimension_numbers<[2], [2], [1], [1], [0, 0, 0, 1, 1, 1], [0], [0]>} : vector<2x8x8xf32>, vector<2x8x8xf32>, vector<2x8x8xf32> -> vector<2x8x8xf32>
    "tpu.trace_stop"() : () -> ()
    %cst_79 = arith.constant 0.353553385 : f32
    %136 = vector.broadcast %cst_79 : f32 to vector<2x8x8xf32>
    %137 = arith.mulf %135, %136 : vector<2x8x8xf32>
    %cst_80 = arith.constant -1.000000e+30 : f32
    %138 = vector.shape_cast %17 : vector<1x8x8xi1> to vector<1x8x8xi1>
    %139 = vector.broadcast %138 : vector<1x8x8xi1> to vector<2x8x8xi1>
    %140 = vector.broadcast %cst_80 : f32 to vector<2x8x8xf32>
    %141 = arith.select %139, %137, %140 : vector<2x8x8xi1>, vector<2x8x8xf32>
    %cst_81 = arith.constant dense<0xFF800000> : vector<2x8xf32>
    %142 = vector.multi_reduction <maximumf>, %141, %cst_81 [2] : vector<2x8x8xf32> to vector<2x8xf32>
    %143 = vector.shape_cast %142 : vector<2x8xf32> to vector<2x8x1xf32>
    %144 = vector.broadcast %143 : vector<2x8x1xf32> to vector<2x8x8xf32>
    %145 = arith.subf %141, %144 : vector<2x8x8xf32>
    %146 = math.exp %145 : vector<2x8x8xf32>
    %cst_82 = arith.constant dense<0.000000e+00> : vector<2x8xf32>
    %147 = vector.multi_reduction <add>, %146, %cst_82 [2] : vector<2x8x8xf32> to vector<2x8xf32>
    %148 = vector.shape_cast %147 : vector<2x8xf32> to vector<2x8x1xf32>
    %149 = tpu.reciprocal %148 : vector<2x8x1xf32> -> vector<2x8x1xf32>
    %150 = vector.broadcast %149 : vector<2x8x1xf32> to vector<2x8x8xf32>
    %151 = arith.mulf %146, %150 : vector<2x8x8xf32>
    "tpu.trace_start"() <{level = 10 : i32, message = "bqk,bkd->bqd"}> : () -> ()
    %cst_83 = arith.constant dense<0.000000e+00> : vector<2x8x8xf32>
    %152 = tpu.matmul %151, %134, %cst_83 {dimension_numbers = #tpu.dot_dimension_numbers<[2], [1], [1], [2], [0, 0, 0, 1, 1, 2], [0], [0]>} : vector<2x8x8xf32>, vector<2x8x8xf32>, vector<2x8x8xf32> -> vector<2x8x8xf32>
    "tpu.trace_stop"() : () -> ()
    %c0_84 = arith.constant 0 : index
    %c112 = arith.constant 112 : index
    %c0_85 = arith.constant 0 : index
    %153 = vector.load %arg5[%c0_84, %c112, %c0_85] : memref<2x128x64xf32, #tpu.memory_space<vmem>>, vector<1x8x32xf32>
    %154 = vector.shape_cast %153 : vector<1x8x32xf32> to vector<8x32xf32>
    %155 = vector.shape_cast %152 : vector<2x8x8xf32> to vector<16x8xf32>
    %cst_86 = arith.constant dense<0.000000e+00> : vector<16x32xf32>
    %156 = tpu.matmul %155, %154, %cst_86 {dimension_numbers = #tpu.dot_dimension_numbers<[1], [0], [0], [1], [0, 0, 1, 1], [], []>} : vector<16x8xf32>, vector<8x32xf32>, vector<16x32xf32> -> vector<16x32xf32>
    %157 = arith.addf %110, %156 : vector<16x32xf32>
    %c3 = arith.constant 3 : index
    %c0_87 = arith.constant 0 : index
    %c0_88 = arith.constant 0 : index
    %158 = vector.load %arg3[%c3, %c0_87, %c0_88] : memref<24x32x8xf32, #tpu.memory_space<vmem>>, vector<1x32x8xf32>
    %159 = vector.shape_cast %158 : vector<1x32x8xf32> to vector<32x8xf32>
    %cst_89 = arith.constant dense<0.000000e+00> : vector<16x8xf32>
    %160 = tpu.matmul %13, %159, %cst_89 {dimension_numbers = #tpu.dot_dimension_numbers<[1], [0], [0], [1], [0, 0, 1, 1], [], []>} : vector<16x32xf32>, vector<32x8xf32>, vector<16x8xf32> -> vector<16x8xf32>
    %c7 = arith.constant 7 : index
    %c0_90 = arith.constant 0 : index
    %c0_91 = arith.constant 0 : index
    %161 = vector.load %arg3[%c7, %c0_90, %c0_91] : memref<24x32x8xf32, #tpu.memory_space<vmem>>, vector<1x32x8xf32>
    %162 = vector.shape_cast %161 : vector<1x32x8xf32> to vector<32x8xf32>
    %cst_92 = arith.constant dense<0.000000e+00> : vector<16x8xf32>
    %163 = tpu.matmul %13, %162, %cst_92 {dimension_numbers = #tpu.dot_dimension_numbers<[1], [0], [0], [1], [0, 0, 1, 1], [], []>} : vector<16x32xf32>, vector<32x8xf32>, vector<16x8xf32> -> vector<16x8xf32>
    %c11 = arith.constant 11 : index
    %c0_93 = arith.constant 0 : index
    %c0_94 = arith.constant 0 : index
    %164 = vector.load %arg3[%c11, %c0_93, %c0_94] : memref<24x32x8xf32, #tpu.memory_space<vmem>>, vector<1x32x8xf32>
    %165 = vector.shape_cast %164 : vector<1x32x8xf32> to vector<32x8xf32>
    %cst_95 = arith.constant dense<0.000000e+00> : vector<16x8xf32>
    %166 = tpu.matmul %13, %165, %cst_95 {dimension_numbers = #tpu.dot_dimension_numbers<[1], [0], [0], [1], [0, 0, 1, 1], [], []>} : vector<16x32xf32>, vector<32x8xf32>, vector<16x8xf32> -> vector<16x8xf32>
    %c0_96 = arith.constant 0 : index
    %c3_97 = arith.constant 3 : index
    %c0_98 = arith.constant 0 : index
    %167 = vector.load %arg4[%c0_96, %c3_97, %c0_98] : memref<2x24x128xf32, #tpu.memory_space<vmem>>, vector<1x1x8xf32>
    %168 = vector.shape_cast %167 : vector<1x1x8xf32> to vector<1x8xf32>
    %169 = vector.broadcast %168 : vector<1x8xf32> to vector<16x8xf32>
    %170 = arith.addf %160, %169 : vector<16x8xf32>
    %171 = vector.shape_cast %170 : vector<16x8xf32> to vector<2x8x8xf32>
    %c0_99 = arith.constant 0 : index
    %c7_100 = arith.constant 7 : index
    %c0_101 = arith.constant 0 : index
    %172 = vector.load %arg4[%c0_99, %c7_100, %c0_101] : memref<2x24x128xf32, #tpu.memory_space<vmem>>, vector<1x1x8xf32>
    %173 = vector.shape_cast %172 : vector<1x1x8xf32> to vector<1x8xf32>
    %174 = vector.broadcast %173 : vector<1x8xf32> to vector<16x8xf32>
    %175 = arith.addf %163, %174 : vector<16x8xf32>
    %176 = vector.shape_cast %175 : vector<16x8xf32> to vector<2x8x8xf32>
    %c0_102 = arith.constant 0 : index
    %c11_103 = arith.constant 11 : index
    %c0_104 = arith.constant 0 : index
    %177 = vector.load %arg4[%c0_102, %c11_103, %c0_104] : memref<2x24x128xf32, #tpu.memory_space<vmem>>, vector<1x1x8xf32>
    %178 = vector.shape_cast %177 : vector<1x1x8xf32> to vector<1x8xf32>
    %179 = vector.broadcast %178 : vector<1x8xf32> to vector<16x8xf32>
    %180 = arith.addf %166, %179 : vector<16x8xf32>
    %181 = vector.shape_cast %180 : vector<16x8xf32> to vector<2x8x8xf32>
    "tpu.trace_start"() <{level = 10 : i32, message = "bqd,bkd->bqk"}> : () -> ()
    %cst_105 = arith.constant dense<0.000000e+00> : vector<2x8x8xf32>
    %182 = tpu.matmul %171, %176, %cst_105 {dimension_numbers = #tpu.dot_dimension_numbers<[2], [2], [1], [1], [0, 0, 0, 1, 1, 1], [0], [0]>} : vector<2x8x8xf32>, vector<2x8x8xf32>, vector<2x8x8xf32> -> vector<2x8x8xf32>
    "tpu.trace_stop"() : () -> ()
    %cst_106 = arith.constant 0.353553385 : f32
    %183 = vector.broadcast %cst_106 : f32 to vector<2x8x8xf32>
    %184 = arith.mulf %182, %183 : vector<2x8x8xf32>
    %cst_107 = arith.constant -1.000000e+30 : f32
    %185 = vector.shape_cast %17 : vector<1x8x8xi1> to vector<1x8x8xi1>
    %186 = vector.broadcast %185 : vector<1x8x8xi1> to vector<2x8x8xi1>
    %187 = vector.broadcast %cst_107 : f32 to vector<2x8x8xf32>
    %188 = arith.select %186, %184, %187 : vector<2x8x8xi1>, vector<2x8x8xf32>
    %cst_108 = arith.constant dense<0xFF800000> : vector<2x8xf32>
    %189 = vector.multi_reduction <maximumf>, %188, %cst_108 [2] : vector<2x8x8xf32> to vector<2x8xf32>
    %190 = vector.shape_cast %189 : vector<2x8xf32> to vector<2x8x1xf32>
    %191 = vector.broadcast %190 : vector<2x8x1xf32> to vector<2x8x8xf32>
    %192 = arith.subf %188, %191 : vector<2x8x8xf32>
    %193 = math.exp %192 : vector<2x8x8xf32>
    %cst_109 = arith.constant dense<0.000000e+00> : vector<2x8xf32>
    %194 = vector.multi_reduction <add>, %193, %cst_109 [2] : vector<2x8x8xf32> to vector<2x8xf32>
    %195 = vector.shape_cast %194 : vector<2x8xf32> to vector<2x8x1xf32>
    %196 = tpu.reciprocal %195 : vector<2x8x1xf32> -> vector<2x8x1xf32>
    %197 = vector.broadcast %196 : vector<2x8x1xf32> to vector<2x8x8xf32>
    %198 = arith.mulf %193, %197 : vector<2x8x8xf32>
    "tpu.trace_start"() <{level = 10 : i32, message = "bqk,bkd->bqd"}> : () -> ()
    %cst_110 = arith.constant dense<0.000000e+00> : vector<2x8x8xf32>
    %199 = tpu.matmul %198, %181, %cst_110 {dimension_numbers = #tpu.dot_dimension_numbers<[2], [1], [1], [2], [0, 0, 0, 1, 1, 2], [0], [0]>} : vector<2x8x8xf32>, vector<2x8x8xf32>, vector<2x8x8xf32> -> vector<2x8x8xf32>
    "tpu.trace_stop"() : () -> ()
    %c0_111 = arith.constant 0 : index
    %c120 = arith.constant 120 : index
    %c0_112 = arith.constant 0 : index
    %200 = vector.load %arg5[%c0_111, %c120, %c0_112] : memref<2x128x64xf32, #tpu.memory_space<vmem>>, vector<1x8x32xf32>
    %201 = vector.shape_cast %200 : vector<1x8x32xf32> to vector<8x32xf32>
    %202 = vector.shape_cast %199 : vector<2x8x8xf32> to vector<16x8xf32>
    %cst_113 = arith.constant dense<0.000000e+00> : vector<16x32xf32>
    %203 = tpu.matmul %202, %201, %cst_113 {dimension_numbers = #tpu.dot_dimension_numbers<[1], [0], [0], [1], [0, 0, 1, 1], [], []>} : vector<16x8xf32>, vector<8x32xf32>, vector<16x32xf32> -> vector<16x32xf32>
    %204 = arith.addf %157, %203 : vector<16x32xf32>
    %c0_114 = arith.constant 0 : index
    %c12 = arith.constant 12 : index
    %c0_115 = arith.constant 0 : index
    %205 = vector.load %arg4[%c0_114, %c12, %c0_115] : memref<2x24x128xf32, #tpu.memory_space<vmem>>, vector<1x1x32xf32>
    %206 = vector.shape_cast %205 : vector<1x1x32xf32> to vector<1x32xf32>
    %207 = vector.broadcast %206 : vector<1x32xf32> to vector<16x32xf32>
    %208 = arith.addf %204, %207 : vector<16x32xf32>
    %209 = arith.addf %13, %208 : vector<16x32xf32>
    %c0_116 = arith.constant 0 : index
    %c15 = arith.constant 15 : index
    %c0_117 = arith.constant 0 : index
    %210 = vector.load %arg4[%c0_116, %c15, %c0_117] : memref<2x24x128xf32, #tpu.memory_space<vmem>>, vector<1x1x32xf32>
    %211 = vector.shape_cast %210 : vector<1x1x32xf32> to vector<1x32xf32>
    %c0_118 = arith.constant 0 : index
    %c16 = arith.constant 16 : index
    %c0_119 = arith.constant 0 : index
    %212 = vector.load %arg4[%c0_118, %c16, %c0_119] : memref<2x24x128xf32, #tpu.memory_space<vmem>>, vector<1x1x32xf32>
    %213 = vector.shape_cast %212 : vector<1x1x32xf32> to vector<1x32xf32>
    %cst_120 = arith.constant dense<0.000000e+00> : vector<16xf32>
    %214 = vector.multi_reduction <add>, %209, %cst_120 [1] : vector<16x32xf32> to vector<16xf32>
    %215 = vector.shape_cast %214 : vector<16xf32> to vector<16x1xf32>
    %cst_121 = arith.constant 3.200000e+01 : f32
    %216 = vector.broadcast %cst_121 : f32 to vector<16x1xf32>
    %217 = arith.divf %215, %216 : vector<16x1xf32>
    %218 = vector.broadcast %217 : vector<16x1xf32> to vector<16x32xf32>
    %219 = arith.subf %209, %218 : vector<16x32xf32>
    %220 = arith.mulf %219, %219 : vector<16x32xf32>
    %cst_122 = arith.constant dense<0.000000e+00> : vector<16xf32>
    %221 = vector.multi_reduction <add>, %220, %cst_122 [1] : vector<16x32xf32> to vector<16xf32>
    %222 = vector.shape_cast %221 : vector<16xf32> to vector<16x1xf32>
    %cst_123 = arith.constant 3.200000e+01 : f32
    %223 = vector.broadcast %cst_123 : f32 to vector<16x1xf32>
    %224 = arith.divf %222, %223 : vector<16x1xf32>
    %225 = vector.broadcast %217 : vector<16x1xf32> to vector<16x32xf32>
    %226 = arith.subf %209, %225 : vector<16x32xf32>
    %cst_124 = arith.constant 9.99999974E-6 : f32
    %227 = vector.broadcast %cst_124 : f32 to vector<16x1xf32>
    %228 = arith.addf %224, %227 : vector<16x1xf32>
    %229 = math.rsqrt %228 : vector<16x1xf32>
    %230 = vector.broadcast %229 : vector<16x1xf32> to vector<16x32xf32>
    %231 = arith.mulf %226, %230 : vector<16x32xf32>
    %232 = vector.broadcast %211 : vector<1x32xf32> to vector<16x32xf32>
    %233 = arith.mulf %231, %232 : vector<16x32xf32>
    %234 = vector.broadcast %213 : vector<1x32xf32> to vector<16x32xf32>
    %235 = arith.addf %233, %234 : vector<16x32xf32>
    %c0_125 = arith.constant 0 : index
    %c0_126 = arith.constant 0 : index
    %c0_127 = arith.constant 0 : index
    %236 = vector.load %arg5[%c0_125, %c0_126, %c0_127] : memref<2x128x64xf32, #tpu.memory_space<vmem>>, vector<1x32x64xf32>
    %237 = vector.shape_cast %236 : vector<1x32x64xf32> to vector<32x64xf32>
    %c0_128 = arith.constant 0 : index
    %c32 = arith.constant 32 : index
    %c0_129 = arith.constant 0 : index
    %238 = vector.load %arg5[%c0_128, %c32, %c0_129] : memref<2x128x64xf32, #tpu.memory_space<vmem>>, vector<1x64x32xf32>
    %239 = vector.shape_cast %238 : vector<1x64x32xf32> to vector<64x32xf32>
    %cst_130 = arith.constant dense<0.000000e+00> : vector<16x64xf32>
    %240 = tpu.matmul %235, %237, %cst_130 {dimension_numbers = #tpu.dot_dimension_numbers<[1], [0], [0], [1], [0, 0, 1, 1], [], []>} : vector<16x32xf32>, vector<32x64xf32>, vector<16x64xf32> -> vector<16x64xf32>
    %c0_131 = arith.constant 0 : index
    %c13 = arith.constant 13 : index
    %c0_132 = arith.constant 0 : index
    %241 = vector.load %arg4[%c0_131, %c13, %c0_132] : memref<2x24x128xf32, #tpu.memory_space<vmem>>, vector<1x1x64xf32>
    %242 = vector.shape_cast %241 : vector<1x1x64xf32> to vector<1x64xf32>
    %243 = vector.broadcast %242 : vector<1x64xf32> to vector<16x64xf32>
    %244 = arith.addf %240, %243 : vector<16x64xf32>
    %cst_133 = arith.constant 0.000000e+00 : f32
    %245 = vector.broadcast %cst_133 : f32 to vector<16x64xf32>
    %246 = arith.maximumf %244, %245 : vector<16x64xf32>
    %cst_134 = arith.constant dense<0.000000e+00> : vector<16x32xf32>
    %247 = tpu.matmul %246, %239, %cst_134 {dimension_numbers = #tpu.dot_dimension_numbers<[1], [0], [0], [1], [0, 0, 1, 1], [], []>} : vector<16x64xf32>, vector<64x32xf32>, vector<16x32xf32> -> vector<16x32xf32>
    %c0_135 = arith.constant 0 : index
    %c14 = arith.constant 14 : index
    %c0_136 = arith.constant 0 : index
    %248 = vector.load %arg4[%c0_135, %c14, %c0_136] : memref<2x24x128xf32, #tpu.memory_space<vmem>>, vector<1x1x32xf32>
    %249 = vector.shape_cast %248 : vector<1x1x32xf32> to vector<1x32xf32>
    %250 = vector.broadcast %249 : vector<1x32xf32> to vector<16x32xf32>
    %251 = arith.addf %247, %250 : vector<16x32xf32>
    %252 = arith.addf %235, %251 : vector<16x32xf32>
    %c0_137 = arith.constant 0 : index
    %c17 = arith.constant 17 : index
    %c0_138 = arith.constant 0 : index
    %253 = vector.load %arg4[%c0_137, %c17, %c0_138] : memref<2x24x128xf32, #tpu.memory_space<vmem>>, vector<1x1x32xf32>
    %254 = vector.shape_cast %253 : vector<1x1x32xf32> to vector<1x32xf32>
    %c0_139 = arith.constant 0 : index
    %c18 = arith.constant 18 : index
    %c0_140 = arith.constant 0 : index
    %255 = vector.load %arg4[%c0_139, %c18, %c0_140] : memref<2x24x128xf32, #tpu.memory_space<vmem>>, vector<1x1x32xf32>
    %256 = vector.shape_cast %255 : vector<1x1x32xf32> to vector<1x32xf32>
    %cst_141 = arith.constant dense<0.000000e+00> : vector<16xf32>
    %257 = vector.multi_reduction <add>, %252, %cst_141 [1] : vector<16x32xf32> to vector<16xf32>
    %258 = vector.shape_cast %257 : vector<16xf32> to vector<16x1xf32>
    %cst_142 = arith.constant 3.200000e+01 : f32
    %259 = vector.broadcast %cst_142 : f32 to vector<16x1xf32>
    %260 = arith.divf %258, %259 : vector<16x1xf32>
    %261 = vector.broadcast %260 : vector<16x1xf32> to vector<16x32xf32>
    %262 = arith.subf %252, %261 : vector<16x32xf32>
    %263 = arith.mulf %262, %262 : vector<16x32xf32>
    %cst_143 = arith.constant dense<0.000000e+00> : vector<16xf32>
    %264 = vector.multi_reduction <add>, %263, %cst_143 [1] : vector<16x32xf32> to vector<16xf32>
    %265 = vector.shape_cast %264 : vector<16xf32> to vector<16x1xf32>
    %cst_144 = arith.constant 3.200000e+01 : f32
    %266 = vector.broadcast %cst_144 : f32 to vector<16x1xf32>
    %267 = arith.divf %265, %266 : vector<16x1xf32>
    %268 = vector.broadcast %260 : vector<16x1xf32> to vector<16x32xf32>
    %269 = arith.subf %252, %268 : vector<16x32xf32>
    %cst_145 = arith.constant 9.99999974E-6 : f32
    %270 = vector.broadcast %cst_145 : f32 to vector<16x1xf32>
    %271 = arith.addf %267, %270 : vector<16x1xf32>
    %272 = math.rsqrt %271 : vector<16x1xf32>
    %273 = vector.broadcast %272 : vector<16x1xf32> to vector<16x32xf32>
    %274 = arith.mulf %269, %273 : vector<16x32xf32>
    %275 = vector.broadcast %254 : vector<1x32xf32> to vector<16x32xf32>
    %276 = arith.mulf %274, %275 : vector<16x32xf32>
    %277 = vector.broadcast %256 : vector<1x32xf32> to vector<16x32xf32>
    %278 = arith.addf %276, %277 : vector<16x32xf32>
    %c12_146 = arith.constant 12 : index
    %c0_147 = arith.constant 0 : index
    %c0_148 = arith.constant 0 : index
    %279 = vector.load %arg3[%c12_146, %c0_147, %c0_148] : memref<24x32x8xf32, #tpu.memory_space<vmem>>, vector<1x32x8xf32>
    %280 = vector.shape_cast %279 : vector<1x32x8xf32> to vector<32x8xf32>
    %cst_149 = arith.constant dense<0.000000e+00> : vector<16x8xf32>
    %281 = tpu.matmul %278, %280, %cst_149 {dimension_numbers = #tpu.dot_dimension_numbers<[1], [0], [0], [1], [0, 0, 1, 1], [], []>} : vector<16x32xf32>, vector<32x8xf32>, vector<16x8xf32> -> vector<16x8xf32>
    %c16_150 = arith.constant 16 : index
    %c0_151 = arith.constant 0 : index
    %c0_152 = arith.constant 0 : index
    %282 = vector.load %arg3[%c16_150, %c0_151, %c0_152] : memref<24x32x8xf32, #tpu.memory_space<vmem>>, vector<1x32x8xf32>
    %283 = vector.shape_cast %282 : vector<1x32x8xf32> to vector<32x8xf32>
    %cst_153 = arith.constant dense<0.000000e+00> : vector<16x8xf32>
    %284 = tpu.matmul %278, %283, %cst_153 {dimension_numbers = #tpu.dot_dimension_numbers<[1], [0], [0], [1], [0, 0, 1, 1], [], []>} : vector<16x32xf32>, vector<32x8xf32>, vector<16x8xf32> -> vector<16x8xf32>
    %c20 = arith.constant 20 : index
    %c0_154 = arith.constant 0 : index
    %c0_155 = arith.constant 0 : index
    %285 = vector.load %arg3[%c20, %c0_154, %c0_155] : memref<24x32x8xf32, #tpu.memory_space<vmem>>, vector<1x32x8xf32>
    %286 = vector.shape_cast %285 : vector<1x32x8xf32> to vector<32x8xf32>
    %cst_156 = arith.constant dense<0.000000e+00> : vector<16x8xf32>
    %287 = tpu.matmul %278, %286, %cst_156 {dimension_numbers = #tpu.dot_dimension_numbers<[1], [0], [0], [1], [0, 0, 1, 1], [], []>} : vector<16x32xf32>, vector<32x8xf32>, vector<16x8xf32> -> vector<16x8xf32>
    %c1_157 = arith.constant 1 : index
    %c0_158 = arith.constant 0 : index
    %c0_159 = arith.constant 0 : index
    %288 = vector.load %arg4[%c1_157, %c0_158, %c0_159] : memref<2x24x128xf32, #tpu.memory_space<vmem>>, vector<1x1x8xf32>
    %289 = vector.shape_cast %288 : vector<1x1x8xf32> to vector<1x8xf32>
    %290 = vector.broadcast %289 : vector<1x8xf32> to vector<16x8xf32>
    %291 = arith.addf %281, %290 : vector<16x8xf32>
    %292 = vector.shape_cast %291 : vector<16x8xf32> to vector<2x8x8xf32>
    %c1_160 = arith.constant 1 : index
    %c4_161 = arith.constant 4 : index
    %c0_162 = arith.constant 0 : index
    %293 = vector.load %arg4[%c1_160, %c4_161, %c0_162] : memref<2x24x128xf32, #tpu.memory_space<vmem>>, vector<1x1x8xf32>
    %294 = vector.shape_cast %293 : vector<1x1x8xf32> to vector<1x8xf32>
    %295 = vector.broadcast %294 : vector<1x8xf32> to vector<16x8xf32>
    %296 = arith.addf %284, %295 : vector<16x8xf32>
    %297 = vector.shape_cast %296 : vector<16x8xf32> to vector<2x8x8xf32>
    %c1_163 = arith.constant 1 : index
    %c8_164 = arith.constant 8 : index
    %c0_165 = arith.constant 0 : index
    %298 = vector.load %arg4[%c1_163, %c8_164, %c0_165] : memref<2x24x128xf32, #tpu.memory_space<vmem>>, vector<1x1x8xf32>
    %299 = vector.shape_cast %298 : vector<1x1x8xf32> to vector<1x8xf32>
    %300 = vector.broadcast %299 : vector<1x8xf32> to vector<16x8xf32>
    %301 = arith.addf %287, %300 : vector<16x8xf32>
    %302 = vector.shape_cast %301 : vector<16x8xf32> to vector<2x8x8xf32>
    "tpu.trace_start"() <{level = 10 : i32, message = "bqd,bkd->bqk"}> : () -> ()
    %cst_166 = arith.constant dense<0.000000e+00> : vector<2x8x8xf32>
    %303 = tpu.matmul %292, %297, %cst_166 {dimension_numbers = #tpu.dot_dimension_numbers<[2], [2], [1], [1], [0, 0, 0, 1, 1, 1], [0], [0]>} : vector<2x8x8xf32>, vector<2x8x8xf32>, vector<2x8x8xf32> -> vector<2x8x8xf32>
    "tpu.trace_stop"() : () -> ()
    %cst_167 = arith.constant 0.353553385 : f32
    %304 = vector.broadcast %cst_167 : f32 to vector<2x8x8xf32>
    %305 = arith.mulf %303, %304 : vector<2x8x8xf32>
    %cst_168 = arith.constant -1.000000e+30 : f32
    %306 = vector.shape_cast %17 : vector<1x8x8xi1> to vector<1x8x8xi1>
    %307 = vector.broadcast %306 : vector<1x8x8xi1> to vector<2x8x8xi1>
    %308 = vector.broadcast %cst_168 : f32 to vector<2x8x8xf32>
    %309 = arith.select %307, %305, %308 : vector<2x8x8xi1>, vector<2x8x8xf32>
    %cst_169 = arith.constant dense<0xFF800000> : vector<2x8xf32>
    %310 = vector.multi_reduction <maximumf>, %309, %cst_169 [2] : vector<2x8x8xf32> to vector<2x8xf32>
    %311 = vector.shape_cast %310 : vector<2x8xf32> to vector<2x8x1xf32>
    %312 = vector.broadcast %311 : vector<2x8x1xf32> to vector<2x8x8xf32>
    %313 = arith.subf %309, %312 : vector<2x8x8xf32>
    %314 = math.exp %313 : vector<2x8x8xf32>
    %cst_170 = arith.constant dense<0.000000e+00> : vector<2x8xf32>
    %315 = vector.multi_reduction <add>, %314, %cst_170 [2] : vector<2x8x8xf32> to vector<2x8xf32>
    %316 = vector.shape_cast %315 : vector<2x8xf32> to vector<2x8x1xf32>
    %317 = tpu.reciprocal %316 : vector<2x8x1xf32> -> vector<2x8x1xf32>
    %318 = vector.broadcast %317 : vector<2x8x1xf32> to vector<2x8x8xf32>
    %319 = arith.mulf %314, %318 : vector<2x8x8xf32>
    "tpu.trace_start"() <{level = 10 : i32, message = "bqk,bkd->bqd"}> : () -> ()
    %cst_171 = arith.constant dense<0.000000e+00> : vector<2x8x8xf32>
    %320 = tpu.matmul %319, %302, %cst_171 {dimension_numbers = #tpu.dot_dimension_numbers<[2], [1], [1], [2], [0, 0, 0, 1, 1, 2], [0], [0]>} : vector<2x8x8xf32>, vector<2x8x8xf32>, vector<2x8x8xf32> -> vector<2x8x8xf32>
    "tpu.trace_stop"() : () -> ()
    %c1_172 = arith.constant 1 : index
    %c96_173 = arith.constant 96 : index
    %c0_174 = arith.constant 0 : index
    %321 = vector.load %arg5[%c1_172, %c96_173, %c0_174] : memref<2x128x64xf32, #tpu.memory_space<vmem>>, vector<1x8x32xf32>
    %322 = vector.shape_cast %321 : vector<1x8x32xf32> to vector<8x32xf32>
    %323 = vector.shape_cast %320 : vector<2x8x8xf32> to vector<16x8xf32>
    %cst_175 = arith.constant dense<0.000000e+00> : vector<16x32xf32>
    %324 = tpu.matmul %323, %322, %cst_175 {dimension_numbers = #tpu.dot_dimension_numbers<[1], [0], [0], [1], [0, 0, 1, 1], [], []>} : vector<16x8xf32>, vector<8x32xf32>, vector<16x32xf32> -> vector<16x32xf32>
    %c13_176 = arith.constant 13 : index
    %c0_177 = arith.constant 0 : index
    %c0_178 = arith.constant 0 : index
    %325 = vector.load %arg3[%c13_176, %c0_177, %c0_178] : memref<24x32x8xf32, #tpu.memory_space<vmem>>, vector<1x32x8xf32>
    %326 = vector.shape_cast %325 : vector<1x32x8xf32> to vector<32x8xf32>
    %cst_179 = arith.constant dense<0.000000e+00> : vector<16x8xf32>
    %327 = tpu.matmul %278, %326, %cst_179 {dimension_numbers = #tpu.dot_dimension_numbers<[1], [0], [0], [1], [0, 0, 1, 1], [], []>} : vector<16x32xf32>, vector<32x8xf32>, vector<16x8xf32> -> vector<16x8xf32>
    %c17_180 = arith.constant 17 : index
    %c0_181 = arith.constant 0 : index
    %c0_182 = arith.constant 0 : index
    %328 = vector.load %arg3[%c17_180, %c0_181, %c0_182] : memref<24x32x8xf32, #tpu.memory_space<vmem>>, vector<1x32x8xf32>
    %329 = vector.shape_cast %328 : vector<1x32x8xf32> to vector<32x8xf32>
    %cst_183 = arith.constant dense<0.000000e+00> : vector<16x8xf32>
    %330 = tpu.matmul %278, %329, %cst_183 {dimension_numbers = #tpu.dot_dimension_numbers<[1], [0], [0], [1], [0, 0, 1, 1], [], []>} : vector<16x32xf32>, vector<32x8xf32>, vector<16x8xf32> -> vector<16x8xf32>
    %c21 = arith.constant 21 : index
    %c0_184 = arith.constant 0 : index
    %c0_185 = arith.constant 0 : index
    %331 = vector.load %arg3[%c21, %c0_184, %c0_185] : memref<24x32x8xf32, #tpu.memory_space<vmem>>, vector<1x32x8xf32>
    %332 = vector.shape_cast %331 : vector<1x32x8xf32> to vector<32x8xf32>
    %cst_186 = arith.constant dense<0.000000e+00> : vector<16x8xf32>
    %333 = tpu.matmul %278, %332, %cst_186 {dimension_numbers = #tpu.dot_dimension_numbers<[1], [0], [0], [1], [0, 0, 1, 1], [], []>} : vector<16x32xf32>, vector<32x8xf32>, vector<16x8xf32> -> vector<16x8xf32>
    %c1_187 = arith.constant 1 : index
    %c1_188 = arith.constant 1 : index
    %c0_189 = arith.constant 0 : index
    %334 = vector.load %arg4[%c1_187, %c1_188, %c0_189] : memref<2x24x128xf32, #tpu.memory_space<vmem>>, vector<1x1x8xf32>
    %335 = vector.shape_cast %334 : vector<1x1x8xf32> to vector<1x8xf32>
    %336 = vector.broadcast %335 : vector<1x8xf32> to vector<16x8xf32>
    %337 = arith.addf %327, %336 : vector<16x8xf32>
    %338 = vector.shape_cast %337 : vector<16x8xf32> to vector<2x8x8xf32>
    %c1_190 = arith.constant 1 : index
    %c5_191 = arith.constant 5 : index
    %c0_192 = arith.constant 0 : index
    %339 = vector.load %arg4[%c1_190, %c5_191, %c0_192] : memref<2x24x128xf32, #tpu.memory_space<vmem>>, vector<1x1x8xf32>
    %340 = vector.shape_cast %339 : vector<1x1x8xf32> to vector<1x8xf32>
    %341 = vector.broadcast %340 : vector<1x8xf32> to vector<16x8xf32>
    %342 = arith.addf %330, %341 : vector<16x8xf32>
    %343 = vector.shape_cast %342 : vector<16x8xf32> to vector<2x8x8xf32>
    %c1_193 = arith.constant 1 : index
    %c9_194 = arith.constant 9 : index
    %c0_195 = arith.constant 0 : index
    %344 = vector.load %arg4[%c1_193, %c9_194, %c0_195] : memref<2x24x128xf32, #tpu.memory_space<vmem>>, vector<1x1x8xf32>
    %345 = vector.shape_cast %344 : vector<1x1x8xf32> to vector<1x8xf32>
    %346 = vector.broadcast %345 : vector<1x8xf32> to vector<16x8xf32>
    %347 = arith.addf %333, %346 : vector<16x8xf32>
    %348 = vector.shape_cast %347 : vector<16x8xf32> to vector<2x8x8xf32>
    "tpu.trace_start"() <{level = 10 : i32, message = "bqd,bkd->bqk"}> : () -> ()
    %cst_196 = arith.constant dense<0.000000e+00> : vector<2x8x8xf32>
    %349 = tpu.matmul %338, %343, %cst_196 {dimension_numbers = #tpu.dot_dimension_numbers<[2], [2], [1], [1], [0, 0, 0, 1, 1, 1], [0], [0]>} : vector<2x8x8xf32>, vector<2x8x8xf32>, vector<2x8x8xf32> -> vector<2x8x8xf32>
    "tpu.trace_stop"() : () -> ()
    %cst_197 = arith.constant 0.353553385 : f32
    %350 = vector.broadcast %cst_197 : f32 to vector<2x8x8xf32>
    %351 = arith.mulf %349, %350 : vector<2x8x8xf32>
    %cst_198 = arith.constant -1.000000e+30 : f32
    %352 = vector.shape_cast %17 : vector<1x8x8xi1> to vector<1x8x8xi1>
    %353 = vector.broadcast %352 : vector<1x8x8xi1> to vector<2x8x8xi1>
    %354 = vector.broadcast %cst_198 : f32 to vector<2x8x8xf32>
    %355 = arith.select %353, %351, %354 : vector<2x8x8xi1>, vector<2x8x8xf32>
    %cst_199 = arith.constant dense<0xFF800000> : vector<2x8xf32>
    %356 = vector.multi_reduction <maximumf>, %355, %cst_199 [2] : vector<2x8x8xf32> to vector<2x8xf32>
    %357 = vector.shape_cast %356 : vector<2x8xf32> to vector<2x8x1xf32>
    %358 = vector.broadcast %357 : vector<2x8x1xf32> to vector<2x8x8xf32>
    %359 = arith.subf %355, %358 : vector<2x8x8xf32>
    %360 = math.exp %359 : vector<2x8x8xf32>
    %cst_200 = arith.constant dense<0.000000e+00> : vector<2x8xf32>
    %361 = vector.multi_reduction <add>, %360, %cst_200 [2] : vector<2x8x8xf32> to vector<2x8xf32>
    %362 = vector.shape_cast %361 : vector<2x8xf32> to vector<2x8x1xf32>
    %363 = tpu.reciprocal %362 : vector<2x8x1xf32> -> vector<2x8x1xf32>
    %364 = vector.broadcast %363 : vector<2x8x1xf32> to vector<2x8x8xf32>
    %365 = arith.mulf %360, %364 : vector<2x8x8xf32>
    "tpu.trace_start"() <{level = 10 : i32, message = "bqk,bkd->bqd"}> : () -> ()
    %cst_201 = arith.constant dense<0.000000e+00> : vector<2x8x8xf32>
    %366 = tpu.matmul %365, %348, %cst_201 {dimension_numbers = #tpu.dot_dimension_numbers<[2], [1], [1], [2], [0, 0, 0, 1, 1, 2], [0], [0]>} : vector<2x8x8xf32>, vector<2x8x8xf32>, vector<2x8x8xf32> -> vector<2x8x8xf32>
    "tpu.trace_stop"() : () -> ()
    %c1_202 = arith.constant 1 : index
    %c104_203 = arith.constant 104 : index
    %c0_204 = arith.constant 0 : index
    %367 = vector.load %arg5[%c1_202, %c104_203, %c0_204] : memref<2x128x64xf32, #tpu.memory_space<vmem>>, vector<1x8x32xf32>
    %368 = vector.shape_cast %367 : vector<1x8x32xf32> to vector<8x32xf32>
    %369 = vector.shape_cast %366 : vector<2x8x8xf32> to vector<16x8xf32>
    %cst_205 = arith.constant dense<0.000000e+00> : vector<16x32xf32>
    %370 = tpu.matmul %369, %368, %cst_205 {dimension_numbers = #tpu.dot_dimension_numbers<[1], [0], [0], [1], [0, 0, 1, 1], [], []>} : vector<16x8xf32>, vector<8x32xf32>, vector<16x32xf32> -> vector<16x32xf32>
    %371 = arith.addf %324, %370 : vector<16x32xf32>
    %c14_206 = arith.constant 14 : index
    %c0_207 = arith.constant 0 : index
    %c0_208 = arith.constant 0 : index
    %372 = vector.load %arg3[%c14_206, %c0_207, %c0_208] : memref<24x32x8xf32, #tpu.memory_space<vmem>>, vector<1x32x8xf32>
    %373 = vector.shape_cast %372 : vector<1x32x8xf32> to vector<32x8xf32>
    %cst_209 = arith.constant dense<0.000000e+00> : vector<16x8xf32>
    %374 = tpu.matmul %278, %373, %cst_209 {dimension_numbers = #tpu.dot_dimension_numbers<[1], [0], [0], [1], [0, 0, 1, 1], [], []>} : vector<16x32xf32>, vector<32x8xf32>, vector<16x8xf32> -> vector<16x8xf32>
    %c18_210 = arith.constant 18 : index
    %c0_211 = arith.constant 0 : index
    %c0_212 = arith.constant 0 : index
    %375 = vector.load %arg3[%c18_210, %c0_211, %c0_212] : memref<24x32x8xf32, #tpu.memory_space<vmem>>, vector<1x32x8xf32>
    %376 = vector.shape_cast %375 : vector<1x32x8xf32> to vector<32x8xf32>
    %cst_213 = arith.constant dense<0.000000e+00> : vector<16x8xf32>
    %377 = tpu.matmul %278, %376, %cst_213 {dimension_numbers = #tpu.dot_dimension_numbers<[1], [0], [0], [1], [0, 0, 1, 1], [], []>} : vector<16x32xf32>, vector<32x8xf32>, vector<16x8xf32> -> vector<16x8xf32>
    %c22 = arith.constant 22 : index
    %c0_214 = arith.constant 0 : index
    %c0_215 = arith.constant 0 : index
    %378 = vector.load %arg3[%c22, %c0_214, %c0_215] : memref<24x32x8xf32, #tpu.memory_space<vmem>>, vector<1x32x8xf32>
    %379 = vector.shape_cast %378 : vector<1x32x8xf32> to vector<32x8xf32>
    %cst_216 = arith.constant dense<0.000000e+00> : vector<16x8xf32>
    %380 = tpu.matmul %278, %379, %cst_216 {dimension_numbers = #tpu.dot_dimension_numbers<[1], [0], [0], [1], [0, 0, 1, 1], [], []>} : vector<16x32xf32>, vector<32x8xf32>, vector<16x8xf32> -> vector<16x8xf32>
    %c1_217 = arith.constant 1 : index
    %c2_218 = arith.constant 2 : index
    %c0_219 = arith.constant 0 : index
    %381 = vector.load %arg4[%c1_217, %c2_218, %c0_219] : memref<2x24x128xf32, #tpu.memory_space<vmem>>, vector<1x1x8xf32>
    %382 = vector.shape_cast %381 : vector<1x1x8xf32> to vector<1x8xf32>
    %383 = vector.broadcast %382 : vector<1x8xf32> to vector<16x8xf32>
    %384 = arith.addf %374, %383 : vector<16x8xf32>
    %385 = vector.shape_cast %384 : vector<16x8xf32> to vector<2x8x8xf32>
    %c1_220 = arith.constant 1 : index
    %c6_221 = arith.constant 6 : index
    %c0_222 = arith.constant 0 : index
    %386 = vector.load %arg4[%c1_220, %c6_221, %c0_222] : memref<2x24x128xf32, #tpu.memory_space<vmem>>, vector<1x1x8xf32>
    %387 = vector.shape_cast %386 : vector<1x1x8xf32> to vector<1x8xf32>
    %388 = vector.broadcast %387 : vector<1x8xf32> to vector<16x8xf32>
    %389 = arith.addf %377, %388 : vector<16x8xf32>
    %390 = vector.shape_cast %389 : vector<16x8xf32> to vector<2x8x8xf32>
    %c1_223 = arith.constant 1 : index
    %c10_224 = arith.constant 10 : index
    %c0_225 = arith.constant 0 : index
    %391 = vector.load %arg4[%c1_223, %c10_224, %c0_225] : memref<2x24x128xf32, #tpu.memory_space<vmem>>, vector<1x1x8xf32>
    %392 = vector.shape_cast %391 : vector<1x1x8xf32> to vector<1x8xf32>
    %393 = vector.broadcast %392 : vector<1x8xf32> to vector<16x8xf32>
    %394 = arith.addf %380, %393 : vector<16x8xf32>
    %395 = vector.shape_cast %394 : vector<16x8xf32> to vector<2x8x8xf32>
    "tpu.trace_start"() <{level = 10 : i32, message = "bqd,bkd->bqk"}> : () -> ()
    %cst_226 = arith.constant dense<0.000000e+00> : vector<2x8x8xf32>
    %396 = tpu.matmul %385, %390, %cst_226 {dimension_numbers = #tpu.dot_dimension_numbers<[2], [2], [1], [1], [0, 0, 0, 1, 1, 1], [0], [0]>} : vector<2x8x8xf32>, vector<2x8x8xf32>, vector<2x8x8xf32> -> vector<2x8x8xf32>
    "tpu.trace_stop"() : () -> ()
    %cst_227 = arith.constant 0.353553385 : f32
    %397 = vector.broadcast %cst_227 : f32 to vector<2x8x8xf32>
    %398 = arith.mulf %396, %397 : vector<2x8x8xf32>
    %cst_228 = arith.constant -1.000000e+30 : f32
    %399 = vector.shape_cast %17 : vector<1x8x8xi1> to vector<1x8x8xi1>
    %400 = vector.broadcast %399 : vector<1x8x8xi1> to vector<2x8x8xi1>
    %401 = vector.broadcast %cst_228 : f32 to vector<2x8x8xf32>
    %402 = arith.select %400, %398, %401 : vector<2x8x8xi1>, vector<2x8x8xf32>
    %cst_229 = arith.constant dense<0xFF800000> : vector<2x8xf32>
    %403 = vector.multi_reduction <maximumf>, %402, %cst_229 [2] : vector<2x8x8xf32> to vector<2x8xf32>
    %404 = vector.shape_cast %403 : vector<2x8xf32> to vector<2x8x1xf32>
    %405 = vector.broadcast %404 : vector<2x8x1xf32> to vector<2x8x8xf32>
    %406 = arith.subf %402, %405 : vector<2x8x8xf32>
    %407 = math.exp %406 : vector<2x8x8xf32>
    %cst_230 = arith.constant dense<0.000000e+00> : vector<2x8xf32>
    %408 = vector.multi_reduction <add>, %407, %cst_230 [2] : vector<2x8x8xf32> to vector<2x8xf32>
    %409 = vector.shape_cast %408 : vector<2x8xf32> to vector<2x8x1xf32>
    %410 = tpu.reciprocal %409 : vector<2x8x1xf32> -> vector<2x8x1xf32>
    %411 = vector.broadcast %410 : vector<2x8x1xf32> to vector<2x8x8xf32>
    %412 = arith.mulf %407, %411 : vector<2x8x8xf32>
    "tpu.trace_start"() <{level = 10 : i32, message = "bqk,bkd->bqd"}> : () -> ()
    %cst_231 = arith.constant dense<0.000000e+00> : vector<2x8x8xf32>
    %413 = tpu.matmul %412, %395, %cst_231 {dimension_numbers = #tpu.dot_dimension_numbers<[2], [1], [1], [2], [0, 0, 0, 1, 1, 2], [0], [0]>} : vector<2x8x8xf32>, vector<2x8x8xf32>, vector<2x8x8xf32> -> vector<2x8x8xf32>
    "tpu.trace_stop"() : () -> ()
    %c1_232 = arith.constant 1 : index
    %c112_233 = arith.constant 112 : index
    %c0_234 = arith.constant 0 : index
    %414 = vector.load %arg5[%c1_232, %c112_233, %c0_234] : memref<2x128x64xf32, #tpu.memory_space<vmem>>, vector<1x8x32xf32>
    %415 = vector.shape_cast %414 : vector<1x8x32xf32> to vector<8x32xf32>
    %416 = vector.shape_cast %413 : vector<2x8x8xf32> to vector<16x8xf32>
    %cst_235 = arith.constant dense<0.000000e+00> : vector<16x32xf32>
    %417 = tpu.matmul %416, %415, %cst_235 {dimension_numbers = #tpu.dot_dimension_numbers<[1], [0], [0], [1], [0, 0, 1, 1], [], []>} : vector<16x8xf32>, vector<8x32xf32>, vector<16x32xf32> -> vector<16x32xf32>
    %418 = arith.addf %371, %417 : vector<16x32xf32>
    %c15_236 = arith.constant 15 : index
    %c0_237 = arith.constant 0 : index
    %c0_238 = arith.constant 0 : index
    %419 = vector.load %arg3[%c15_236, %c0_237, %c0_238] : memref<24x32x8xf32, #tpu.memory_space<vmem>>, vector<1x32x8xf32>
    %420 = vector.shape_cast %419 : vector<1x32x8xf32> to vector<32x8xf32>
    %cst_239 = arith.constant dense<0.000000e+00> : vector<16x8xf32>
    %421 = tpu.matmul %278, %420, %cst_239 {dimension_numbers = #tpu.dot_dimension_numbers<[1], [0], [0], [1], [0, 0, 1, 1], [], []>} : vector<16x32xf32>, vector<32x8xf32>, vector<16x8xf32> -> vector<16x8xf32>
    %c19 = arith.constant 19 : index
    %c0_240 = arith.constant 0 : index
    %c0_241 = arith.constant 0 : index
    %422 = vector.load %arg3[%c19, %c0_240, %c0_241] : memref<24x32x8xf32, #tpu.memory_space<vmem>>, vector<1x32x8xf32>
    %423 = vector.shape_cast %422 : vector<1x32x8xf32> to vector<32x8xf32>
    %cst_242 = arith.constant dense<0.000000e+00> : vector<16x8xf32>
    %424 = tpu.matmul %278, %423, %cst_242 {dimension_numbers = #tpu.dot_dimension_numbers<[1], [0], [0], [1], [0, 0, 1, 1], [], []>} : vector<16x32xf32>, vector<32x8xf32>, vector<16x8xf32> -> vector<16x8xf32>
    %c23 = arith.constant 23 : index
    %c0_243 = arith.constant 0 : index
    %c0_244 = arith.constant 0 : index
    %425 = vector.load %arg3[%c23, %c0_243, %c0_244] : memref<24x32x8xf32, #tpu.memory_space<vmem>>, vector<1x32x8xf32>
    %426 = vector.shape_cast %425 : vector<1x32x8xf32> to vector<32x8xf32>
    %cst_245 = arith.constant dense<0.000000e+00> : vector<16x8xf32>
    %427 = tpu.matmul %278, %426, %cst_245 {dimension_numbers = #tpu.dot_dimension_numbers<[1], [0], [0], [1], [0, 0, 1, 1], [], []>} : vector<16x32xf32>, vector<32x8xf32>, vector<16x8xf32> -> vector<16x8xf32>
    %c1_246 = arith.constant 1 : index
    %c3_247 = arith.constant 3 : index
    %c0_248 = arith.constant 0 : index
    %428 = vector.load %arg4[%c1_246, %c3_247, %c0_248] : memref<2x24x128xf32, #tpu.memory_space<vmem>>, vector<1x1x8xf32>
    %429 = vector.shape_cast %428 : vector<1x1x8xf32> to vector<1x8xf32>
    %430 = vector.broadcast %429 : vector<1x8xf32> to vector<16x8xf32>
    %431 = arith.addf %421, %430 : vector<16x8xf32>
    %432 = vector.shape_cast %431 : vector<16x8xf32> to vector<2x8x8xf32>
    %c1_249 = arith.constant 1 : index
    %c7_250 = arith.constant 7 : index
    %c0_251 = arith.constant 0 : index
    %433 = vector.load %arg4[%c1_249, %c7_250, %c0_251] : memref<2x24x128xf32, #tpu.memory_space<vmem>>, vector<1x1x8xf32>
    %434 = vector.shape_cast %433 : vector<1x1x8xf32> to vector<1x8xf32>
    %435 = vector.broadcast %434 : vector<1x8xf32> to vector<16x8xf32>
    %436 = arith.addf %424, %435 : vector<16x8xf32>
    %437 = vector.shape_cast %436 : vector<16x8xf32> to vector<2x8x8xf32>
    %c1_252 = arith.constant 1 : index
    %c11_253 = arith.constant 11 : index
    %c0_254 = arith.constant 0 : index
    %438 = vector.load %arg4[%c1_252, %c11_253, %c0_254] : memref<2x24x128xf32, #tpu.memory_space<vmem>>, vector<1x1x8xf32>
    %439 = vector.shape_cast %438 : vector<1x1x8xf32> to vector<1x8xf32>
    %440 = vector.broadcast %439 : vector<1x8xf32> to vector<16x8xf32>
    %441 = arith.addf %427, %440 : vector<16x8xf32>
    %442 = vector.shape_cast %441 : vector<16x8xf32> to vector<2x8x8xf32>
    "tpu.trace_start"() <{level = 10 : i32, message = "bqd,bkd->bqk"}> : () -> ()
    %cst_255 = arith.constant dense<0.000000e+00> : vector<2x8x8xf32>
    %443 = tpu.matmul %432, %437, %cst_255 {dimension_numbers = #tpu.dot_dimension_numbers<[2], [2], [1], [1], [0, 0, 0, 1, 1, 1], [0], [0]>} : vector<2x8x8xf32>, vector<2x8x8xf32>, vector<2x8x8xf32> -> vector<2x8x8xf32>
    "tpu.trace_stop"() : () -> ()
    %cst_256 = arith.constant 0.353553385 : f32
    %444 = vector.broadcast %cst_256 : f32 to vector<2x8x8xf32>
    %445 = arith.mulf %443, %444 : vector<2x8x8xf32>
    %cst_257 = arith.constant -1.000000e+30 : f32
    %446 = vector.shape_cast %17 : vector<1x8x8xi1> to vector<1x8x8xi1>
    %447 = vector.broadcast %446 : vector<1x8x8xi1> to vector<2x8x8xi1>
    %448 = vector.broadcast %cst_257 : f32 to vector<2x8x8xf32>
    %449 = arith.select %447, %445, %448 : vector<2x8x8xi1>, vector<2x8x8xf32>
    %cst_258 = arith.constant dense<0xFF800000> : vector<2x8xf32>
    %450 = vector.multi_reduction <maximumf>, %449, %cst_258 [2] : vector<2x8x8xf32> to vector<2x8xf32>
    %451 = vector.shape_cast %450 : vector<2x8xf32> to vector<2x8x1xf32>
    %452 = vector.broadcast %451 : vector<2x8x1xf32> to vector<2x8x8xf32>
    %453 = arith.subf %449, %452 : vector<2x8x8xf32>
    %454 = math.exp %453 : vector<2x8x8xf32>
    %cst_259 = arith.constant dense<0.000000e+00> : vector<2x8xf32>
    %455 = vector.multi_reduction <add>, %454, %cst_259 [2] : vector<2x8x8xf32> to vector<2x8xf32>
    %456 = vector.shape_cast %455 : vector<2x8xf32> to vector<2x8x1xf32>
    %457 = tpu.reciprocal %456 : vector<2x8x1xf32> -> vector<2x8x1xf32>
    %458 = vector.broadcast %457 : vector<2x8x1xf32> to vector<2x8x8xf32>
    %459 = arith.mulf %454, %458 : vector<2x8x8xf32>
    "tpu.trace_start"() <{level = 10 : i32, message = "bqk,bkd->bqd"}> : () -> ()
    %cst_260 = arith.constant dense<0.000000e+00> : vector<2x8x8xf32>
    %460 = tpu.matmul %459, %442, %cst_260 {dimension_numbers = #tpu.dot_dimension_numbers<[2], [1], [1], [2], [0, 0, 0, 1, 1, 2], [0], [0]>} : vector<2x8x8xf32>, vector<2x8x8xf32>, vector<2x8x8xf32> -> vector<2x8x8xf32>
    "tpu.trace_stop"() : () -> ()
    %c1_261 = arith.constant 1 : index
    %c120_262 = arith.constant 120 : index
    %c0_263 = arith.constant 0 : index
    %461 = vector.load %arg5[%c1_261, %c120_262, %c0_263] : memref<2x128x64xf32, #tpu.memory_space<vmem>>, vector<1x8x32xf32>
    %462 = vector.shape_cast %461 : vector<1x8x32xf32> to vector<8x32xf32>
    %463 = vector.shape_cast %460 : vector<2x8x8xf32> to vector<16x8xf32>
    %cst_264 = arith.constant dense<0.000000e+00> : vector<16x32xf32>
    %464 = tpu.matmul %463, %462, %cst_264 {dimension_numbers = #tpu.dot_dimension_numbers<[1], [0], [0], [1], [0, 0, 1, 1], [], []>} : vector<16x8xf32>, vector<8x32xf32>, vector<16x32xf32> -> vector<16x32xf32>
    %465 = arith.addf %418, %464 : vector<16x32xf32>
    %c1_265 = arith.constant 1 : index
    %c12_266 = arith.constant 12 : index
    %c0_267 = arith.constant 0 : index
    %466 = vector.load %arg4[%c1_265, %c12_266, %c0_267] : memref<2x24x128xf32, #tpu.memory_space<vmem>>, vector<1x1x32xf32>
    %467 = vector.shape_cast %466 : vector<1x1x32xf32> to vector<1x32xf32>
    %468 = vector.broadcast %467 : vector<1x32xf32> to vector<16x32xf32>
    %469 = arith.addf %465, %468 : vector<16x32xf32>
    %470 = arith.addf %278, %469 : vector<16x32xf32>
    %c1_268 = arith.constant 1 : index
    %c15_269 = arith.constant 15 : index
    %c0_270 = arith.constant 0 : index
    %471 = vector.load %arg4[%c1_268, %c15_269, %c0_270] : memref<2x24x128xf32, #tpu.memory_space<vmem>>, vector<1x1x32xf32>
    %472 = vector.shape_cast %471 : vector<1x1x32xf32> to vector<1x32xf32>
    %c1_271 = arith.constant 1 : index
    %c16_272 = arith.constant 16 : index
    %c0_273 = arith.constant 0 : index
    %473 = vector.load %arg4[%c1_271, %c16_272, %c0_273] : memref<2x24x128xf32, #tpu.memory_space<vmem>>, vector<1x1x32xf32>
    %474 = vector.shape_cast %473 : vector<1x1x32xf32> to vector<1x32xf32>
    %cst_274 = arith.constant dense<0.000000e+00> : vector<16xf32>
    %475 = vector.multi_reduction <add>, %470, %cst_274 [1] : vector<16x32xf32> to vector<16xf32>
    %476 = vector.shape_cast %475 : vector<16xf32> to vector<16x1xf32>
    %cst_275 = arith.constant 3.200000e+01 : f32
    %477 = vector.broadcast %cst_275 : f32 to vector<16x1xf32>
    %478 = arith.divf %476, %477 : vector<16x1xf32>
    %479 = vector.broadcast %478 : vector<16x1xf32> to vector<16x32xf32>
    %480 = arith.subf %470, %479 : vector<16x32xf32>
    %481 = arith.mulf %480, %480 : vector<16x32xf32>
    %cst_276 = arith.constant dense<0.000000e+00> : vector<16xf32>
    %482 = vector.multi_reduction <add>, %481, %cst_276 [1] : vector<16x32xf32> to vector<16xf32>
    %483 = vector.shape_cast %482 : vector<16xf32> to vector<16x1xf32>
    %cst_277 = arith.constant 3.200000e+01 : f32
    %484 = vector.broadcast %cst_277 : f32 to vector<16x1xf32>
    %485 = arith.divf %483, %484 : vector<16x1xf32>
    %486 = vector.broadcast %478 : vector<16x1xf32> to vector<16x32xf32>
    %487 = arith.subf %470, %486 : vector<16x32xf32>
    %cst_278 = arith.constant 9.99999974E-6 : f32
    %488 = vector.broadcast %cst_278 : f32 to vector<16x1xf32>
    %489 = arith.addf %485, %488 : vector<16x1xf32>
    %490 = math.rsqrt %489 : vector<16x1xf32>
    %491 = vector.broadcast %490 : vector<16x1xf32> to vector<16x32xf32>
    %492 = arith.mulf %487, %491 : vector<16x32xf32>
    %493 = vector.broadcast %472 : vector<1x32xf32> to vector<16x32xf32>
    %494 = arith.mulf %492, %493 : vector<16x32xf32>
    %495 = vector.broadcast %474 : vector<1x32xf32> to vector<16x32xf32>
    %496 = arith.addf %494, %495 : vector<16x32xf32>
    %c1_279 = arith.constant 1 : index
    %c0_280 = arith.constant 0 : index
    %c0_281 = arith.constant 0 : index
    %497 = vector.load %arg5[%c1_279, %c0_280, %c0_281] : memref<2x128x64xf32, #tpu.memory_space<vmem>>, vector<1x32x64xf32>
    %498 = vector.shape_cast %497 : vector<1x32x64xf32> to vector<32x64xf32>
    %c1_282 = arith.constant 1 : index
    %c32_283 = arith.constant 32 : index
    %c0_284 = arith.constant 0 : index
    %499 = vector.load %arg5[%c1_282, %c32_283, %c0_284] : memref<2x128x64xf32, #tpu.memory_space<vmem>>, vector<1x64x32xf32>
    %500 = vector.shape_cast %499 : vector<1x64x32xf32> to vector<64x32xf32>
    %cst_285 = arith.constant dense<0.000000e+00> : vector<16x64xf32>
    %501 = tpu.matmul %496, %498, %cst_285 {dimension_numbers = #tpu.dot_dimension_numbers<[1], [0], [0], [1], [0, 0, 1, 1], [], []>} : vector<16x32xf32>, vector<32x64xf32>, vector<16x64xf32> -> vector<16x64xf32>
    %c1_286 = arith.constant 1 : index
    %c13_287 = arith.constant 13 : index
    %c0_288 = arith.constant 0 : index
    %502 = vector.load %arg4[%c1_286, %c13_287, %c0_288] : memref<2x24x128xf32, #tpu.memory_space<vmem>>, vector<1x1x64xf32>
    %503 = vector.shape_cast %502 : vector<1x1x64xf32> to vector<1x64xf32>
    %504 = vector.broadcast %503 : vector<1x64xf32> to vector<16x64xf32>
    %505 = arith.addf %501, %504 : vector<16x64xf32>
    %cst_289 = arith.constant 0.000000e+00 : f32
    %506 = vector.broadcast %cst_289 : f32 to vector<16x64xf32>
    %507 = arith.maximumf %505, %506 : vector<16x64xf32>
    %cst_290 = arith.constant dense<0.000000e+00> : vector<16x32xf32>
    %508 = tpu.matmul %507, %500, %cst_290 {dimension_numbers = #tpu.dot_dimension_numbers<[1], [0], [0], [1], [0, 0, 1, 1], [], []>} : vector<16x64xf32>, vector<64x32xf32>, vector<16x32xf32> -> vector<16x32xf32>
    %c1_291 = arith.constant 1 : index
    %c14_292 = arith.constant 14 : index
    %c0_293 = arith.constant 0 : index
    %509 = vector.load %arg4[%c1_291, %c14_292, %c0_293] : memref<2x24x128xf32, #tpu.memory_space<vmem>>, vector<1x1x32xf32>
    %510 = vector.shape_cast %509 : vector<1x1x32xf32> to vector<1x32xf32>
    %511 = vector.broadcast %510 : vector<1x32xf32> to vector<16x32xf32>
    %512 = arith.addf %508, %511 : vector<16x32xf32>
    %513 = arith.addf %496, %512 : vector<16x32xf32>
    %c1_294 = arith.constant 1 : index
    %c17_295 = arith.constant 17 : index
    %c0_296 = arith.constant 0 : index
    %514 = vector.load %arg4[%c1_294, %c17_295, %c0_296] : memref<2x24x128xf32, #tpu.memory_space<vmem>>, vector<1x1x32xf32>
    %515 = vector.shape_cast %514 : vector<1x1x32xf32> to vector<1x32xf32>
    %c1_297 = arith.constant 1 : index
    %c18_298 = arith.constant 18 : index
    %c0_299 = arith.constant 0 : index
    %516 = vector.load %arg4[%c1_297, %c18_298, %c0_299] : memref<2x24x128xf32, #tpu.memory_space<vmem>>, vector<1x1x32xf32>
    %517 = vector.shape_cast %516 : vector<1x1x32xf32> to vector<1x32xf32>
    %cst_300 = arith.constant dense<0.000000e+00> : vector<16xf32>
    %518 = vector.multi_reduction <add>, %513, %cst_300 [1] : vector<16x32xf32> to vector<16xf32>
    %519 = vector.shape_cast %518 : vector<16xf32> to vector<16x1xf32>
    %cst_301 = arith.constant 3.200000e+01 : f32
    %520 = vector.broadcast %cst_301 : f32 to vector<16x1xf32>
    %521 = arith.divf %519, %520 : vector<16x1xf32>
    %522 = vector.broadcast %521 : vector<16x1xf32> to vector<16x32xf32>
    %523 = arith.subf %513, %522 : vector<16x32xf32>
    %524 = arith.mulf %523, %523 : vector<16x32xf32>
    %cst_302 = arith.constant dense<0.000000e+00> : vector<16xf32>
    %525 = vector.multi_reduction <add>, %524, %cst_302 [1] : vector<16x32xf32> to vector<16xf32>
    %526 = vector.shape_cast %525 : vector<16xf32> to vector<16x1xf32>
    %cst_303 = arith.constant 3.200000e+01 : f32
    %527 = vector.broadcast %cst_303 : f32 to vector<16x1xf32>
    %528 = arith.divf %526, %527 : vector<16x1xf32>
    %529 = vector.broadcast %521 : vector<16x1xf32> to vector<16x32xf32>
    %530 = arith.subf %513, %529 : vector<16x32xf32>
    %cst_304 = arith.constant 9.99999974E-6 : f32
    %531 = vector.broadcast %cst_304 : f32 to vector<16x1xf32>
    %532 = arith.addf %528, %531 : vector<16x1xf32>
    %533 = math.rsqrt %532 : vector<16x1xf32>
    %534 = vector.broadcast %533 : vector<16x1xf32> to vector<16x32xf32>
    %535 = arith.mulf %530, %534 : vector<16x32xf32>
    %536 = vector.broadcast %515 : vector<1x32xf32> to vector<16x32xf32>
    %537 = arith.mulf %535, %536 : vector<16x32xf32>
    %538 = vector.broadcast %517 : vector<1x32xf32> to vector<16x32xf32>
    %539 = arith.addf %537, %538 : vector<16x32xf32>
    %540 = vector.shape_cast %539 : vector<16x32xf32> to vector<2x8x32xf32>
    %c0_305 = arith.constant 0 : index
    %c0_306 = arith.constant 0 : index
    %c0_307 = arith.constant 0 : index
    %541 = vector.load %arg6[%c0_305, %c0_306, %c0_307] : memref<2x8x32xf32, #tpu.memory_space<vmem>>, vector<2x8x32xf32>
    tpu.vector_store %arg6[%c0_305, %c0_306, %c0_307], %540 {strides = array<i32>} : memref<2x8x32xf32, #tpu.memory_space<vmem>>, vector<2x8x32xf32>,
    return
  }
}

</mosaic_0001>

<bundles_post_ra>
// kernel: transformer_encoder.1
= control target key start
LH: loop header
LB: loop body
LE: loop exit
PB: predicated region body
PF: predicated region fallthrough
CT: control target
= control target key end

     0   :  { %vm54_vm0 = vcmask 1041408   ;;  %v3081_v2 = vmov 0   ;;  %s3992_s0 = inlined_call_operand.vmem [shape: s32[16,1], index: 0, kind: input, shape index: {}]   ;;  %s3993_s1 = inlined_call_operand.vmem [shape: f32[50,32], index: 1, kind: input, shape index: {}]   ;;  %s3994_s2 = inlined_call_operand.vmem [shape: f32[8,32], index: 2, kind: input, shape index: {}]   ;;  %s3995_s3 = inlined_call_operand.vmem [shape: f32[24,32,8], index: 3, kind: input, shape index: {}]   ;;  %s3996_s4 = inlined_call_operand.vmem [shape: f32[2,24,128], index: 4, kind: input, shape index: {}]   ;;  %s3997_s5 = inlined_call_operand.vmem [shape: f32[2,128,64], index: 5, kind: input, shape index: {}]   ;;  %s3998_s6 = inlined_call_operand.hbm [shape: f32[2,8,32], index: 6, kind: output, shape index: {}]  }
   0x1   :  { %v24_v0 = vld [vmem:[%s3992_s0] sm:$0xff]  ;;  %v46_v1 = vld [vmem:[%s3993_s1 + $0x30] sm:$0x3]  ;;  %2934 = vset.pattern.permute.xlu0 %v3081_v2  ;;  %v45_v3 = vld [vmem:[%s3993_s1 + $0x28] sm:$0xff] }
   0x2   :  { %2678 = vmatpush.msk.msra.mxu0 %vm54_vm0, %v46_v1  ;;  %29 = vperm.xlu0 %2934, %v24_v0   ;;  %v44_v4 = vld [vmem:[%s3993_s1 + $0x20] sm:$0xff]  ;;  %v43_v5 = vld [vmem:[%s3993_s1 + $0x18] sm:$0xff]  ;;  %v42_v6 = vld [vmem:[%s3993_s1 + $0x10] sm:$0xff] }
   0x3   :  { %v25_v7 = vld [vmem:[%s3992_s0 + $0x8] sm:$0xff] }
   0x4   :  { %68 = vmatpush.msra.mxu0 %v45_v3  ;;  %v41_v8 = vld [vmem:[%s3993_s1 + $0x8] sm:$0xff] }
   0x6   :  { %69 = vmatpush.msra.mxu0 %v44_v4 }
   0x8   :  { %70 = vmatpush.msra.mxu0 %v43_v5 }
   0xa   :  { %71 = vmatpush.msra.mxu0 %v42_v6  ;;  %32 = vperm.xlu0 %2934, %v25_v7  }
   0xc   :  { %72 = vmatpush.msra.mxu0 %v41_v8 }
   0xd   :  { %11 = vsyncpa [#allocation3], 0  ;;  %v40_v9 = vld [vmem:[%s3993_s1] sm:$0xff]  ;;  %v90_v10 = vld [vmem:[%s3995_s3 + $0x18] sm:$0xff]  ;;  %v26_v16 = vlaneseq  ;;  %vm47_vm1 = vcmask 408576   ;;  %v3082_v19 = vmov 0.0  }
   0xe   :  { %73 = vmatpush.msra.mxu0 %v40_v9  ;;  %v2684_v11 = vld [vmem:[%s3995_s3 + $0x98] sm:$0xff]  ;;  %122 = vmatpush.msra.mxu1 %v90_v10  ;;  %v89_v13 = vld [vmem:[%s3995_s3 + $0x10] sm:$0xff]  ;;  %v88_v23 = vld [vmem:[%s3995_s3 + $0x8] sm:$0xff]  ;;  %vm103_vm4 = vcmask 261120   ;;  %vm183_vm5 = vcmask 64512   ;;  %s3084_s21 = smov [#allocation2]  }
   0xf   :  { %v2688_v12 = vld [vmem:[%s3995_s3 + $0x118] sm:$0xff]  ;;  %147 = vmatpush.msra.mxu2 %v2684_v11  ;;  %v2683_v14 = vld [vmem:[%s3995_s3 + $0x90] sm:$0xff]  ;;  %v3168_v17 = vand.u32 127, %v26_v16  ;;  %v2682_v24 = vld [vmem:[%s3995_s3 + $0x88] sm:$0xff]  ;;  %v85_v57 = vshrl.u32 %v26_v16, 7  ;;  %s2662_s1 = sshll.u32 %s3084_s21, 4  ;;  %s2663_s1 = int_to_ptr.vmem [resolvable:$true] %s2662_s1 }
  0x10   :  { %v2687_v15 = vld [vmem:[%s3995_s3 + $0x110] sm:$0xff]  ;;  %172 = vmatpush.msra.mxu3 %v2688_v12  ;;  %123 = vmatpush.msra.mxu1 %v89_v13  ;;  %v2686_v25 = vld [vmem:[%s3995_s3 + $0x108] sm:$0xff]  ;;  %v87_v26 = vld [vmem:[%s3995_s3] sm:$0xff]  ;;  %s2664_s24 = sshll.u32 %s3998_s6, 4  ;;  %s3086_s25 = smov 8   ;;  %s2665_s24 = int_to_ptr.hbm [resolvable:$true] %s2664_s24 }
  0x11   :  { %148 = vmatpush.msra.mxu2 %v2683_v14  ;;  %v2681_v27 = vld [vmem:[%s3995_s3 + $0x80] sm:$0xff]  ;;  %v2937_v35 = vld [vmem:[%s3996_s4 + $0x8] ss:$0 sm:$0xff]  ;;  %v2704_v41 = vld [vmem:[%s3995_s3 + $0x38] sm:$0xff]  ;;  %vm3256_vm6 = vcmp.le.s32.totalorder %v3168_v17, %v85_v57 }
  0x12   :  { %173 = vmatpush.msra.mxu3 %v2687_v15  ;;  %124 = vmatpush.msra.mxu1 %v88_v23  ;;  %v2685_v28 = vld [vmem:[%s3995_s3 + $0x100] sm:$0xff]  ;;  %v2703_v44 = vld [vmem:[%s3995_s3 + $0x30] sm:$0xff]  ;;  %v2702_v45 = vld [vmem:[%s3995_s3 + $0x28] sm:$0xff] }
  0x13   :  { %149 = vmatpush.msra.mxu2 %v2682_v24  ;;  %v81_v29 = vld [vmem:[%s3994_s2] sm:$0xff]  ;;  %v2708_v51 = vld [vmem:[%s3995_s3 + $0xb8] sm:$0xff]  ;;  %v2707_v54 = vld [vmem:[%s3995_s3 + $0xb0] sm:$0xff] }
  0x14   :  { %174 = vmatpush.msra.mxu3 %v2686_v25  ;;  %125 = vmatpush.msra.mxu1 %v87_v26  ;;  %v2936_v34 = vld [vmem:[%s3996_s4 + $0x4] ss:$0 sm:$0xff]  ;;  %v2935_v37 = vld [vmem:[%s3996_s4] ss:$0 sm:$0xff]  ;;  %v2706_v55 = vld [vmem:[%s3995_s3 + $0xa8] sm:$0xff] }
  0x15   :  { %150 = vmatpush.msra.mxu2 %v2681_v27  ;;  %v2701_v47 = vld [vmem:[%s3995_s3 + $0x20] sm:$0xff]  ;;  %v2712_v16 = vld [vmem:[%s3995_s3 + $0x138] sm:$0xff] }
  0x16   :  { %175 = vmatpush.msra.mxu3 %v2685_v28  ;;  %v2705_v56 = vld [vmem:[%s3995_s3 + $0xa0] sm:$0xff] }
  0x17   :  { %v3269_v3 = vld [vmem:[%s3996_s4 + $0x5] ss:$0 sm:$0xff] }
  0x74   :  { %v30_v18 = vpop.permute.xlu0 %29 }
  0x75   :  { %vm34_vm2 = vcmp.eq.s32.totalorder %v3168_v17, %v30_v18  ;;  %v2710_v18 = vld [vmem:[%s3995_s3 + $0x128] sm:$0xff] }
  0x76   :  { %v2676_v20 = vsel %vm34_vm2, 1.0, %v3082_v19 }
  0x77   :  { %2679 = vmatmul.msk.f32.vlgmr.msra.gmra.mxu0 %vm47_vm1, %v2676_v20 }
  0x7c   :  { %v33_v21 = vpop.permute.xlu0 %32 }
  0x7d   :  { %vm35_vm3 = vcmp.eq.s32.totalorder %v3168_v17, %v33_v21  ;;  %v2711_v17 = vld [vmem:[%s3995_s3 + $0x130] sm:$0xff] }
  0x7e   :  { %v2677_v22 = vsel %vm35_vm3, 1.0, %v3082_v19  ;;  %v2709_v19 = vld [vmem:[%s3995_s3 + $0x120] sm:$0xff] }
  0x7f   :  { %2680 = vmatmul.msk.f32.gmra.mxu0 %vm47_vm1, %v2677_v22 }
  0xf4   :  { %v75_v30 = vpop.f32.mrf.mxu0 }
  0xf5   :  { %v3193_v31 = vadd.f32 %v81_v29, %v75_v30 }
  0xf7   :  { %2689 = vmatmul.msk.f32.vlgmr.msra.gmra.mxu1 %vm103_vm4, %v3193_v31  ;;  %2691 = vmatmul.msk.f32.vlgmr.msra.gmra.mxu2 %vm103_vm4, %v3193_v31 }
  0xf8   :  { %2693 = vmatmul.msk.f32.vlgmr.msra.gmra.mxu3 %vm103_vm4, %v3193_v31 }
  0xfc   :  { %v78_v32 = vpop.f32.mrf.mxu0 }
  0xfd   :  { %v3201_v33 = vadd.f32 %v81_v29, %v78_v32 }
  0xff   :  { %2690 = vmatmul.msk.f32.gmra.mxu1 %vm103_vm4, %v3201_v33  ;;  %2692 = vmatmul.msk.f32.gmra.mxu2 %vm103_vm4, %v3201_v33 }
 0x100   :  { %2694 = vmatmul.msk.f32.gmra.mxu3 %vm103_vm4, %v3201_v33 }
 0x174   :  { %v127_v36 = vpop.f32.mrf.mxu1 }
 0x175   :  { %v128_v43 = vadd.f32 %v2935_v37, %v127_v36 }
 0x17a   :  { %v152_v38 = vpop.f32.mrf.mxu2 }
 0x17b   :  { %v153_v39 = vadd.f32 %v2936_v34, %v152_v38  ;;  %v177_v40 = vpop.f32.mrf.mxu3 }
 0x17c   :  { %v178_v42 = vadd.f32 %v2937_v35, %v177_v40  ;;  %v130_v48 = vpop.f32.mrf.mxu1 }
 0x17d   :  { %2695 = vmatpush.xpose.msk.msrb.mxu1 %vm183_vm5, %v153_v39  ;;  %v131_v53 = vadd.f32 %v2935_v37, %v130_v48 }
 0x17e   :  { %308 = vmatpush.msrb.mxu3 %v178_v42 }
 0x180   :  { %2696 = vmatmul.msk.f32.vlgmr.msrb.gmra.mxu1 %vm183_vm5, %v128_v43  ;;  %416 = vmatpush.msra.mxu3 %v2712_v16  ;;  %v2732_v16 = vld [vmem:[%s3995_s3 + $0x58] sm:$0xff] }
 0x181   :  { %366 = vmatpush.msra.mxu1 %v2704_v41 }
 0x182   :  { %v155_v46 = vpop.f32.mrf.mxu2  ;;  %417 = vmatpush.msra.mxu3 %v2711_v17  ;;  %v2731_v17 = vld [vmem:[%s3995_s3 + $0x50] sm:$0xff] }
 0x183   :  { %367 = vmatpush.msra.mxu1 %v2703_v44  ;;  %v156_v49 = vadd.f32 %v2936_v34, %v155_v46  ;;  %v180_v50 = vpop.f32.mrf.mxu3 }
 0x184   :  { %v181_v52 = vadd.f32 %v2937_v35, %v180_v50  ;;  %418 = vmatpush.msra.mxu3 %v2710_v18  ;;  %v2730_v18 = vld [vmem:[%s3995_s3 + $0x48] sm:$0xff] }
 0x185   :  { %368 = vmatpush.msra.mxu1 %v2702_v45  ;;  %2697 = vmatpush.xpose.msk.msrb.mxu2 %vm183_vm5, %v156_v49  ;;  %v2938_v49 = vld [vmem:[%s3996_s4 + $0x1] ss:$0 sm:$0xff] }
 0x186   :  { %331 = vmatpush.msrb.mxu0 %v181_v52  ;;  %419 = vmatpush.msra.mxu3 %v2709_v19  ;;  %v2729_v19 = vld [vmem:[%s3995_s3 + $0x40] sm:$0xff] }
 0x187   :  { %369 = vmatpush.msra.mxu1 %v2701_v47 }
 0x188   :  { %2698 = vmatmul.msk.f32.vlgmr.msrb.gmra.mxu2 %vm183_vm5, %v131_v53  ;;  %2713 = vmatmul.msk.f32.vlgmr.msra.gmra.mxu1 %vm103_vm4, %v3193_v31  ;;  %v336_v53 = vld [vmem:[%s3997_s5 + $0x60] sm:$0xff] }
 0x189   :  { %391 = vmatpush.msra.mxu2 %v2708_v51 }
 0x18b   :  { %392 = vmatpush.msra.mxu2 %v2707_v54 }
 0x18d   :  { %393 = vmatpush.msra.mxu2 %v2706_v55  ;;  %v2940_v55 = vld [vmem:[%s3996_s4 + $0x9] ss:$0 sm:$0xff] }
 0x18f   :  { %394 = vmatpush.msra.mxu2 %v2705_v56 }
 0x190   :  { %2714 = vmatmul.msk.f32.gmra.mxu1 %vm103_vm4, %v3201_v33  ;;  %2715 = vmatmul.msk.f32.vlgmr.msra.gmra.mxu2 %vm103_vm4, %v3193_v31 }
 0x198   :  { %2716 = vmatmul.msk.f32.gmra.mxu2 %vm103_vm4, %v3201_v33 }
 0x1fd   :  { %v207_v59 = vpop.f32.mrf.mxu1 }
 0x1fe   :  { %v236_v60 = vmul.f32 0.35355338, %v207_v59 }
 0x200   :  { %v240_v61 = vsel %vm3256_vm6, %v236_v60, -1e+30 }
 0x201   :  { %v242_v62 = vsel %vm183_vm5, %v240_v61, -inf }
 0x202   :  { %243 = vmax.xlane.f32.xlu2 %v242_v62 }
 0x205   :  { %v371_v48 = vpop.f32.mrf.mxu1 }
 0x206   :  { %v372_v50 = vadd.f32 %v2938_v49, %v371_v48 }
 0x20b   :  { %v233_v63 = vpop.f32.mrf.mxu2 }
 0x20c   :  { %v237_v0 = vmul.f32 0.35355338, %v233_v63 }
 0x20d   :  { %v374_v51 = vpop.f32.mrf.mxu1 }
 0x20e   :  { %v241_v1 = vsel %vm3256_vm6, %v237_v0, -1e+30  ;;  %v375_v52 = vadd.f32 %v2938_v49, %v374_v51  ;;  %v2740_v51 = vld [vmem:[%s3995_s3 + $0x158] sm:$0xff] }
 0x20f   :  { %v245_v2 = vsel %vm183_vm5, %v241_v1, -inf }
 0x210   :  { %246 = vmax.xlane.f32.xlu1 %v245_v2 }
 0x213   :  { %v396_v4 = vpop.f32.mrf.mxu2 }
 0x214   :  { %v397_v5 = vadd.f32 %v3269_v3, %v396_v4 }
 0x216   :  { %2719 = vmatpush.xpose.msk.msra.mxu0 %vm183_vm5, %v397_v5 }
 0x21b   :  { %v399_v43 = vpop.f32.mrf.mxu2 }
 0x21c   :  { %v400_v47 = vadd.f32 %v3269_v3, %v399_v43 }
 0x275   :  { %v244_v6 = vpop.xlane.xlu2 %243 }
 0x276   :  { %v248_v7 = vsub.f32 %v240_v61, %v244_v6 }
 0x278   :  { %v250_v8 = vmul.f32 1.442695, %v248_v7 }
 0x27a   :  { %2973 = vpow2.f32 %v250_v8 }
 0x280   :  { %v2974_v9 = vpop.eup %2973 }
 0x281   :  { %v254_v10 = vsel %vm183_vm5, %v2974_v9, 0.0 }
 0x282   :  { %255 = vadd.xlane.f32.xlu2 %v254_v10 }
 0x283   :  { %v247_v11 = vpop.xlane.xlu1 %246 }
 0x284   :  { %v249_v12 = vsub.f32 %v241_v1, %v247_v11 }
 0x286   :  { %v252_v13 = vmul.f32 1.442695, %v249_v12 }
 0x288   :  { %2975 = vpow2.f32 %v252_v13 }
 0x28e   :  { %v2976_v14 = vpop.eup %2975 }
 0x28f   :  { %v257_v15 = vsel %vm183_vm5, %v2976_v14, 0.0 }
 0x290   :  { %258 = vadd.xlane.f32.xlu1 %v257_v15 }
 0x2f5   :  { %v256_v20 = vpop.xlane.xlu2 %255 }
 0x2f6   :  { %2977 = vrcp.f32 %v256_v20  ;;  %v271_v24 = vand.u32 2147483648, %v256_v20  ;;  %v269_v26 = vand.u32 2147483647, %v256_v20  ;;  %vm265_vm8 = vweird.f32 %v256_v20 }
 0x2f8   :  { %v272_v29 = vor.u32 1.1754944e-38, %v271_v24  ;;  %vm270_vm10 = vcmp.eq.f32.partialorder %v269_v26, 8.507059e+37  ;;  %v2733_v24 = vld [vmem:[%s3995_s3 + $0xc0] sm:$0xff] }
 0x2fc   :  { %v2978_v21 = vpop.eup %2977 }
 0x2fd   :  { %v261_v22 = vmul.f32 %v2978_v21, %v256_v20  ;;  %vm266_vm7 = vweird.f32 %v2978_v21  ;;  %v2736_v20 = vld [vmem:[%s3995_s3 + $0xd8] sm:$0xff] }
 0x2fe   :  { %vm267_vm9 = vmor %vm265_vm8, %vm266_vm7 }
 0x2ff   :  { %v262_v23 = vsub.f32 1.0, %v261_v22  ;;  %v2734_v22 = vld [vmem:[%s3995_s3 + $0xc8] sm:$0xff] }
 0x301   :  { %v263_v25 = vmul.f32 %v2978_v21, %v262_v23 }
 0x303   :  { %v264_v27 = vadd.f32 %v2978_v21, %v263_v25  ;;  %v259_v28 = vpop.xlane.xlu1 %258 }
 0x304   :  { %2979 = vrcp.f32 %v259_v28  ;;  %v285_v38 = vand.u32 2147483648, %v259_v28  ;;  %v283_v40 = vand.u32 2147483647, %v259_v28  ;;  %vm279_vm12 = vweird.f32 %v259_v28 }
 0x305   :  { %v268_v30 = vsel %vm267_vm9, %v2978_v21, %v264_v27  ;;  %v2735_v21 = vld [vmem:[%s3995_s3 + $0xd0] sm:$0xff] }
 0x306   :  { %v273_v32 = vsel %vm270_vm10, %v272_v29, %v268_v30  ;;  %v286_v42 = vor.u32 1.1754944e-38, %v285_v38  ;;  %vm284_vm14 = vcmp.eq.f32.partialorder %v283_v40, 8.507059e+37 }
 0x307   :  { %v288_v34 = vmul.f32 %v2974_v9, %v273_v32 }
 0x309   :  { %2699 = vmatmul.msk.f32.vlgmr.msrb.gmra.mxu3 %vm183_vm5, %v288_v34 }
 0x30a   :  { %v2980_v35 = vpop.eup %2979 }
 0x30b   :  { %v275_v36 = vmul.f32 %v2980_v35, %v259_v28  ;;  %vm280_vm11 = vweird.f32 %v2980_v35 }
 0x30c   :  { %vm281_vm13 = vmor %vm279_vm12, %vm280_vm11 }
 0x30d   :  { %v276_v37 = vsub.f32 1.0, %v275_v36 }
 0x30f   :  { %v277_v39 = vmul.f32 %v2980_v35, %v276_v37 }
 0x311   :  { %v278_v41 = vadd.f32 %v2980_v35, %v277_v39  ;;  %2717 = vmatmul.msk.f32.vlgmr.msra.gmra.mxu3 %vm103_vm4, %v3193_v31 }
 0x313   :  { %v282_v44 = vsel %vm281_vm13, %v2980_v35, %v278_v41 }
 0x314   :  { %v287_v45 = vsel %vm284_vm14, %v286_v42, %v282_v44 }
 0x315   :  { %v289_v46 = vmul.f32 %v2976_v14, %v287_v45 }
 0x317   :  { %2700 = vmatmul.msk.f32.vlgmr.msrb.gmra.mxu0 %vm183_vm5, %v289_v46 }
 0x318   :  { %2721 = vmatpush.xpose.msk.msrb.mxu0 %vm183_vm5, %v400_v47 }
 0x319   :  { %2718 = vmatmul.msk.f32.gmra.mxu3 %vm103_vm4, %v3201_v33 }
 0x31f   :  { %2720 = vmatmul.msk.f32.vlgmr.msra.gmra.mxu0 %vm183_vm5, %v372_v50  ;;  %v577_v50 = vld [vmem:[%s3997_s5 + $0x68] sm:$0xff] }
 0x320   :  { %628 = vmatpush.msra.mxu0 %v336_v53  ;;  %599 = vmatpush.msrb.mxu3 %v577_v50  ;;  %v2738_v53 = vld [vmem:[%s3995_s3 + $0x148] sm:$0xff]  ;;  %v2763_v50 = vld [vmem:[%s3995_s3 + $0x160] sm:$0xff] }
 0x322   :  { %715 = vmatpush.msra.mxu3 %v2740_v51 }
 0x327   :  { %2722 = vmatmul.msk.f32.vlgmr.msrb.gmra.mxu0 %vm183_vm5, %v375_v52  ;;  %v2739_v52 = vld [vmem:[%s3995_s3 + $0x150] sm:$0xff] }
 0x328   :  { %716 = vmatpush.msra.mxu3 %v2739_v52 }
 0x32a   :  { %717 = vmatpush.msra.mxu3 %v2738_v53 }
 0x38c   :  { %v310_v54 = vpop.f32.mrf.mxu3 }
 0x38d   :  { %2727 = vmatmul.msk.f32.vlgmr.msra.gmra.mxu0 %vm183_vm5, %v310_v54  ;;  %v2737_v54 = vld [vmem:[%s3995_s3 + $0x140] sm:$0xff] }
 0x38e   :  { %718 = vmatpush.msra.mxu3 %v2737_v54 }
 0x394   :  { %v333_v56 = vpop.f32.mrf.mxu0  ;;  %v421_v57 = vpop.f32.mrf.mxu3 }
 0x395   :  { %v422_v59 = vadd.f32 %v2940_v55, %v421_v57  ;;  %2728 = vmatmul.msk.f32.gmra.mxu0 %vm183_vm5, %v333_v56  ;;  %v2761_v57 = vld [vmem:[%s3995_s3 + $0xf0] sm:$0xff] }
 0x397   :  { %549 = vmatpush.msrb.mxu1 %v422_v59  ;;  %v2760_v59 = vld [vmem:[%s3995_s3 + $0xe8] sm:$0xff] }
 0x399   :  { %665 = vmatpush.msra.mxu1 %v2732_v16 }
 0x39b   :  { %666 = vmatpush.msra.mxu1 %v2731_v17 }
 0x39c   :  { %v424_v60 = vpop.f32.mrf.mxu3  ;;  %v450_v61 = vpop.f32.mrf.mxu0 }
 0x39d   :  { %v425_v62 = vadd.f32 %v2940_v55, %v424_v60  ;;  %v479_v63 = vmul.f32 0.35355338, %v450_v61  ;;  %667 = vmatpush.msra.mxu1 %v2730_v18  ;;  %v2762_v55 = vld [vmem:[%s3995_s3 + $0xf8] sm:$0xff]  ;;  %v2759_v60 = vld [vmem:[%s3995_s3 + $0xe0] sm:$0xff] }
 0x39f   :  { %572 = vmatpush.msrb.mxu2 %v425_v62  ;;  %v481_v0 = vsel %vm3256_vm6, %v479_v63, -1e+30  ;;  %668 = vmatpush.msra.mxu1 %v2729_v19  ;;  %v2942_v62 = vld [vmem:[%s3996_s4 + $0x6] ss:$0 sm:$0xff] }
 0x3a0   :  { %v483_v1 = vsel %vm183_vm5, %v481_v0, -inf }
 0x3a1   :  { %484 = vmax.xlane.f32.xlu1 %v483_v1  ;;  %690 = vmatpush.msra.mxu2 %v2736_v20 }
 0x3a3   :  { %691 = vmatpush.msra.mxu2 %v2735_v21 }
 0x3a4   :  { %v476_v2 = vpop.f32.mrf.mxu0 }
 0x3a5   :  { %v480_v3 = vmul.f32 0.35355338, %v476_v2  ;;  %692 = vmatpush.msra.mxu2 %v2734_v22 }
 0x3a7   :  { %v482_v4 = vsel %vm3256_vm6, %v480_v3, -1e+30  ;;  %693 = vmatpush.msra.mxu2 %v2733_v24 }
 0x3a8   :  { %v486_v5 = vsel %vm183_vm5, %v482_v4, -inf }
 0x3a9   :  { %487 = vmax.xlane.f32.xlu0 %v486_v5 }
 0x414   :  { %v485_v6 = vpop.xlane.xlu1 %484 }
 0x415   :  { %v489_v7 = vsub.f32 %v481_v0, %v485_v6  ;;  %v2941_v0 = vld [vmem:[%s3996_s4 + $0x2] ss:$0 sm:$0xff] }
 0x417   :  { %v491_v8 = vmul.f32 1.442695, %v489_v7 }
 0x419   :  { %2981 = vpow2.f32 %v491_v8  ;;  %v3397_v8 = vpop.f32.mrf.mxu0 }
 0x41c   :  { %v488_v9 = vpop.xlane.xlu0 %487 }
 0x41d   :  { %v490_v10 = vsub.f32 %v482_v4, %v488_v9 }
 0x41f   :  { %v2982_v11 = vpop.eup %2981  ;;  %v493_v12 = vmul.f32 1.442695, %v490_v10  ;;  %v876_v10 = vld [vmem:[%s3997_s5 + $0x70] sm:$0xff] }
 0x420   :  { %v495_v13 = vsel %vm183_vm5, %v2982_v11, 0.0 }
 0x421   :  { %2983 = vpow2.f32 %v493_v12  ;;  %496 = vadd.xlane.f32.xlu1 %v495_v13 }
 0x427   :  { %v2984_v14 = vpop.eup %2983 }
 0x428   :  { %v498_v15 = vsel %vm183_vm5, %v2984_v14, 0.0 }
 0x429   :  { %499 = vadd.xlane.f32.xlu2 %v498_v15 }
 0x494   :  { %v497_v23 = vpop.xlane.xlu1 %496 }
 0x495   :  { %2985 = vrcp.f32 %v497_v23  ;;  %v512_v29 = vand.u32 2147483648, %v497_v23  ;;  %v510_v32 = vand.u32 2147483647, %v497_v23  ;;  %vm506_vm0 = vweird.f32 %v497_v23 }
 0x497   :  { %v513_v36 = vor.u32 1.1754944e-38, %v512_v29  ;;  %vm511_vm2 = vcmp.eq.f32.partialorder %v510_v32, 8.507059e+37 }
 0x49b   :  { %v2986_v25 = vpop.eup %2985 }
 0x49c   :  { %v502_v26 = vmul.f32 %v2986_v25, %v497_v23  ;;  %v500_v27 = vpop.xlane.xlu2 %499  ;;  %vm507_vm15 = vweird.f32 %v2986_v25 }
 0x49d   :  { %2987 = vrcp.f32 %v500_v27  ;;  %vm508_vm1 = vmor %vm506_vm0, %vm507_vm15  ;;  %v526_v42 = vand.u32 2147483648, %v500_v27  ;;  %v524_v44 = vand.u32 2147483647, %v500_v27  ;;  %vm520_vm7 = vweird.f32 %v500_v27 }
 0x49e   :  { %v503_v28 = vsub.f32 1.0, %v502_v26 }
 0x49f   :  { %v527_v46 = vor.u32 1.1754944e-38, %v526_v42  ;;  %vm525_vm9 = vcmp.eq.f32.partialorder %v524_v44, 8.507059e+37  ;;  %v2758_v42 = vld [vmem:[%s3995_s3 + $0x78] sm:$0xff]  ;;  %v2756_v44 = vld [vmem:[%s3995_s3 + $0x68] sm:$0xff] }
 0x4a0   :  { %v504_v30 = vmul.f32 %v2986_v25, %v503_v28 }
 0x4a2   :  { %v505_v34 = vadd.f32 %v2986_v25, %v504_v30 }
 0x4a3   :  { %v2988_v35 = vpop.eup %2987 }
 0x4a4   :  { %v509_v37 = vsel %vm508_vm1, %v2986_v25, %v505_v34  ;;  %v516_v38 = vmul.f32 %v2988_v35, %v500_v27  ;;  %vm521_vm3 = vweird.f32 %v2988_v35  ;;  %v2944_v27 = vld [vmem:[%s3996_s4 + $0x7] ss:$0 sm:$0xff] }
 0x4a5   :  { %v514_v39 = vsel %vm511_vm2, %v513_v36, %v509_v37  ;;  %vm522_vm8 = vmor %vm520_vm7, %vm521_vm3 }
 0x4a6   :  { %v517_v40 = vsub.f32 1.0, %v516_v38  ;;  %v529_v41 = vmul.f32 %v2982_v11, %v514_v39  ;;  %v633_v11 = vpop.f32.mrf.mxu0 }
 0x4a8   :  { %v518_v43 = vmul.f32 %v2988_v35, %v517_v40  ;;  %2723 = vmatmul.msk.f32.vlgmr.msrb.gmra.mxu1 %vm183_vm5, %v529_v41 }
 0x4aa   :  { %v519_v45 = vadd.f32 %v2988_v35, %v518_v43  ;;  %v2757_v43 = vld [vmem:[%s3995_s3 + $0x70] sm:$0xff] }
 0x4ac   :  { %v523_v47 = vsel %vm522_vm8, %v2988_v35, %v519_v45  ;;  %v2755_v45 = vld [vmem:[%s3995_s3 + $0x60] sm:$0xff] }
 0x4ad   :  { %v528_v48 = vsel %vm525_vm9, %v527_v46, %v523_v47  ;;  %v2766_v46 = vld [vmem:[%s3995_s3 + $0x178] sm:$0xff]  ;;  %v2765_v47 = vld [vmem:[%s3995_s3 + $0x170] sm:$0xff] }
 0x4ae   :  { %v530_v49 = vmul.f32 %v2984_v14, %v528_v48  ;;  %v2943_v14 = vld [vmem:[%s3996_s4 + $0xa] ss:$0 sm:$0xff] }
 0x4af   :  { %v2764_v48 = vld [vmem:[%s3995_s3 + $0x168] sm:$0xff] }
 0x4b0   :  { %2724 = vmatmul.msk.f32.vlgmr.msrb.gmra.mxu2 %vm183_vm5, %v530_v49  ;;  %2741 = vmatmul.msk.f32.vlgmr.msra.gmra.mxu1 %vm103_vm4, %v3193_v31 }
 0x4b8   :  { %2742 = vmatmul.msk.f32.gmra.mxu1 %vm103_vm4, %v3201_v33  ;;  %2743 = vmatmul.msk.f32.vlgmr.msra.gmra.mxu2 %vm103_vm4, %v3193_v31 }
 0x4c0   :  { %2744 = vmatmul.msk.f32.gmra.mxu2 %vm103_vm4, %v3201_v33 }
 0x525   :  { %v551_v56 = vpop.f32.mrf.mxu1 }
 0x526   :  { %2725 = vmatmul.msk.f32.vlgmr.msrb.gmra.mxu3 %vm183_vm5, %v551_v56 }
 0x527   :  { %962 = vmatpush.msrb.mxu3 %v2762_v55 }
 0x529   :  { %963 = vmatpush.msrb.mxu3 %v2761_v57 }
 0x52b   :  { %964 = vmatpush.msrb.mxu3 %v2760_v59 }
 0x52d   :  { %965 = vmatpush.msrb.mxu3 %v2759_v60  ;;  %v670_v63 = vpop.f32.mrf.mxu1 }
 0x52e   :  { %v671_v3 = vadd.f32 %v2941_v0, %v670_v63 }
 0x533   :  { %v574_v61 = vpop.f32.mrf.mxu2 }
 0x534   :  { %2726 = vmatmul.msk.f32.gmra.mxu3 %vm183_vm5, %v574_v61 }
 0x535   :  { %v673_v5 = vpop.f32.mrf.mxu1 }
 0x536   :  { %v674_v7 = vadd.f32 %v2941_v0, %v673_v5 }
 0x53b   :  { %v695_v1 = vpop.f32.mrf.mxu2 }
 0x53c   :  { %v696_v2 = vadd.f32 %v2942_v62, %v695_v1  ;;  %2745 = vmatmul.msk.f32.vlgmr.msra.gmra.mxu3 %vm103_vm4, %v3193_v31 }
 0x53e   :  { %2747 = vmatpush.xpose.msk.msrb.mxu0 %vm183_vm5, %v696_v2 }
 0x541   :  { %2748 = vmatmul.msk.f32.vlgmr.msrb.gmra.mxu0 %vm183_vm5, %v671_v3 }
 0x543   :  { %v698_v4 = vpop.f32.mrf.mxu2 }
 0x544   :  { %v699_v6 = vadd.f32 %v2942_v62, %v698_v4  ;;  %2746 = vmatmul.msk.f32.gmra.mxu3 %vm103_vm4, %v3201_v33 }
 0x546   :  { %2749 = vmatpush.xpose.msk.msrb.mxu1 %vm183_vm5, %v699_v6 }
 0x549   :  { %2750 = vmatmul.msk.f32.vlgmr.msrb.gmra.mxu1 %vm183_vm5, %v674_v7 }
 0x54a   :  { %898 = vmatpush.msra.mxu1 %v876_v10 }
 0x54c   :  { %2769 = vmatmul.msk.f32.vlgmr.msrb.gmra.mxu3 %vm103_vm4, %v3193_v31 }
 0x554   :  { %2770 = vmatmul.msk.f32.gmra.mxu3 %vm103_vm4, %v3201_v33 }
 0x5a9   :  { %v3399_v9 = vpop.f32.mrf.mxu3 }
 0x5b7   :  { %v604_v12 = vpop.f32.mrf.mxu3 }
 0x5b8   :  { %v3404_v13 = vadd.f32 %v633_v11, %v604_v12 }
 0x5be   :  { %v749_v15 = vpop.f32.mrf.mxu0 }
 0x5bf   :  { %v778_v16 = vmul.f32 0.35355338, %v749_v15  ;;  %v720_v17 = vpop.f32.mrf.mxu3 }
 0x5c0   :  { %v721_v18 = vadd.f32 %v2943_v14, %v720_v17 }
 0x5c1   :  { %v780_v19 = vsel %vm3256_vm6, %v778_v16, -1e+30 }
 0x5c2   :  { %848 = vmatpush.msrb.mxu2 %v721_v18  ;;  %v782_v20 = vsel %vm183_vm5, %v780_v19, -inf  ;;  %v2946_v18 = vld [vmem:[%s3996_s4 + $0xb] ss:$0 sm:$0xff] }
 0x5c3   :  { %783 = vmax.xlane.f32.xlu2 %v782_v20 }
 0x5c4   :  { %937 = vmatpush.msra.mxu2 %v2758_v42 }
 0x5c6   :  { %v775_v21 = vpop.f32.mrf.mxu1  ;;  %938 = vmatpush.msra.mxu2 %v2757_v43 }
 0x5c7   :  { %v779_v22 = vmul.f32 0.35355338, %v775_v21  ;;  %v723_v23 = vpop.f32.mrf.mxu3  ;;  %v2945_v21 = vld [vmem:[%s3996_s4 + $0x3] ss:$0 sm:$0xff] }
 0x5c8   :  { %v724_v24 = vadd.f32 %v2943_v14, %v723_v23  ;;  %939 = vmatpush.msra.mxu2 %v2756_v44 }
 0x5c9   :  { %v781_v25 = vsel %vm3256_vm6, %v779_v22, -1e+30 }
 0x5ca   :  { %871 = vmatpush.msra.mxu0 %v724_v24  ;;  %v785_v26 = vsel %vm183_vm5, %v781_v25, -inf  ;;  %940 = vmatpush.msra.mxu2 %v2755_v45 }
 0x5cb   :  { %786 = vmax.xlane.f32.xlu1 %v785_v26 }
 0x5cc   :  { %987 = vmatpush.msrb.mxu0 %v2766_v46 }
 0x5ce   :  { %988 = vmatpush.msrb.mxu0 %v2765_v47 }
 0x5cf   :  { %v967_v28 = vpop.f32.mrf.mxu3 }
 0x5d0   :  { %v968_v29 = vadd.f32 %v2944_v27, %v967_v28  ;;  %989 = vmatpush.msrb.mxu0 %v2764_v48  ;;  %v631_v28 = vadd.f32 %v3397_v8, %v3399_v9 }
 0x5d2   :  { %2773 = vmatpush.xpose.msk.msrb.mxu1 %vm183_vm5, %v968_v29  ;;  %990 = vmatpush.msrb.mxu0 %v2763_v50 }
 0x5d7   :  { %v970_v62 = vpop.f32.mrf.mxu3 }
 0x5d8   :  { %v971_v4 = vadd.f32 %v2944_v27, %v970_v62 }
 0x636   :  { %v784_v30 = vpop.xlane.xlu2 %783 }
 0x637   :  { %v788_v32 = vsub.f32 %v780_v19, %v784_v30 }
 0x639   :  { %v790_v34 = vmul.f32 1.442695, %v788_v32 }
 0x63b   :  { %2989 = vpow2.f32 %v790_v34 }
 0x63e   :  { %v787_v35 = vpop.xlane.xlu1 %786 }
 0x63f   :  { %v789_v36 = vsub.f32 %v781_v25, %v787_v35 }
 0x641   :  { %v2990_v37 = vpop.eup %2989  ;;  %v792_v38 = vmul.f32 1.442695, %v789_v36 }
 0x642   :  { %v794_v39 = vsel %vm183_vm5, %v2990_v37, 0.0 }
 0x643   :  { %2991 = vpow2.f32 %v792_v38  ;;  %795 = vadd.xlane.f32.xlu2 %v794_v39 }
 0x649   :  { %v2992_v40 = vpop.eup %2991 }
 0x64a   :  { %v797_v41 = vsel %vm183_vm5, %v2992_v40, 0.0 }
 0x64b   :  { %798 = vadd.xlane.f32.xlu1 %v797_v41 }
 0x6b6   :  { %v796_v49 = vpop.xlane.xlu2 %795 }
 0x6b7   :  { %2993 = vrcp.f32 %v796_v49  ;;  %v811_v55 = vand.u32 2147483648, %v796_v49  ;;  %v809_v57 = vand.u32 2147483647, %v796_v49  ;;  %vm805_vm11 = vweird.f32 %v796_v49 }
 0x6b9   :  { %v812_v61 = vor.u32 1.1754944e-38, %v811_v55  ;;  %vm810_vm13 = vcmp.eq.f32.partialorder %v809_v57, 8.507059e+37 }
 0x6bd   :  { %v2994_v51 = vpop.eup %2993 }
 0x6be   :  { %v801_v52 = vmul.f32 %v2994_v51, %v796_v49  ;;  %v799_v53 = vpop.xlane.xlu1 %798  ;;  %vm806_vm10 = vweird.f32 %v2994_v51 }
 0x6bf   :  { %2995 = vrcp.f32 %v799_v53  ;;  %vm807_vm12 = vmor %vm805_vm11, %vm806_vm10  ;;  %v825_v5 = vand.u32 2147483648, %v799_v53  ;;  %v823_v7 = vand.u32 2147483647, %v799_v53  ;;  %vm819_vm15 = vweird.f32 %v799_v53 }
 0x6c0   :  { %v802_v54 = vsub.f32 1.0, %v801_v52 }
 0x6c1   :  { %v826_v11 = vor.u32 1.1754944e-38, %v825_v5  ;;  %vm824_vm1 = vcmp.eq.f32.partialorder %v823_v7, 8.507059e+37 }
 0x6c2   :  { %v803_v56 = vmul.f32 %v2994_v51, %v802_v54 }
 0x6c4   :  { %v804_v59 = vadd.f32 %v2994_v51, %v803_v56 }
 0x6c5   :  { %v2996_v60 = vpop.eup %2995 }
 0x6c6   :  { %v808_v63 = vsel %vm807_vm12, %v2994_v51, %v804_v59  ;;  %v815_v0 = vmul.f32 %v2996_v60, %v799_v53  ;;  %vm820_vm14 = vweird.f32 %v2996_v60 }
 0x6c7   :  { %v813_v1 = vsel %vm810_vm13, %v812_v61, %v808_v63  ;;  %vm821_vm0 = vmor %vm819_vm15, %vm820_vm14 }
 0x6c8   :  { %v816_v2 = vsub.f32 1.0, %v815_v0  ;;  %v828_v3 = vmul.f32 %v2990_v37, %v813_v1 }
 0x6ca   :  { %v817_v6 = vmul.f32 %v2996_v60, %v816_v2  ;;  %2751 = vmatmul.msk.f32.vlgmr.msrb.gmra.mxu2 %vm183_vm5, %v828_v3 }
 0x6cb   :  { %2775 = vmatpush.xpose.msk.msrb.mxu2 %vm183_vm5, %v971_v4 }
 0x6cc   :  { %v818_v10 = vadd.f32 %v2996_v60, %v817_v6 }
 0x6ce   :  { %v822_v12 = vsel %vm821_vm0, %v2996_v60, %v818_v10 }
 0x6cf   :  { %v827_v14 = vsel %vm824_vm1, %v826_v11, %v822_v12 }
 0x6d0   :  { %v829_v15 = vmul.f32 %v2992_v40, %v827_v14  ;;  %v1148_v14 = vld [vmem:[%s3997_s5 + $0x78] sm:$0xff] }
 0x6d2   :  { %2752 = vmatmul.msk.f32.vlgmr.msra.gmra.mxu0 %vm183_vm5, %v829_v15  ;;  %2767 = vmatmul.msk.f32.vlgmr.msra.gmra.mxu2 %vm103_vm4, %v3193_v31 }
 0x6da   :  { %2768 = vmatmul.msk.f32.gmra.mxu2 %vm103_vm4, %v3201_v33  ;;  %2771 = vmatmul.msk.f32.vlgmr.msrb.gmra.mxu0 %vm103_vm4, %v3193_v31 }
 0x6e2   :  { %2772 = vmatmul.msk.f32.gmra.mxu0 %vm103_vm4, %v3201_v33 }
 0x74d   :  { %v850_v16 = vpop.f32.mrf.mxu2 }
 0x74e   :  { %2753 = vmatmul.msk.f32.vlgmr.msra.gmra.mxu1 %vm183_vm5, %v850_v16 }
 0x74f   :  { %v873_v17 = vpop.f32.mrf.mxu0  ;;  %1170 = vmatpush.msra.mxu1 %v1148_v14 }
 0x755   :  { %v942_v19 = vpop.f32.mrf.mxu2 }
 0x756   :  { %2754 = vmatmul.msk.f32.gmra.mxu1 %vm183_vm5, %v873_v17  ;;  %v943_v23 = vadd.f32 %v2945_v21, %v942_v19  ;;  %v2947_v17 = vld [vmem:[%s3996_s4 + $0xc] ss:$0 sm:$0xff] }
 0x757   :  { %v992_v20 = vpop.f32.mrf.mxu0 }
 0x758   :  { %v993_v22 = vadd.f32 %v2946_v18, %v992_v20 }
 0x75a   :  { %1120 = vmatpush.msra.mxu3 %v993_v22 }
 0x75d   :  { %v945_v24 = vpop.f32.mrf.mxu2 }
 0x75e   :  { %v946_v25 = vadd.f32 %v2945_v21, %v945_v24  ;;  %2774 = vmatmul.msk.f32.vlgmr.msrb.gmra.mxu1 %vm183_vm5, %v943_v23 }
 0x75f   :  { %v995_v26 = vpop.f32.mrf.mxu0 }
 0x760   :  { %v996_v27 = vadd.f32 %v2946_v18, %v995_v26  ;;  %2776 = vmatmul.msk.f32.vlgmr.msrb.gmra.mxu2 %vm183_vm5, %v946_v25 }
 0x762   :  { %1143 = vmatpush.msra.mxu0 %v996_v27 }
 0x7cb   :  { %v900_v29 = vpop.f32.mrf.mxu1 }
 0x7cc   :  { %v3468_v30 = vadd.f32 %v900_v29, %v631_v28  ;;  %v3083_v28 = vmov 32.0  }
 0x7d3   :  { %v903_v32 = vpop.f32.mrf.mxu1 }
 0x7d4   :  { %v3471_v34 = vadd.f32 %v903_v32, %v3404_v13 }
 0x7db   :  { %v1021_v35 = vpop.f32.mrf.mxu1 }
 0x7dc   :  { %v1050_v36 = vmul.f32 0.35355338, %v1021_v35 }
 0x7de   :  { %v1052_v37 = vsel %vm3256_vm6, %v1050_v36, -1e+30 }
 0x7df   :  { %v1054_v38 = vsel %vm183_vm5, %v1052_v37, -inf }
 0x7e0   :  { %1055 = vmax.xlane.f32.xlu2 %v1054_v38 }
 0x7e3   :  { %v1047_v39 = vpop.f32.mrf.mxu2 }
 0x7e4   :  { %v1051_v40 = vmul.f32 0.35355338, %v1047_v39 }
 0x7e6   :  { %v1053_v8 = vsel %vm3256_vm6, %v1051_v40, -1e+30 }
 0x7e7   :  { %v1057_v9 = vsel %vm183_vm5, %v1053_v8, -inf }
 0x7e8   :  { %1058 = vmax.xlane.f32.xlu1 %v1057_v9 }
 0x853   :  { %v1056_v41 = vpop.xlane.xlu2 %1055 }
 0x854   :  { %v1060_v42 = vsub.f32 %v1052_v37, %v1056_v41 }
 0x856   :  { %v1062_v13 = vmul.f32 1.442695, %v1060_v42 }
 0x858   :  { %2997 = vpow2.f32 %v1062_v13  ;;  %v1248_v13 = vld [vmem:[%s3997_s5 + $0x18] sm:$0xff] }
 0x859   :  { %1277 = vmatpush.msra.mxu2 %v1248_v13 }
 0x85b   :  { %v1059_v43 = vpop.xlane.xlu1 %1058 }
 0x85c   :  { %v1061_v44 = vsub.f32 %v1053_v8, %v1059_v43  ;;  %v1247_v43 = vld [vmem:[%s3997_s5 + $0x10] sm:$0xff] }
 0x85d   :  { %1278 = vmatpush.msra.mxu2 %v1247_v43 }
 0x85e   :  { %v2998_v45 = vpop.eup %2997  ;;  %v1064_v46 = vmul.f32 1.442695, %v1061_v44  ;;  %v1246_v44 = vld [vmem:[%s3997_s5 + $0x8] sm:$0xff] }
 0x85f   :  { %v1066_v47 = vsel %vm183_vm5, %v2998_v45, 0.0  ;;  %1279 = vmatpush.msra.mxu2 %v1246_v44 }
 0x860   :  { %2999 = vpow2.f32 %v1064_v46  ;;  %1067 = vadd.xlane.f32.xlu2 %v1066_v47 }
 0x866   :  { %v3000_v48 = vpop.eup %2999 }
 0x867   :  { %v1069_v49 = vsel %vm183_vm5, %v3000_v48, 0.0 }
 0x868   :  { %1070 = vadd.xlane.f32.xlu1 %v1069_v49  ;;  %v1256_v49 = vld [vmem:[%s3997_s5 + $0x58] sm:$0xff] }
 0x869   :  { %1307 = vmatpush.msrb.mxu3 %v1256_v49  ;;  %v2787_v49 = vld [vmem:[%s3995_s3 + $0x190] sm:$0xff] }
 0x8d3   :  { %v1068_v50 = vpop.xlane.xlu2 %1067 }
 0x8d4   :  { %3001 = vrcp.f32 %v1068_v50  ;;  %v1083_v55 = vand.u32 2147483648, %v1068_v50  ;;  %v1081_v57 = vand.u32 2147483647, %v1068_v50  ;;  %vm1077_vm3 = vweird.f32 %v1068_v50 }
 0x8d6   :  { %v1084_v61 = vor.u32 1.1754944e-38, %v1083_v55  ;;  %vm1082_vm8 = vcmp.eq.f32.partialorder %v1081_v57, 8.507059e+37  ;;  %v1252_v57 = vld [vmem:[%s3997_s5 + $0x38] sm:$0xff] }
 0x8da   :  { %v3002_v51 = vpop.eup %3001 }
 0x8db   :  { %v1073_v52 = vmul.f32 %v3002_v51, %v1068_v50  ;;  %v1071_v53 = vpop.xlane.xlu1 %1070  ;;  %vm1078_vm2 = vweird.f32 %v3002_v51  ;;  %v1255_v50 = vld [vmem:[%s3997_s5 + $0x50] sm:$0xff] }
 0x8dc   :  { %3003 = vrcp.f32 %v1071_v53  ;;  %vm1079_vm7 = vmor %vm1077_vm3, %vm1078_vm2  ;;  %v1097_v3 = vand.u32 2147483648, %v1071_v53  ;;  %v1095_v5 = vand.u32 2147483647, %v1071_v53  ;;  %vm1091_vm10 = vweird.f32 %v1071_v53  ;;  %1308 = vmatpush.msrb.mxu3 %v1255_v50  ;;  %v2791_v50 = vld [vmem:[%s3995_s3 + $0x210] sm:$0xff] }
 0x8dd   :  { %v1074_v54 = vsub.f32 1.0, %v1073_v52  ;;  %3005 = vrcp.f32 %v3083_v28 }
 0x8de   :  { %v1098_v7 = vor.u32 1.1754944e-38, %v1097_v3  ;;  %vm1096_vm12 = vcmp.eq.f32.partialorder %v1095_v5, 8.507059e+37 }
 0x8df   :  { %v1075_v56 = vmul.f32 %v3002_v51, %v1074_v54  ;;  %v1253_v54 = vld [vmem:[%s3997_s5 + $0x40] sm:$0xff] }
 0x8e1   :  { %v1076_v59 = vadd.f32 %v3002_v51, %v1075_v56 }
 0x8e2   :  { %v3004_v60 = vpop.eup %3003 }
 0x8e3   :  { %v1080_v62 = vsel %vm1079_vm7, %v3002_v51, %v1076_v59  ;;  %v1087_v63 = vmul.f32 %v3004_v60, %v1071_v53  ;;  %vm1092_vm9 = vweird.f32 %v3004_v60  ;;  %v3006_v29 = vpop.eup %3005  ;;  %v1254_v51 = vld [vmem:[%s3997_s5 + $0x48] sm:$0xff]  ;;  %vm1292_vm7 = vcmask 523264  }
 0x8e4   :  { %v1085_v0 = vsel %vm1082_vm8, %v1084_v61, %v1080_v62  ;;  %vm1093_vm11 = vmor %vm1091_vm10, %vm1092_vm9  ;;  %v1195_v32 = vmul.f32 32.0, %v3006_v29  ;;  %vm1199_vm13 = vweird.f32 %v3006_v29  ;;  %1309 = vmatpush.msrb.mxu3 %v1254_v51  ;;  %v2795_v51 = vld [vmem:[%s3995_s3 + $0x290] sm:$0xff] }
 0x8e5   :  { %v1088_v1 = vsub.f32 1.0, %v1087_v63  ;;  %v1100_v2 = vmul.f32 %v2998_v45, %v1085_v0  ;;  %v1245_v45 = vld [vmem:[%s3997_s5] sm:$0xff] }
 0x8e6   :  { %1280 = vmatpush.msra.mxu2 %v1245_v45  ;;  %1310 = vmatpush.msrb.mxu3 %v1253_v54  ;;  %v2794_v54 = vld [vmem:[%s3995_s3 + $0x288] sm:$0xff] }
 0x8e7   :  { %v1089_v4 = vmul.f32 %v3004_v60, %v1088_v1  ;;  %2777 = vmatmul.msk.f32.vlgmr.msra.gmra.mxu3 %vm183_vm5, %v1100_v2  ;;  %v2948_v2 = vld [vmem:[%s3996_s4 + $0xf] ss:$0 sm:$0xff] }
 0x8e8   :  { %1311 = vmatpush.msrb.mxu3 %v1252_v57  ;;  %v2793_v57 = vld [vmem:[%s3995_s3 + $0x280] sm:$0xff] }
 0x8e9   :  { %v1090_v6 = vadd.f32 %v3004_v60, %v1089_v4 }
 0x8eb   :  { %v1094_v10 = vsel %vm1093_vm11, %v3004_v60, %v1090_v6  ;;  %v2949_v6 = vld [vmem:[%s3996_s4 + $0x10] ss:$0 sm:$0xff] }
 0x8ec   :  { %v1099_v11 = vsel %vm1096_vm12, %v1098_v7, %v1094_v10 }
 0x8ed   :  { %v1101_v12 = vmul.f32 %v3000_v48, %v1099_v11 }
 0x8ef   :  { %2778 = vmatmul.msk.f32.vlgmr.msra.gmra.mxu0 %vm183_vm5, %v1101_v12 }
 0x96a   :  { %v1122_v15 = vpop.f32.mrf.mxu3 }
 0x96b   :  { %2779 = vmatmul.msk.f32.vlgmr.msra.gmra.mxu1 %vm183_vm5, %v1122_v15 }
 0x96c   :  { %v1145_v16 = vpop.f32.mrf.mxu0 }
 0x973   :  { %2780 = vmatmul.msk.f32.gmra.mxu1 %vm183_vm5, %v1145_v16 }
 0x9e8   :  { %v1172_v18 = vpop.f32.mrf.mxu1 }
 0x9e9   :  { %v1178_v19 = vadd.f32 %v1172_v18, %v3468_v30  ;;  %v1196_v30 = vsub.f32 1.0, %v1195_v32 }
 0x9eb   :  { %v1182_v20 = vadd.f32 %v2947_v17, %v1178_v19  ;;  %v1197_v35 = vmul.f32 %v3006_v29, %v1196_v30  ;;  %v1251_v19 = vld [vmem:[%s3997_s5 + $0x30] sm:$0xff] }
 0x9ec   :  { %1312 = vmatpush.msrb.mxu3 %v1251_v19  ;;  %v2953_v19 = vld [vmem:[%s3996_s4 + $0x12] ss:$0 sm:$0xff] }
 0x9ed   :  { %v1184_v21 = vadd.f32 %v1182_v20, %v3193_v31  ;;  %v1198_v36 = vadd.f32 %v3006_v29, %v1197_v35  ;;  %v1250_v20 = vld [vmem:[%s3997_s5 + $0x28] sm:$0xff] }
 0x9ee   :  { %1313 = vmatpush.msrb.mxu3 %v1250_v20 }
 0x9ef   :  { %v1188_v22 = vsel %vm103_vm4, %v1184_v21, 0.0  ;;  %v3497_v31 = vsel %vm1199_vm13, %v3006_v29, %v1198_v36  ;;  %v2951_v29 = vld [vmem:[%s3996_s4 + $0xe] ss:$0 sm:$0xff] }
 0x9f0   :  { %1189 = vadd.xlane.f32.xlu2 %v1188_v22  ;;  %v1175_v23 = vpop.f32.mrf.mxu1  ;;  %v2950_v22 = vld [vmem:[%s3996_s4 + $0xd] ss:$0 sm:$0xff] }
 0x9f1   :  { %v1179_v24 = vadd.f32 %v1175_v23, %v3471_v34 }
 0x9f3   :  { %v1183_v25 = vadd.f32 %v2947_v17, %v1179_v24 }
 0x9f5   :  { %v1185_v26 = vadd.f32 %v1183_v25, %v3201_v33 }
 0x9f7   :  { %v1191_v27 = vsel %vm103_vm4, %v1185_v26, 0.0 }
 0x9f8   :  { %1192 = vadd.xlane.f32.xlu0 %v1191_v27 }
 0xa63   :  { %v1190_v37 = vpop.xlane.xlu2 %1189 }
 0xa64   :  { %v1201_v38 = vmul.f32 %v3497_v31, %v1190_v37 }
 0xa66   :  { %v1203_v34 = vsub.f32 %v1184_v21, %v1201_v38  ;;  %v1249_v21 = vld [vmem:[%s3997_s5 + $0x20] sm:$0xff] }
 0xa67   :  { %1314 = vmatpush.msrb.mxu3 %v1249_v21 }
 0xa68   :  { %v1205_v39 = vmul.f32 %v1203_v34, %v1203_v34 }
 0xa6a   :  { %v1207_v33 = vsel %vm103_vm4, %v1205_v39, 0.0 }
 0xa6b   :  { %1208 = vadd.xlane.f32.xlu1 %v1207_v33  ;;  %v1193_v40 = vpop.xlane.xlu0 %1192 }
 0xa6c   :  { %v1202_v8 = vmul.f32 %v3497_v31, %v1193_v40 }
 0xa6e   :  { %v1204_v9 = vsub.f32 %v1185_v26, %v1202_v8 }
 0xa70   :  { %v1206_v41 = vmul.f32 %v1204_v9, %v1204_v9 }
 0xa72   :  { %v1210_v42 = vsel %vm103_vm4, %v1206_v41, 0.0 }
 0xa73   :  { %1211 = vadd.xlane.f32.xlu2 %v1210_v42 }
 0xade   :  { %v1209_v46 = vpop.xlane.xlu1 %1208 }
 0xadf   :  { %v1213_v47 = vmul.f32 %v1209_v46, %v3497_v31  ;;  %v2788_v46 = vld [vmem:[%s3995_s3 + $0x198] sm:$0xff] }
 0xae0   :  { %1412 = vmatpush.msrb.mxu0 %v2788_v46  ;;  %v2817_v46 = vld [vmem:[%s3995_s3 + $0x220] sm:$0xff] }
 0xae1   :  { %v1215_v48 = vadd.f32 1e-05, %v1213_v47  ;;  %v2792_v47 = vld [vmem:[%s3995_s3 + $0x218] sm:$0xff] }
 0xae2   :  { %1437 = vmatpush.msrb.mxu1 %v2792_v47  ;;  %1413 = vmatpush.msrb.mxu0 %v2787_v49 }
 0xae3   :  { %3007 = vrsqrt.f32 %v1215_v48  ;;  %vm1223_vm15 = vweird.f32 %v1215_v48 }
 0xae4   :  { %1438 = vmatpush.msrb.mxu1 %v2791_v50 }
 0xae6   :  { %v1212_v52 = vpop.xlane.xlu2 %1211 }
 0xae7   :  { %v1214_v53 = vmul.f32 %v1212_v52, %v3497_v31  ;;  %v2786_v52 = vld [vmem:[%s3995_s3 + $0x188] sm:$0xff] }
 0xae8   :  { %1414 = vmatpush.msrb.mxu0 %v2786_v52 }
 0xae9   :  { %v3008_v55 = vpop.eup %3007  ;;  %v1216_v56 = vadd.f32 1e-05, %v1214_v53  ;;  %v2790_v53 = vld [vmem:[%s3995_s3 + $0x208] sm:$0xff] }
 0xaea   :  { %v1218_v59 = vmul.f32 %v3008_v55, %v1215_v48  ;;  %vm1224_vm14 = vweird.f32 %v3008_v55  ;;  %v2796_v48 = vld [vmem:[%s3995_s3 + $0x298] sm:$0xff]  ;;  %1439 = vmatpush.msrb.mxu1 %v2790_v53 }
 0xaeb   :  { %3009 = vrsqrt.f32 %v1216_v56  ;;  %vm1225_vm0 = vmor %vm1223_vm15, %vm1224_vm14  ;;  %vm1233_vm2 = vweird.f32 %v1216_v56  ;;  %1462 = vmatpush.msrb.mxu2 %v2796_v48 }
 0xaec   :  { %v1219_v60 = vmul.f32 %v3008_v55, %v1218_v59 }
 0xaed   :  { %1463 = vmatpush.msrb.mxu2 %v2795_v51 }
 0xaee   :  { %v1220_v61 = vmul.f32 0.5, %v1219_v60 }
 0xaef   :  { %1464 = vmatpush.msrb.mxu2 %v2794_v54 }
 0xaf0   :  { %v1221_v62 = vsub.f32 1.5, %v1220_v61 }
 0xaf1   :  { %v3010_v63 = vpop.eup %3009  ;;  %1465 = vmatpush.msrb.mxu2 %v2793_v57 }
 0xaf2   :  { %v1222_v0 = vmul.f32 %v3008_v55, %v1221_v62  ;;  %v1228_v1 = vmul.f32 %v3010_v63, %v1216_v56  ;;  %vm1234_vm1 = vweird.f32 %v3010_v63  ;;  %v2789_v56 = vld [vmem:[%s3995_s3 + $0x200] sm:$0xff]  ;;  %v2816_v62 = vld [vmem:[%s3995_s3 + $0x1b8] sm:$0xff] }
 0xaf3   :  { %vm1235_vm3 = vmor %vm1233_vm2, %vm1234_vm1  ;;  %1440 = vmatpush.msrb.mxu1 %v2789_v56 }
 0xaf4   :  { %v1226_v3 = vsel %vm1225_vm0, %v3008_v55, %v1222_v0  ;;  %v1229_v4 = vmul.f32 %v3010_v63, %v1228_v1  ;;  %v2785_v55 = vld [vmem:[%s3995_s3 + $0x180] sm:$0xff]  ;;  %v2814_v1 = vld [vmem:[%s3995_s3 + $0x1a8] sm:$0xff] }
 0xaf5   :  { %v1237_v5 = vmul.f32 %v1226_v3, %v1203_v34  ;;  %1415 = vmatpush.msrb.mxu0 %v2785_v55  ;;  %v2813_v3 = vld [vmem:[%s3995_s3 + $0x1a0] sm:$0xff]  ;;  %v3687_v55 = vld [vmem:[%s3996_s4 + $0x1d] ss:$0 sm:$0xff] }
 0xaf6   :  { %v1230_v7 = vmul.f32 0.5, %v1229_v4 }
 0xaf7   :  { %v1240_v10 = vmul.f32 %v2948_v2, %v1237_v5 }
 0xaf8   :  { %v1231_v11 = vsub.f32 1.5, %v1230_v7 }
 0xaf9   :  { %v1243_v12 = vadd.f32 %v2949_v6, %v1240_v10 }
 0xafa   :  { %v1232_v14 = vmul.f32 %v3010_v63, %v1231_v11 }
 0xafb   :  { %2781 = vmatmul.msk.f32.vlgmr.msra.gmra.mxu2 %vm103_vm4, %v1243_v12 }
 0xafc   :  { %v1236_v15 = vsel %vm1235_vm3, %v3010_v63, %v1232_v14  ;;  %v2815_v63 = vld [vmem:[%s3995_s3 + $0x1b0] sm:$0xff]  ;;  %1654 = vmatpush.msra.mxu2 %v2816_v62 }
 0xafd   :  { %v1238_v16 = vmul.f32 %v1236_v15, %v1204_v9 }
 0xafe   :  { %1655 = vmatpush.msra.mxu2 %v2815_v63 }
 0xaff   :  { %v1241_v17 = vmul.f32 %v2948_v2, %v1238_v16  ;;  %v2952_v16 = vld [vmem:[%s3996_s4 + $0x11] ss:$0 sm:$0xff] }
 0xb00   :  { %1656 = vmatpush.msra.mxu2 %v2814_v1 }
 0xb01   :  { %v1244_v18 = vadd.f32 %v2949_v6, %v1241_v17 }
 0xb02   :  { %1657 = vmatpush.msra.mxu2 %v2813_v3 }
 0xb03   :  { %2782 = vmatmul.msk.f32.gmra.mxu2 %vm103_vm4, %v1244_v18 }
 0xb7e   :  { %v1282_v23 = vpop.f32.mrf.mxu2 }
 0xb7f   :  { %v1283_v24 = vadd.f32 %v2950_v22, %v1282_v23 }
 0xb81   :  { %v1288_v25 = vmax.f32 %v1283_v24, 0.0 }
 0xb83   :  { %2783 = vmatmul.msk.f32.vlgmr.msrb.gmra.mxu3 %vm1292_vm7, %v1288_v25 }
 0xb86   :  { %v1285_v26 = vpop.f32.mrf.mxu2 }
 0xb87   :  { %v1286_v27 = vadd.f32 %v2950_v22, %v1285_v26 }
 0xb89   :  { %v1289_v28 = vmax.f32 %v1286_v27, 0.0 }
 0xb8b   :  { %2784 = vmatmul.msk.f32.gmra.mxu3 %vm1292_vm7, %v1289_v28 }
 0xc06   :  { %v1316_v32 = vpop.f32.mrf.mxu3 }
 0xc07   :  { %v1317_v30 = vadd.f32 %v2951_v29, %v1316_v32  ;;  %v2955_v32 = vld [vmem:[%s3996_s4 + $0x1c] ss:$0 sm:$0xff] }
 0xc09   :  { %v1322_v35 = vadd.f32 %v1317_v30, %v1243_v12  ;;  %v2954_v30 = vld [vmem:[%s3996_s4 + $0x18] ss:$0 sm:$0xff] }
 0xc0b   :  { %v1326_v36 = vsel %vm103_vm4, %v1322_v35, 0.0 }
 0xc0c   :  { %1327 = vadd.xlane.f32.xlu0 %v1326_v36 }
 0xc0e   :  { %v1319_v37 = vpop.f32.mrf.mxu3 }
 0xc0f   :  { %v1320_v38 = vadd.f32 %v2951_v29, %v1319_v37 }
 0xc11   :  { %v1323_v34 = vadd.f32 %v1320_v38, %v1244_v18 }
 0xc13   :  { %v1329_v39 = vsel %vm103_vm4, %v1323_v34, 0.0 }
 0xc14   :  { %1330 = vadd.xlane.f32.xlu1 %v1329_v39 }
 0xc7f   :  { %v1328_v33 = vpop.xlane.xlu0 %1327 }
 0xc80   :  { %v1332_v40 = vmul.f32 %v1328_v33, %v3497_v31 }
 0xc82   :  { %v3560_v8 = vsub.f32 %v1322_v35, %v1332_v40 }
 0xc84   :  { %v1336_v9 = vmul.f32 %v3560_v8, %v3560_v8 }
 0xc86   :  { %v1338_v41 = vsel %vm103_vm4, %v1336_v9, 0.0 }
 0xc87   :  { %v1331_v42 = vpop.xlane.xlu1 %1330  ;;  %1339 = vadd.xlane.f32.xlu2 %v1338_v41  ;;  %v2820_v41 = vld [vmem:[%s3995_s3 + $0x238] sm:$0xff] }
 0xc88   :  { %v1333_v13 = vmul.f32 %v1331_v42, %v3497_v31 }
 0xc8a   :  { %v3566_v43 = vsub.f32 %v1323_v34, %v1333_v13  ;;  %v2956_v34 = vld [vmem:[%s3996_s4 + $0x20] ss:$0 sm:$0xff]  ;;  %v2819_v13 = vld [vmem:[%s3995_s3 + $0x230] sm:$0xff] }
 0xc8c   :  { %v1337_v44 = vmul.f32 %v3566_v43, %v3566_v43 }
 0xc8e   :  { %v1341_v45 = vsel %vm103_vm4, %v1337_v44, 0.0 }
 0xc8f   :  { %1342 = vadd.xlane.f32.xlu0 %v1341_v45 }
 0xcfa   :  { %v1340_v59 = vpop.xlane.xlu2 %1339 }
 0xcfb   :  { %v1344_v60 = vmul.f32 %v1340_v59, %v3497_v31 }
 0xcfd   :  { %v1346_v61 = vadd.f32 1e-05, %v1344_v60 }
 0xcff   :  { %3011 = vrsqrt.f32 %v1346_v61  ;;  %vm1354_vm9 = vweird.f32 %v1346_v61 }
 0xd02   :  { %v1343_v0 = vpop.xlane.xlu0 %1342 }
 0xd03   :  { %v1345_v2 = vmul.f32 %v1343_v0, %v3497_v31 }
 0xd05   :  { %v3012_v4 = vpop.eup %3011  ;;  %v1347_v5 = vadd.f32 1e-05, %v1345_v2 }
 0xd06   :  { %v1349_v6 = vmul.f32 %v3012_v4, %v1346_v61  ;;  %vm1355_vm8 = vweird.f32 %v3012_v4 }
 0xd07   :  { %3013 = vrsqrt.f32 %v1347_v5  ;;  %vm1356_vm10 = vmor %vm1354_vm9, %vm1355_vm8  ;;  %vm1364_vm12 = vweird.f32 %v1347_v5 }
 0xd08   :  { %v1350_v7 = vmul.f32 %v3012_v4, %v1349_v6  ;;  %v2823_v6 = vld [vmem:[%s3995_s3 + $0x2b0] sm:$0xff] }
 0xd0a   :  { %v1351_v10 = vmul.f32 0.5, %v1350_v7  ;;  %v2822_v7 = vld [vmem:[%s3995_s3 + $0x2a8] sm:$0xff] }
 0xd0c   :  { %v1352_v11 = vsub.f32 1.5, %v1351_v10  ;;  %v2821_v10 = vld [vmem:[%s3995_s3 + $0x2a0] sm:$0xff] }
 0xd0d   :  { %v3014_v12 = vpop.eup %3013 }
 0xd0e   :  { %v1353_v14 = vmul.f32 %v3012_v4, %v1352_v11  ;;  %v1359_v15 = vmul.f32 %v3014_v12, %v1347_v5  ;;  %vm1365_vm11 = vweird.f32 %v3014_v12  ;;  %v2824_v5 = vld [vmem:[%s3995_s3 + $0x2b8] sm:$0xff] }
 0xd0f   :  { %vm1366_vm13 = vmor %vm1364_vm12, %vm1365_vm11 }
 0xd10   :  { %v1357_v17 = vsel %vm1356_vm10, %v3012_v4, %v1353_v14  ;;  %v1360_v18 = vmul.f32 %v3014_v12, %v1359_v15 }
 0xd11   :  { %v1368_v20 = vmul.f32 %v1357_v17, %v3560_v8 }
 0xd12   :  { %v1361_v21 = vmul.f32 0.5, %v1360_v18 }
 0xd13   :  { %v1371_v22 = vmul.f32 %v2952_v16, %v1368_v20 }
 0xd14   :  { %v1362_v23 = vsub.f32 1.5, %v1361_v21 }
 0xd15   :  { %v3628_v24 = vadd.f32 %v2953_v19, %v1371_v22 }
 0xd16   :  { %v1363_v25 = vmul.f32 %v3014_v12, %v1362_v23 }
 0xd17   :  { %2798 = vmatmul.msk.f32.vlgmr.msrb.gmra.mxu0 %vm103_vm4, %v3628_v24  ;;  %2801 = vmatmul.msk.f32.vlgmr.msrb.gmra.mxu1 %vm103_vm4, %v3628_v24 }
 0xd18   :  { %v1367_v26 = vsel %vm1366_vm13, %v3014_v12, %v1363_v25  ;;  %2804 = vmatmul.msk.f32.vlgmr.msrb.gmra.mxu2 %vm103_vm4, %v3628_v24 }
 0xd19   :  { %v1369_v27 = vmul.f32 %v1367_v26, %v3566_v43  ;;  %v2818_v43 = vld [vmem:[%s3995_s3 + $0x228] sm:$0xff] }
 0xd1b   :  { %v1372_v28 = vmul.f32 %v2952_v16, %v1369_v27 }
 0xd1d   :  { %v3637_v29 = vadd.f32 %v2953_v19, %v1372_v28 }
 0xd1f   :  { %2799 = vmatmul.msk.f32.gmra.mxu0 %vm103_vm4, %v3637_v29  ;;  %2802 = vmatmul.msk.f32.gmra.mxu1 %vm103_vm4, %v3637_v29 }
 0xd20   :  { %2805 = vmatmul.msk.f32.gmra.mxu2 %vm103_vm4, %v3637_v29 }
 0xd28   :  { %2826 = vmatmul.msk.f32.vlgmr.msra.gmra.mxu2 %vm103_vm4, %v3628_v24 }
 0xd30   :  { %2827 = vmatmul.msk.f32.gmra.mxu2 %vm103_vm4, %v3637_v29 }
 0xd94   :  { %v1417_v35 = vpop.f32.mrf.mxu0  ;;  %v1442_v36 = vpop.f32.mrf.mxu1 }
 0xd95   :  { %v1443_v37 = vadd.f32 %v2955_v32, %v1442_v36  ;;  %v1418_v38 = vadd.f32 %v2954_v30, %v1417_v35 }
 0xd97   :  { %2806 = vmatpush.xpose.msk.msra.mxu0 %vm183_vm5, %v1443_v37 }
 0xd9a   :  { %2807 = vmatmul.msk.f32.vlgmr.msra.gmra.mxu0 %vm183_vm5, %v1418_v38 }
 0xd9b   :  { %v1467_v39 = vpop.f32.mrf.mxu2 }
 0xd9c   :  { %v1468_v33 = vadd.f32 %v2956_v34, %v1467_v39  ;;  %v1445_v40 = vpop.f32.mrf.mxu1  ;;  %v1420_v8 = vpop.f32.mrf.mxu0 }
 0xd9d   :  { %v1446_v9 = vadd.f32 %v2955_v32, %v1445_v40  ;;  %v1421_v42 = vadd.f32 %v2954_v30, %v1420_v8 }
 0xd9e   :  { %1595 = vmatpush.msrb.mxu0 %v1468_v33 }
 0xd9f   :  { %2808 = vmatpush.xpose.msk.msra.mxu3 %vm183_vm5, %v1446_v9  ;;  %v2957_v9 = vld [vmem:[%s3996_s4 + $0x19] ss:$0 sm:$0xff] }
 0xda0   :  { %1704 = vmatpush.msra.mxu0 %v2824_v5 }
 0xda2   :  { %2809 = vmatmul.msk.f32.vlgmr.msra.gmra.mxu3 %vm183_vm5, %v1421_v42  ;;  %1705 = vmatpush.msra.mxu0 %v2823_v6  ;;  %v2848_v6 = vld [vmem:[%s3995_s3 + $0x1d8] sm:$0xff] }
 0xda3   :  { %1679 = vmatpush.msrb.mxu3 %v2820_v41  ;;  %v1470_v44 = vpop.f32.mrf.mxu2 }
 0xda4   :  { %v1471_v45 = vadd.f32 %v2956_v34, %v1470_v44  ;;  %1706 = vmatpush.msra.mxu0 %v2822_v7  ;;  %v2847_v7 = vld [vmem:[%s3995_s3 + $0x1d0] sm:$0xff] }
 0xda5   :  { %1680 = vmatpush.msrb.mxu3 %v2819_v13 }
 0xda6   :  { %1618 = vmatpush.msra.mxu1 %v1471_v45  ;;  %1707 = vmatpush.msra.mxu0 %v2821_v10  ;;  %v2959_v45 = vld [vmem:[%s3996_s4 + $0x21] ss:$0 sm:$0xff]  ;;  %v2846_v10 = vld [vmem:[%s3995_s3 + $0x1c8] sm:$0xff] }
 0xda7   :  { %1681 = vmatpush.msrb.mxu3 %v2818_v43  ;;  %v2812_v43 = vld [vmem:[%s3997_s5 + $0xe0] sm:$0xff] }
 0xda9   :  { %1682 = vmatpush.msrb.mxu3 %v2817_v46 }
 0xdaa   :  { %2829 = vmatmul.msk.f32.vlgmr.msrb.gmra.mxu3 %vm103_vm4, %v3628_v24 }
 0xdab   :  { %v1659_v8 = vpop.f32.mrf.mxu2 }
 0xdac   :  { %v1660_v41 = vadd.f32 %v2957_v9, %v1659_v8 }
 0xdb2   :  { %2830 = vmatmul.msk.f32.gmra.mxu3 %vm103_vm4, %v3637_v29 }
 0xdb3   :  { %v1662_v42 = vpop.f32.mrf.mxu2 }
 0xdb4   :  { %v1663_v13 = vadd.f32 %v2957_v9, %v1662_v42  ;;  %v2840_v42 = vld [vmem:[%s3997_s5 + $0xe8] sm:$0xff] }
 0xe17   :  { %v1496_v47 = vpop.f32.mrf.mxu0 }
 0xe18   :  { %v1525_v48 = vmul.f32 0.35355338, %v1496_v47 }
 0xe1a   :  { %v1527_v49 = vsel %vm3256_vm6, %v1525_v48, -1e+30 }
 0xe1b   :  { %v1529_v50 = vsel %vm183_vm5, %v1527_v49, -inf }
 0xe1c   :  { %1530 = vmax.xlane.f32.xlu0 %v1529_v50 }
 0xe25   :  { %v1522_v51 = vpop.f32.mrf.mxu3 }
 0xe26   :  { %v1526_v52 = vmul.f32 0.35355338, %v1522_v51 }
 0xe28   :  { %v1528_v53 = vsel %vm3256_vm6, %v1526_v52, -1e+30 }
 0xe29   :  { %v1532_v54 = vsel %vm183_vm5, %v1528_v53, -inf }
 0xe2a   :  { %1533 = vmax.xlane.f32.xlu1 %v1532_v54 }
 0xe2d   :  { %v1684_v56 = vpop.f32.mrf.mxu3 }
 0xe2e   :  { %v1685_v57 = vadd.f32 %v3687_v55, %v1684_v56 }
 0xe30   :  { %2834 = vmatpush.xpose.msk.msrb.mxu1 %vm183_vm5, %v1685_v57 }
 0xe35   :  { %v1687_v38 = vpop.f32.mrf.mxu3 }
 0xe36   :  { %v1688_v40 = vadd.f32 %v3687_v55, %v1687_v38 }
 0xe8f   :  { %v1531_v59 = vpop.xlane.xlu0 %1530 }
 0xe90   :  { %v1535_v60 = vsub.f32 %v1527_v49, %v1531_v59 }
 0xe92   :  { %v1537_v61 = vmul.f32 1.442695, %v1535_v60 }
 0xe94   :  { %3015 = vpow2.f32 %v1537_v61 }
 0xe9a   :  { %v3016_v62 = vpop.eup %3015 }
 0xe9b   :  { %v1541_v63 = vsel %vm183_vm5, %v3016_v62, 0.0 }
 0xe9c   :  { %1542 = vadd.xlane.f32.xlu1 %v1541_v63 }
 0xe9d   :  { %v1534_v0 = vpop.xlane.xlu1 %1533 }
 0xe9e   :  { %v1536_v1 = vsub.f32 %v1528_v53, %v1534_v0 }
 0xea0   :  { %v1539_v2 = vmul.f32 1.442695, %v1536_v1 }
 0xea2   :  { %3017 = vpow2.f32 %v1539_v2 }
 0xea8   :  { %v3018_v3 = vpop.eup %3017 }
 0xea9   :  { %v1544_v4 = vsel %vm183_vm5, %v3018_v3, 0.0 }
 0xeaa   :  { %1545 = vadd.xlane.f32.xlu2 %v1544_v4 }
 0xf0f   :  { %v1543_v11 = vpop.xlane.xlu1 %1542 }
 0xf10   :  { %3019 = vrcp.f32 %v1543_v11  ;;  %v1558_v16 = vand.u32 2147483648, %v1543_v11  ;;  %v1556_v18 = vand.u32 2147483647, %v1543_v11  ;;  %vm1552_vm15 = vweird.f32 %v1543_v11 }
 0xf12   :  { %v1559_v21 = vor.u32 1.1754944e-38, %v1558_v16  ;;  %vm1557_vm1 = vcmp.eq.f32.partialorder %v1556_v18, 8.507059e+37 }
 0xf16   :  { %v3020_v12 = vpop.eup %3019 }
 0xf17   :  { %v1548_v14 = vmul.f32 %v3020_v12, %v1543_v11  ;;  %vm1553_vm14 = vweird.f32 %v3020_v12  ;;  %v2845_v11 = vld [vmem:[%s3995_s3 + $0x1c0] sm:$0xff] }
 0xf18   :  { %vm1554_vm0 = vmor %vm1552_vm15, %vm1553_vm14 }
 0xf19   :  { %v1549_v15 = vsub.f32 1.0, %v1548_v14  ;;  %v2851_v14 = vld [vmem:[%s3995_s3 + $0x250] sm:$0xff] }
 0xf1b   :  { %v1550_v17 = vmul.f32 %v3020_v12, %v1549_v15  ;;  %v2850_v15 = vld [vmem:[%s3995_s3 + $0x248] sm:$0xff] }
 0xf1d   :  { %v1551_v19 = vadd.f32 %v3020_v12, %v1550_v17  ;;  %v1546_v20 = vpop.xlane.xlu2 %1545  ;;  %v2849_v17 = vld [vmem:[%s3995_s3 + $0x240] sm:$0xff] }
 0xf1e   :  { %3021 = vrcp.f32 %v1546_v20  ;;  %v1572_v32 = vand.u32 2147483648, %v1546_v20  ;;  %v1570_v35 = vand.u32 2147483647, %v1546_v20  ;;  %vm1566_vm3 = vweird.f32 %v1546_v20 }
 0xf1f   :  { %v1555_v22 = vsel %vm1554_vm0, %v3020_v12, %v1551_v19  ;;  %v2852_v12 = vld [vmem:[%s3995_s3 + $0x258] sm:$0xff] }
 0xf20   :  { %v1560_v23 = vsel %vm1557_vm1, %v1559_v21, %v1555_v22  ;;  %v1573_v37 = vor.u32 1.1754944e-38, %v1572_v32  ;;  %vm1571_vm9 = vcmp.eq.f32.partialorder %v1570_v35, 8.507059e+37 }
 0xf21   :  { %v1575_v25 = vmul.f32 %v3016_v62, %v1560_v23 }
 0xf23   :  { %2810 = vmatmul.msk.f32.vlgmr.msrb.gmra.mxu0 %vm183_vm5, %v1575_v25 }
 0xf24   :  { %v3022_v26 = vpop.eup %3021  ;;  %1887 = vmatpush.msrb.mxu0 %v2840_v42  ;;  %v2884_v42 = vld [vmem:[%s3995_s3 + $0x2e8] sm:$0xff] }
 0xf25   :  { %v1562_v27 = vmul.f32 %v3022_v26, %v1546_v20  ;;  %vm1567_vm2 = vweird.f32 %v3022_v26 }
 0xf26   :  { %vm1568_vm8 = vmor %vm1566_vm3, %vm1567_vm2 }
 0xf27   :  { %v1563_v28 = vsub.f32 1.0, %v1562_v27 }
 0xf29   :  { %v1564_v30 = vmul.f32 %v3022_v26, %v1563_v28 }
 0xf2b   :  { %v1565_v36 = vadd.f32 %v3022_v26, %v1564_v30  ;;  %2832 = vmatmul.msk.f32.vlgmr.msra.gmra.mxu0 %vm103_vm4, %v3628_v24 }
 0xf2d   :  { %v1569_v34 = vsel %vm1568_vm8, %v3022_v26, %v1565_v36 }
 0xf2e   :  { %v1574_v39 = vsel %vm1571_vm9, %v1573_v37, %v1569_v34 }
 0xf2f   :  { %v1576_v33 = vmul.f32 %v3018_v3, %v1574_v39 }
 0xf31   :  { %2811 = vmatmul.msk.f32.vlgmr.msra.gmra.mxu1 %vm183_vm5, %v1576_v33 }
 0xf32   :  { %2836 = vmatpush.xpose.msk.msra.mxu1 %vm183_vm5, %v1688_v40 }
 0xf33   :  { %2833 = vmatmul.msk.f32.gmra.mxu0 %vm103_vm4, %v3637_v29 }
 0xf39   :  { %2835 = vmatmul.msk.f32.vlgmr.msrb.gmra.mxu1 %vm183_vm5, %v1660_v41 }
 0xf3a   :  { %1916 = vmatpush.msrb.mxu1 %v2812_v43  ;;  %v2855_v43 = vld [vmem:[%s3995_s3 + $0x2d0] sm:$0xff] }
 0xf41   :  { %2837 = vmatmul.msk.f32.vlgmr.msra.gmra.mxu1 %vm183_vm5, %v1663_v13  ;;  %v2856_v13 = vld [vmem:[%s3995_s3 + $0x2d8] sm:$0xff] }
 0xf42   :  { %2003 = vmatpush.msra.mxu0 %v2856_v13  ;;  %v2883_v13 = vld [vmem:[%s3995_s3 + $0x2e0] sm:$0xff] }
 0xf44   :  { %2004 = vmatpush.msra.mxu0 %v2855_v43 }
 0xfa0   :  { %v1597_v44 = vpop.f32.mrf.mxu0 }
 0xfa1   :  { %2843 = vmatmul.msk.f32.vlgmr.msrb.gmra.mxu1 %vm183_vm5, %v1597_v44  ;;  %v2854_v44 = vld [vmem:[%s3995_s3 + $0x2c8] sm:$0xff] }
 0xfa2   :  { %2005 = vmatpush.msra.mxu0 %v2854_v44 }
 0xfa8   :  { %v1709_v46 = vpop.f32.mrf.mxu0 }
 0xfa9   :  { %v1710_v47 = vadd.f32 %v2959_v45, %v1709_v46  ;;  %v2882_v46 = vld [vmem:[%s3995_s3 + $0x278] sm:$0xff] }
 0xfab   :  { %1837 = vmatpush.msrb.mxu2 %v1710_v47 }
 0xfad   :  { %1953 = vmatpush.msra.mxu2 %v2848_v6 }
 0xfae   :  { %v1620_v48 = vpop.f32.mrf.mxu1 }
 0xfaf   :  { %2844 = vmatmul.msk.f32.gmra.mxu1 %vm183_vm5, %v1620_v48  ;;  %1954 = vmatpush.msra.mxu2 %v2847_v7  ;;  %v2881_v48 = vld [vmem:[%s3995_s3 + $0x270] sm:$0xff] }
 0xfb0   :  { %v1712_v49 = vpop.f32.mrf.mxu0 }
 0xfb1   :  { %v1713_v50 = vadd.f32 %v2959_v45, %v1712_v49  ;;  %1955 = vmatpush.msra.mxu2 %v2846_v10  ;;  %v2853_v45 = vld [vmem:[%s3995_s3 + $0x2c0] sm:$0xff]  ;;  %v2880_v49 = vld [vmem:[%s3995_s3 + $0x268] sm:$0xff] }
 0xfb2   :  { %2006 = vmatpush.msra.mxu0 %v2853_v45 }
 0xfb3   :  { %1860 = vmatpush.msra.mxu3 %v1713_v50  ;;  %1956 = vmatpush.msra.mxu2 %v2845_v11  ;;  %v2879_v50 = vld [vmem:[%s3995_s3 + $0x260] sm:$0xff] }
 0xfb5   :  { %1978 = vmatpush.msrb.mxu3 %v2852_v12 }
 0xfb6   :  { %v1738_v51 = vpop.f32.mrf.mxu1 }
 0xfb7   :  { %v1767_v52 = vmul.f32 0.35355338, %v1738_v51  ;;  %1979 = vmatpush.msrb.mxu3 %v2851_v14 }
 0xfb9   :  { %v1769_v53 = vsel %vm3256_vm6, %v1767_v52, -1e+30  ;;  %1980 = vmatpush.msrb.mxu3 %v2850_v15  ;;  %v2961_v52 = vld [vmem:[%s3996_s4 + $0x1e] ss:$0 sm:$0xff] }
 0xfba   :  { %v1771_v54 = vsel %vm183_vm5, %v1769_v53, -inf }
 0xfbb   :  { %1772 = vmax.xlane.f32.xlu0 %v1771_v54  ;;  %1981 = vmatpush.msrb.mxu3 %v2849_v17  ;;  %v2960_v54 = vld [vmem:[%s3996_s4 + $0x1a] ss:$0 sm:$0xff]  ;;  %v2963_v17 = vld [vmem:[%s3996_s4 + $0x1f] ss:$0 sm:$0xff] }
 0xfbe   :  { %v1764_v55 = vpop.f32.mrf.mxu1 }
 0xfbf   :  { %v1768_v56 = vmul.f32 0.35355338, %v1764_v55 }
 0xfc1   :  { %v1770_v57 = vsel %vm3256_vm6, %v1768_v56, -1e+30 }
 0xfc2   :  { %v1774_v59 = vsel %vm183_vm5, %v1770_v57, -inf }
 0xfc3   :  { %1775 = vmax.xlane.f32.xlu2 %v1774_v59 }
0x102e   :  { %v1773_v60 = vpop.xlane.xlu0 %1772 }
0x102f   :  { %v1777_v61 = vsub.f32 %v1769_v53, %v1773_v60 }
0x1031   :  { %v1779_v62 = vmul.f32 1.442695, %v1777_v61 }
0x1033   :  { %3023 = vpow2.f32 %v1779_v62 }
0x1036   :  { %v1776_v63 = vpop.xlane.xlu2 %1775 }
0x1037   :  { %v1778_v0 = vsub.f32 %v1770_v57, %v1776_v63  ;;  %v3815_v63 = vpop.f32.mrf.mxu1 }
0x1039   :  { %v3024_v1 = vpop.eup %3023  ;;  %v1781_v2 = vmul.f32 1.442695, %v1778_v0 }
0x103a   :  { %v1783_v3 = vsel %vm183_vm5, %v3024_v1, 0.0 }
0x103b   :  { %3025 = vpow2.f32 %v1781_v2  ;;  %1784 = vadd.xlane.f32.xlu2 %v1783_v3 }
0x103f   :  { %v1921_v2 = vpop.f32.mrf.mxu1 }
0x1041   :  { %v3026_v4 = vpop.eup %3025 }
0x1042   :  { %v1786_v5 = vsel %vm183_vm5, %v3026_v4, 0.0 }
0x1043   :  { %1787 = vadd.xlane.f32.xlu1 %v1786_v5  ;;  %v2962_v5 = vld [vmem:[%s3996_s4 + $0x22] ss:$0 sm:$0xff] }
0x10ae   :  { %v1785_v16 = vpop.xlane.xlu2 %1784 }
0x10af   :  { %3027 = vrcp.f32 %v1785_v16  ;;  %v1800_v22 = vand.u32 2147483648, %v1785_v16  ;;  %v1798_v25 = vand.u32 2147483647, %v1785_v16  ;;  %vm1794_vm11 = vweird.f32 %v1785_v16 }
0x10b1   :  { %v1801_v28 = vor.u32 1.1754944e-38, %v1800_v22  ;;  %vm1799_vm13 = vcmp.eq.f32.partialorder %v1798_v25, 8.507059e+37 }
0x10b5   :  { %v3028_v18 = vpop.eup %3027 }
0x10b6   :  { %v1790_v19 = vmul.f32 %v3028_v18, %v1785_v16  ;;  %v1788_v20 = vpop.xlane.xlu1 %1787  ;;  %vm1795_vm10 = vweird.f32 %v3028_v18 }
0x10b7   :  { %3029 = vrcp.f32 %v1788_v20  ;;  %vm1796_vm12 = vmor %vm1794_vm11, %vm1795_vm10  ;;  %v1814_v38 = vand.u32 2147483648, %v1788_v20  ;;  %v1812_v39 = vand.u32 2147483647, %v1788_v20  ;;  %vm1808_vm15 = vweird.f32 %v1788_v20 }
0x10b8   :  { %v1791_v21 = vsub.f32 1.0, %v1790_v19 }
0x10b9   :  { %v1815_v40 = vor.u32 1.1754944e-38, %v1814_v38  ;;  %vm1813_vm1 = vcmp.eq.f32.partialorder %v1812_v39, 8.507059e+37  ;;  %v2877_v39 = vld [vmem:[%s3995_s3 + $0x1f0] sm:$0xff] }
0x10ba   :  { %v1792_v23 = vmul.f32 %v3028_v18, %v1791_v21 }
0x10bc   :  { %v1793_v26 = vadd.f32 %v3028_v18, %v1792_v23 }
0x10bd   :  { %v3030_v27 = vpop.eup %3029 }
0x10be   :  { %v1797_v32 = vsel %vm1796_vm12, %v3028_v18, %v1793_v26  ;;  %v1804_v30 = vmul.f32 %v3030_v27, %v1788_v20  ;;  %vm1809_vm14 = vweird.f32 %v3030_v27 }
0x10bf   :  { %v1802_v35 = vsel %vm1799_vm13, %v1801_v28, %v1797_v32  ;;  %vm1810_vm0 = vmor %vm1808_vm15, %vm1809_vm14 }
0x10c0   :  { %v1805_v36 = vsub.f32 1.0, %v1804_v30  ;;  %v1817_v37 = vmul.f32 %v3024_v1, %v1802_v35  ;;  %v2872_v1 = vld [vmem:[%s3997_s5 + $0xf0] sm:$0xff] }
0x10c2   :  { %v1806_v34 = vmul.f32 %v3030_v27, %v1805_v36  ;;  %2838 = vmatmul.msk.f32.vlgmr.msrb.gmra.mxu2 %vm183_vm5, %v1817_v37 }
0x10c4   :  { %v1807_v33 = vadd.f32 %v3030_v27, %v1806_v34  ;;  %v2878_v34 = vld [vmem:[%s3995_s3 + $0x1f8] sm:$0xff] }
0x10c6   :  { %v1811_v8 = vsel %vm1810_vm0, %v3030_v27, %v1807_v33  ;;  %v2876_v33 = vld [vmem:[%s3995_s3 + $0x1e8] sm:$0xff] }
0x10c7   :  { %v1816_v9 = vsel %vm1813_vm1, %v1815_v40, %v1811_v8  ;;  %v2875_v40 = vld [vmem:[%s3995_s3 + $0x1e0] sm:$0xff] }
0x10c8   :  { %v1818_v41 = vmul.f32 %v3026_v4, %v1816_v9  ;;  %v2886_v9 = vld [vmem:[%s3995_s3 + $0x2f8] sm:$0xff] }
0x10ca   :  { %2839 = vmatmul.msk.f32.vlgmr.msra.gmra.mxu3 %vm183_vm5, %v1818_v41  ;;  %2858 = vmatmul.msk.f32.vlgmr.msra.gmra.mxu2 %vm103_vm4, %v3628_v24  ;;  %v2885_v41 = vld [vmem:[%s3995_s3 + $0x2f0] sm:$0xff] }
0x10d2   :  { %2859 = vmatmul.msk.f32.gmra.mxu2 %vm103_vm4, %v3637_v29  ;;  %2861 = vmatmul.msk.f32.vlgmr.msrb.gmra.mxu3 %vm103_vm4, %v3628_v24 }
0x10da   :  { %2862 = vmatmul.msk.f32.gmra.mxu3 %vm103_vm4, %v3637_v29 }
0x1145   :  { %v1839_v47 = vpop.f32.mrf.mxu2 }
0x1146   :  { %2841 = vmatmul.msk.f32.vlgmr.msrb.gmra.mxu0 %vm183_vm5, %v1839_v47 }
0x1147   :  { %2250 = vmatpush.msrb.mxu0 %v2882_v46 }
0x1149   :  { %2251 = vmatpush.msrb.mxu0 %v2881_v48 }
0x114b   :  { %2252 = vmatpush.msrb.mxu0 %v2880_v49 }
0x114d   :  { %v1862_v51 = vpop.f32.mrf.mxu3  ;;  %2253 = vmatpush.msrb.mxu0 %v2879_v50  ;;  %v1958_v53 = vpop.f32.mrf.mxu2 }
0x114e   :  { %2842 = vmatmul.msk.f32.gmra.mxu0 %vm183_vm5, %v1862_v51  ;;  %v1959_v57 = vadd.f32 %v2960_v54, %v1958_v53 }
0x1155   :  { %v1983_v55 = vpop.f32.mrf.mxu3  ;;  %v1961_v60 = vpop.f32.mrf.mxu2 }
0x1156   :  { %v1984_v56 = vadd.f32 %v2961_v52, %v1983_v55  ;;  %2864 = vmatmul.msk.f32.vlgmr.msra.gmra.mxu0 %vm103_vm4, %v3628_v24  ;;  %v1962_v62 = vadd.f32 %v2960_v54, %v1961_v60 }
0x1158   :  { %2866 = vmatpush.xpose.msk.msra.mxu1 %vm183_vm5, %v1984_v56 }
0x115b   :  { %2867 = vmatmul.msk.f32.vlgmr.msra.gmra.mxu1 %vm183_vm5, %v1959_v57 }
0x115d   :  { %v1986_v59 = vpop.f32.mrf.mxu3 }
0x115e   :  { %v1987_v61 = vadd.f32 %v2961_v52, %v1986_v59  ;;  %2865 = vmatmul.msk.f32.gmra.mxu0 %vm103_vm4, %v3637_v29 }
0x1160   :  { %2868 = vmatpush.xpose.msk.msrb.mxu2 %vm183_vm5, %v1987_v61 }
0x1163   :  { %2869 = vmatmul.msk.f32.vlgmr.msrb.gmra.mxu2 %vm183_vm5, %v1962_v62 }
0x1164   :  { %2186 = vmatpush.msra.mxu2 %v2872_v1 }
0x1166   :  { %2891 = vmatmul.msk.f32.vlgmr.msrb.gmra.mxu0 %vm103_vm4, %v3628_v24 }
0x116e   :  { %2892 = vmatmul.msk.f32.gmra.mxu0 %vm103_vm4, %v3637_v29 }
0x11c3   :  { %v3817_v0 = vpop.f32.mrf.mxu0 }
0x11cb   :  { %v1892_v3 = vpop.f32.mrf.mxu0 }
0x11cc   :  { %v3822_v4 = vadd.f32 %v1921_v2, %v1892_v3 }
0x11d3   :  { %v2008_v6 = vpop.f32.mrf.mxu0 }
0x11d4   :  { %v2009_v7 = vadd.f32 %v2962_v5, %v2008_v6 }
0x11d6   :  { %2136 = vmatpush.msra.mxu3 %v2009_v7 }
0x11d8   :  { %v2037_v10 = vpop.f32.mrf.mxu1  ;;  %2225 = vmatpush.msrb.mxu3 %v2878_v34 }
0x11d9   :  { %v2066_v11 = vmul.f32 0.35355338, %v2037_v10 }
0x11da   :  { %2226 = vmatpush.msrb.mxu3 %v2877_v39 }
0x11db   :  { %v2011_v12 = vpop.f32.mrf.mxu0  ;;  %v2068_v14 = vsel %vm3256_vm6, %v2066_v11, -1e+30 }
0x11dc   :  { %v2012_v15 = vadd.f32 %v2962_v5, %v2011_v12  ;;  %v2070_v16 = vsel %vm183_vm5, %v2068_v14, -inf  ;;  %2227 = vmatpush.msrb.mxu3 %v2876_v33 }
0x11dd   :  { %2071 = vmax.xlane.f32.xlu0 %v2070_v16 }
0x11de   :  { %2159 = vmatpush.msrb.mxu1 %v2012_v15  ;;  %2228 = vmatpush.msrb.mxu3 %v2875_v40  ;;  %v2965_v15 = vld [vmem:[%s3996_s4 + $0x23] ss:$0 sm:$0xff] }
0x11e0   :  { %2275 = vmatpush.msra.mxu1 %v2886_v9 }
0x11e2   :  { %2276 = vmatpush.msra.mxu1 %v2885_v41 }
0x11e3   :  { %v2255_v18 = vpop.f32.mrf.mxu0 }
0x11e4   :  { %v2256_v19 = vadd.f32 %v2963_v17, %v2255_v18  ;;  %2277 = vmatpush.msra.mxu1 %v2884_v42 }
0x11e6   :  { %v2063_v20 = vpop.f32.mrf.mxu2  ;;  %2896 = vmatpush.xpose.msk.msrb.mxu2 %vm183_vm5, %v2256_v19  ;;  %2278 = vmatpush.msra.mxu1 %v2883_v13 }
0x11e7   :  { %v2067_v21 = vmul.f32 0.35355338, %v2063_v20 }
0x11e9   :  { %v2069_v22 = vsel %vm3256_vm6, %v2067_v21, -1e+30 }
0x11ea   :  { %v2073_v23 = vsel %vm183_vm5, %v2069_v22, -inf }
0x11eb   :  { %2074 = vmax.xlane.f32.xlu1 %v2073_v23  ;;  %v2258_v52 = vpop.f32.mrf.mxu0  ;;  %v1919_v23 = vadd.f32 %v3815_v63, %v3817_v0 }
0x11ec   :  { %v2259_v56 = vadd.f32 %v2963_v17, %v2258_v52 }
0x1250   :  { %v2072_v25 = vpop.xlane.xlu0 %2071 }
0x1251   :  { %v2076_v26 = vsub.f32 %v2068_v14, %v2072_v25  ;;  %v2964_v14 = vld [vmem:[%s3996_s4 + $0x1b] ss:$0 sm:$0xff] }
0x1253   :  { %v2078_v27 = vmul.f32 1.442695, %v2076_v26 }
0x1255   :  { %3031 = vpow2.f32 %v2078_v27 }
0x125b   :  { %v3032_v28 = vpop.eup %3031 }
0x125c   :  { %v2082_v32 = vsel %vm183_vm5, %v3032_v28, 0.0 }
0x125d   :  { %2083 = vadd.xlane.f32.xlu2 %v2082_v32 }
0x125e   :  { %v2075_v30 = vpop.xlane.xlu1 %2074 }
0x125f   :  { %v2077_v35 = vsub.f32 %v2069_v22, %v2075_v30 }
0x1261   :  { %v2080_v36 = vmul.f32 1.442695, %v2077_v35 }
0x1263   :  { %3033 = vpow2.f32 %v2080_v36 }
0x1269   :  { %v3034_v37 = vpop.eup %3033 }
0x126a   :  { %v2085_v38 = vsel %vm183_vm5, %v3034_v37, 0.0 }
0x126b   :  { %2086 = vadd.xlane.f32.xlu0 %v2085_v38 }
0x12d0   :  { %v2084_v8 = vpop.xlane.xlu2 %2083 }
0x12d1   :  { %3035 = vrcp.f32 %v2084_v8  ;;  %v2099_v46 = vand.u32 2147483648, %v2084_v8  ;;  %v2097_v48 = vand.u32 2147483647, %v2084_v8  ;;  %vm2093_vm3 = vweird.f32 %v2084_v8 }
0x12d3   :  { %v2100_v51 = vor.u32 1.1754944e-38, %v2099_v46  ;;  %vm2098_vm9 = vcmp.eq.f32.partialorder %v2097_v48, 8.507059e+37 }
0x12d7   :  { %v3036_v43 = vpop.eup %3035 }
0x12d8   :  { %v2089_v44 = vmul.f32 %v3036_v43, %v2084_v8  ;;  %vm2094_vm2 = vweird.f32 %v3036_v43 }
0x12d9   :  { %vm2095_vm8 = vmor %vm2093_vm3, %vm2094_vm2 }
0x12da   :  { %v2090_v45 = vsub.f32 1.0, %v2089_v44 }
0x12dc   :  { %v2091_v47 = vmul.f32 %v3036_v43, %v2090_v45 }
0x12de   :  { %v2092_v49 = vadd.f32 %v3036_v43, %v2091_v47  ;;  %v2087_v50 = vpop.xlane.xlu0 %2086 }
0x12df   :  { %3037 = vrcp.f32 %v2087_v50  ;;  %v2113_v61 = vand.u32 2147483648, %v2087_v50  ;;  %v2111_v1 = vand.u32 2147483647, %v2087_v50  ;;  %vm2107_vm11 = vweird.f32 %v2087_v50 }
0x12e0   :  { %v2096_v53 = vsel %vm2095_vm8, %v3036_v43, %v2092_v49 }
0x12e1   :  { %v2101_v54 = vsel %vm2098_vm9, %v2100_v51, %v2096_v53  ;;  %v2114_v3 = vor.u32 1.1754944e-38, %v2113_v61  ;;  %vm2112_vm13 = vcmp.eq.f32.partialorder %v2111_v1, 8.507059e+37 }
0x12e2   :  { %v2116_v55 = vmul.f32 %v3032_v28, %v2101_v54 }
0x12e4   :  { %2870 = vmatmul.msk.f32.vlgmr.msra.gmra.mxu3 %vm183_vm5, %v2116_v55 }
0x12e5   :  { %v3038_v57 = vpop.eup %3037  ;;  %2898 = vmatpush.xpose.msk.msra.mxu3 %vm183_vm5, %v2259_v56 }
0x12e6   :  { %v2103_v59 = vmul.f32 %v3038_v57, %v2087_v50  ;;  %vm2108_vm10 = vweird.f32 %v3038_v57 }
0x12e7   :  { %vm2109_vm12 = vmor %vm2107_vm11, %vm2108_vm10 }
0x12e8   :  { %v2104_v60 = vsub.f32 1.0, %v2103_v59 }
0x12ea   :  { %v2105_v62 = vmul.f32 %v3038_v57, %v2104_v60 }
0x12ec   :  { %v2106_v2 = vadd.f32 %v3038_v57, %v2105_v62  ;;  %2888 = vmatmul.msk.f32.vlgmr.msrb.gmra.mxu3 %vm103_vm4, %v3628_v24 }
0x12ee   :  { %v2110_v5 = vsel %vm2109_vm12, %v3038_v57, %v2106_v2 }
0x12ef   :  { %v2115_v6 = vsel %vm2112_vm13, %v2114_v3, %v2110_v5 }
0x12f0   :  { %v2117_v7 = vmul.f32 %v3034_v37, %v2115_v6  ;;  %v2902_v6 = vld [vmem:[%s3997_s5 + $0xf8] sm:$0xff] }
0x12f2   :  { %2871 = vmatmul.msk.f32.vlgmr.msrb.gmra.mxu1 %vm183_vm5, %v2117_v7 }
0x12f4   :  { %2889 = vmatmul.msk.f32.gmra.mxu3 %vm103_vm4, %v3637_v29 }
0x12fa   :  { %2894 = vmatmul.msk.f32.vlgmr.msra.gmra.mxu1 %vm103_vm4, %v3628_v24 }
0x1302   :  { %2895 = vmatmul.msk.f32.gmra.mxu1 %vm103_vm4, %v3637_v29 }
0x1367   :  { %v2138_v10 = vpop.f32.mrf.mxu3 }
0x1368   :  { %2873 = vmatmul.msk.f32.vlgmr.msra.gmra.mxu2 %vm183_vm5, %v2138_v10 }
0x1369   :  { %2458 = vmatpush.msra.mxu2 %v2902_v6  ;;  %v2912_v6 = vld [vmem:[%s3997_s5 + $0xa0] sm:$0xff] }
0x136f   :  { %v2161_v11 = vpop.f32.mrf.mxu1  ;;  %v2230_v12 = vpop.f32.mrf.mxu3 }
0x1370   :  { %2874 = vmatmul.msk.f32.gmra.mxu2 %vm183_vm5, %v2161_v11  ;;  %v2231_v16 = vadd.f32 %v2964_v14, %v2230_v12  ;;  %v2966_v11 = vld [vmem:[%s3996_s4 + $0x24] ss:$0 sm:$0xff] }
0x1377   :  { %v2233_v17 = vpop.f32.mrf.mxu3  ;;  %v2280_v18 = vpop.f32.mrf.mxu1 }
0x1378   :  { %v2234_v19 = vadd.f32 %v2964_v14, %v2233_v17  ;;  %v2281_v20 = vadd.f32 %v2965_v15, %v2280_v18  ;;  %2897 = vmatmul.msk.f32.vlgmr.msrb.gmra.mxu2 %vm183_vm5, %v2231_v16 }
0x137a   :  { %2899 = vmatmul.msk.f32.vlgmr.msra.gmra.mxu3 %vm183_vm5, %v2234_v19  ;;  %2408 = vmatpush.msrb.mxu1 %v2281_v20 }
0x137f   :  { %v2283_v21 = vpop.f32.mrf.mxu1 }
0x1380   :  { %v2284_v22 = vadd.f32 %v2965_v15, %v2283_v21 }
0x1382   :  { %2431 = vmatpush.msra.mxu1 %v2284_v22 }
0x13eb   :  { %v2188_v25 = vpop.f32.mrf.mxu2 }
0x13ec   :  { %v3886_v26 = vadd.f32 %v2188_v25, %v1919_v23 }
0x13f3   :  { %v2191_v27 = vpop.f32.mrf.mxu2 }
0x13f4   :  { %v3889_v28 = vadd.f32 %v2191_v27, %v3822_v4 }
0x13fb   :  { %v2309_v32 = vpop.f32.mrf.mxu2 }
0x13fc   :  { %v2338_v30 = vmul.f32 0.35355338, %v2309_v32 }
0x13fd   :  { %v2335_v35 = vpop.f32.mrf.mxu3 }
0x13fe   :  { %v2339_v36 = vmul.f32 0.35355338, %v2335_v35  ;;  %v2340_v37 = vsel %vm3256_vm6, %v2338_v30, -1e+30 }
0x13ff   :  { %v2342_v38 = vsel %vm183_vm5, %v2340_v37, -inf }
0x1400   :  { %2343 = vmax.xlane.f32.xlu1 %v2342_v38  ;;  %v2341_v63 = vsel %vm3256_vm6, %v2339_v36, -1e+30  ;;  %v2909_v38 = vld [vmem:[%s3997_s5 + $0x88] sm:$0xff] }
0x1401   :  { %v2345_v0 = vsel %vm183_vm5, %v2341_v63, -inf }
0x1402   :  { %2346 = vmax.xlane.f32.xlu2 %v2345_v0 }
0x1473   :  { %v2344_v34 = vpop.xlane.xlu1 %2343 }
0x1474   :  { %v2348_v39 = vsub.f32 %v2340_v37, %v2344_v34  ;;  %v2910_v37 = vld [vmem:[%s3997_s5 + $0x90] sm:$0xff] }
0x1475   :  { %v2347_v4 = vpop.xlane.xlu2 %2346 }
0x1476   :  { %v2350_v33 = vmul.f32 1.442695, %v2348_v39  ;;  %v2349_v40 = vsub.f32 %v2341_v63, %v2347_v4  ;;  %v2908_v63 = vld [vmem:[%s3997_s5 + $0x80] sm:$0xff]  ;;  %v2919_v4 = vld [vmem:[%s3997_s5 + $0xd8] sm:$0xff] }
0x1477   :  { %2587 = vmatpush.msra.mxu0 %v2919_v4 }
0x1478   :  { %3039 = vpow2.f32 %v2350_v33  ;;  %v2352_v8 = vmul.f32 1.442695, %v2349_v40  ;;  %v2918_v33 = vld [vmem:[%s3997_s5 + $0xd0] sm:$0xff]  ;;  %v2917_v40 = vld [vmem:[%s3997_s5 + $0xc8] sm:$0xff] }
0x1479   :  { %2588 = vmatpush.msra.mxu0 %v2918_v33 }
0x147a   :  { %3041 = vpow2.f32 %v2352_v8 }
0x147b   :  { %2589 = vmatpush.msra.mxu0 %v2917_v40 }
0x147e   :  { %v3040_v9 = vpop.eup %3039 }
0x147f   :  { %v2354_v41 = vsel %vm183_vm5, %v3040_v9, 0.0 }
0x1480   :  { %v3042_v42 = vpop.eup %3041  ;;  %2355 = vadd.xlane.f32.xlu0 %v2354_v41  ;;  %v2916_v41 = vld [vmem:[%s3997_s5 + $0xc0] sm:$0xff] }
0x1481   :  { %v2357_v13 = vsel %vm183_vm5, %v3042_v42, 0.0  ;;  %2590 = vmatpush.msra.mxu0 %v2916_v41 }
0x1482   :  { %2358 = vadd.xlane.f32.xlu1 %v2357_v13 }
0x14f3   :  { %v2356_v58 = vpop.xlane.xlu0 %2355 }
0x14f4   :  { %3043 = vrcp.f32 %v2356_v58  ;;  %v2371_v49 = vand.u32 2147483648, %v2356_v58  ;;  %v2369_v51 = vand.u32 2147483647, %v2356_v58  ;;  %vm2365_vm14 = vweird.f32 %v2356_v58 }
0x14f5   :  { %v2359_v43 = vpop.xlane.xlu1 %2358 }
0x14f6   :  { %3045 = vrcp.f32 %v2359_v43  ;;  %v2372_v55 = vor.u32 1.1754944e-38, %v2371_v49  ;;  %vm2370_vm0 = vcmp.eq.f32.partialorder %v2369_v51, 8.507059e+37  ;;  %v2385_v60 = vand.u32 2147483648, %v2359_v43 }
0x14f7   :  { %vm2379_vm2 = vweird.f32 %v2359_v43  ;;  %v2383_v62 = vand.u32 2147483647, %v2359_v43 }
0x14f8   :  { %v2386_v2 = vor.u32 1.1754944e-38, %v2385_v60 }
0x14f9   :  { %vm2384_vm8 = vcmp.eq.f32.partialorder %v2383_v62, 8.507059e+37 }
0x14fa   :  { %v3044_v44 = vpop.eup %3043 }
0x14fb   :  { %v2361_v45 = vmul.f32 %v3044_v44, %v2356_v58  ;;  %vm2366_vm6 = vweird.f32 %v3044_v44  ;;  %v2915_v58 = vld [vmem:[%s3997_s5 + $0xb8] sm:$0xff] }
0x14fc   :  { %v3046_v46 = vpop.eup %3045  ;;  %vm2367_vm15 = vmor %vm2365_vm14, %vm2366_vm6  ;;  %2591 = vmatpush.msra.mxu0 %v2915_v58 }
0x14fd   :  { %v2362_v47 = vsub.f32 1.0, %v2361_v45  ;;  %v2375_v48 = vmul.f32 %v3046_v46, %v2359_v43  ;;  %vm2380_vm1 = vweird.f32 %v3046_v46 }
0x14fe   :  { %vm2381_vm3 = vmor %vm2379_vm2, %vm2380_vm1 }
0x14ff   :  { %v2363_v50 = vmul.f32 %v3044_v44, %v2362_v47  ;;  %v2376_v52 = vsub.f32 1.0, %v2375_v48 }
0x1501   :  { %v2364_v53 = vadd.f32 %v3044_v44, %v2363_v50  ;;  %v2377_v54 = vmul.f32 %v3046_v46, %v2376_v52  ;;  %v2967_v50 = vld [vmem:[%s3996_s4 + $0x27] ss:$0 sm:$0xff] }
0x1503   :  { %v2368_v56 = vsel %vm2367_vm15, %v3044_v44, %v2364_v53  ;;  %v2378_v57 = vadd.f32 %v3046_v46, %v2377_v54  ;;  %v2968_v53 = vld [vmem:[%s3996_s4 + $0x28] ss:$0 sm:$0xff] }
0x1504   :  { %v2373_v59 = vsel %vm2370_vm0, %v2372_v55, %v2368_v56 }
0x1505   :  { %v2388_v61 = vmul.f32 %v3040_v9, %v2373_v59  ;;  %v2382_v1 = vsel %vm2381_vm3, %v3046_v46, %v2378_v57 }
0x1506   :  { %v2387_v3 = vsel %vm2384_vm8, %v2386_v2, %v2382_v1 }
0x1507   :  { %2900 = vmatmul.msk.f32.vlgmr.msrb.gmra.mxu1 %vm183_vm5, %v2388_v61  ;;  %v2389_v5 = vmul.f32 %v3042_v42, %v2387_v3  ;;  %v2914_v3 = vld [vmem:[%s3997_s5 + $0xb0] sm:$0xff] }
0x1508   :  { %2592 = vmatpush.msra.mxu0 %v2914_v3 }
0x150f   :  { %2901 = vmatmul.msk.f32.vlgmr.msra.gmra.mxu1 %vm183_vm5, %v2389_v5  ;;  %v2913_v5 = vld [vmem:[%s3997_s5 + $0xa8] sm:$0xff] }
0x1510   :  { %2593 = vmatpush.msra.mxu0 %v2913_v5 }
0x1512   :  { %2594 = vmatpush.msra.mxu0 %v2912_v6 }
0x1584   :  { %v2410_v7 = vpop.f32.mrf.mxu1 }
0x1585   :  { %2903 = vmatmul.msk.f32.vlgmr.msra.gmra.mxu2 %vm183_vm5, %v2410_v7  ;;  %v2969_v7 = vld [vmem:[%s3996_s4 + $0x25] ss:$0 sm:$0xff] }
0x158c   :  { %v2433_v10 = vpop.f32.mrf.mxu1 }
0x158d   :  { %2904 = vmatmul.msk.f32.gmra.mxu2 %vm183_vm5, %v2433_v10 }
0x1608   :  { %v2460_v12 = vpop.f32.mrf.mxu2 }
0x1609   :  { %v2466_v14 = vadd.f32 %v2460_v12, %v3886_v26 }
0x160b   :  { %v2470_v15 = vadd.f32 %v2966_v11, %v2466_v14 }
0x160d   :  { %v2472_v16 = vadd.f32 %v2470_v15, %v3628_v24 }
0x160f   :  { %v2476_v17 = vsel %vm103_vm4, %v2472_v16, 0.0 }
0x1610   :  { %2477 = vadd.xlane.f32.xlu2 %v2476_v17  ;;  %v2463_v18 = vpop.f32.mrf.mxu2  ;;  %v2970_v17 = vld [vmem:[%s3996_s4 + $0x26] ss:$0 sm:$0xff] }
0x1611   :  { %v2467_v19 = vadd.f32 %v2463_v18, %v3889_v28 }
0x1613   :  { %v2471_v20 = vadd.f32 %v2966_v11, %v2467_v19 }
0x1615   :  { %v2473_v21 = vadd.f32 %v2471_v20, %v3637_v29  ;;  %v2911_v29 = vld [vmem:[%s3997_s5 + $0x98] sm:$0xff] }
0x1616   :  { %2558 = vmatpush.msrb.mxu3 %v2911_v29 }
0x1617   :  { %v2479_v22 = vsel %vm103_vm4, %v2473_v21, 0.0 }
0x1618   :  { %2480 = vadd.xlane.f32.xlu0 %v2479_v22  ;;  %2559 = vmatpush.msrb.mxu3 %v2910_v37 }
0x161a   :  { %2560 = vmatpush.msrb.mxu3 %v2909_v38 }
0x161c   :  { %2561 = vmatpush.msrb.mxu3 %v2908_v63 }
0x1683   :  { %v2478_v23 = vpop.xlane.xlu2 %2477 }
0x1684   :  { %v2482_v25 = vmul.f32 %v2478_v23, %v3497_v31 }
0x1686   :  { %v2484_v27 = vsub.f32 %v2472_v16, %v2482_v25 }
0x1688   :  { %v2486_v26 = vmul.f32 %v2484_v27, %v2484_v27 }
0x168a   :  { %v2488_v32 = vsel %vm103_vm4, %v2486_v26, 0.0 }
0x168b   :  { %2489 = vadd.xlane.f32.xlu1 %v2488_v32  ;;  %v2481_v24 = vpop.xlane.xlu0 %2480 }
0x168c   :  { %v2483_v30 = vmul.f32 %v2481_v24, %v3497_v31 }
0x168e   :  { %v2485_v35 = vsub.f32 %v2473_v21, %v2483_v30 }
0x1690   :  { %v2487_v36 = vmul.f32 %v2485_v35, %v2485_v35 }
0x1692   :  { %v2491_v28 = vsel %vm103_vm4, %v2487_v36, 0.0 }
0x1693   :  { %2492 = vadd.xlane.f32.xlu2 %v2491_v28 }
0x16fe   :  { %v2490_v0 = vpop.xlane.xlu1 %2489 }
0x16ff   :  { %v2494_v34 = vmul.f32 %v2490_v0, %v3497_v31 }
0x1701   :  { %v2496_v39 = vadd.f32 1e-05, %v2494_v34 }
0x1703   :  { %3047 = vrsqrt.f32 %v2496_v39  ;;  %vm2504_vm9 = vweird.f32 %v2496_v39 }
0x1706   :  { %v2493_v8 = vpop.xlane.xlu2 %2492 }
0x1707   :  { %v2495_v9 = vmul.f32 %v2493_v8, %v3497_v31 }
0x1709   :  { %v3048_v42 = vpop.eup %3047  ;;  %v2497_v13 = vadd.f32 1e-05, %v2495_v9 }
0x170a   :  { %v2499_v43 = vmul.f32 %v3048_v42, %v2496_v39  ;;  %vm2505_vm5 = vweird.f32 %v3048_v42 }
0x170b   :  { %3049 = vrsqrt.f32 %v2497_v13  ;;  %vm2506_vm10 = vmor %vm2504_vm9, %vm2505_vm5  ;;  %vm2514_vm12 = vweird.f32 %v2497_v13 }
0x170c   :  { %v2500_v44 = vmul.f32 %v3048_v42, %v2499_v43 }
0x170e   :  { %v2501_v45 = vmul.f32 0.5, %v2500_v44  ;;  %v2971_v44 = vld [vmem:[%s3996_s4 + $0x29] ss:$0 sm:$0xff] }
0x1710   :  { %v2502_v46 = vsub.f32 1.5, %v2501_v45 }
0x1711   :  { %v3050_v47 = vpop.eup %3049 }
0x1712   :  { %v2503_v48 = vmul.f32 %v3048_v42, %v2502_v46  ;;  %v2509_v49 = vmul.f32 %v3050_v47, %v2497_v13  ;;  %vm2515_vm11 = vweird.f32 %v3050_v47 }
0x1713   :  { %vm2516_vm13 = vmor %vm2514_vm12, %vm2515_vm11 }
0x1714   :  { %v2507_v51 = vsel %vm2506_vm10, %v3048_v42, %v2503_v48  ;;  %v2510_v52 = vmul.f32 %v3050_v47, %v2509_v49 }
0x1715   :  { %v2518_v54 = vmul.f32 %v2507_v51, %v2484_v27 }
0x1716   :  { %v2511_v55 = vmul.f32 0.5, %v2510_v52 }
0x1717   :  { %v2521_v56 = vmul.f32 %v2967_v50, %v2518_v54 }
0x1718   :  { %v2512_v57 = vsub.f32 1.5, %v2511_v55 }
0x1719   :  { %v2524_v59 = vadd.f32 %v2968_v53, %v2521_v56 }
0x171a   :  { %v2513_v60 = vmul.f32 %v3050_v47, %v2512_v57 }
0x171b   :  { %2921 = vmatmul.msk.f32.vlgmr.msrb.gmra.mxu3 %vm103_vm4, %v2524_v59 }
0x171c   :  { %v2517_v61 = vsel %vm2516_vm13, %v3050_v47, %v2513_v60  ;;  %v2972_v47 = vld [vmem:[%s3996_s4 + $0x2a] ss:$0 sm:$0xff]  ;;  %s3085_s4 = smov 128  }
0x171d   :  { %v2519_v62 = vmul.f32 %v2517_v61, %v2485_v35 }
0x171f   :  { %v2522_v1 = vmul.f32 %v2967_v50, %v2519_v62 }
0x1721   :  { %v2525_v2 = vadd.f32 %v2968_v53, %v2522_v1 }
0x1723   :  { %2922 = vmatmul.msk.f32.gmra.mxu3 %vm103_vm4, %v2525_v2 }
0x179e   :  { %v2563_v10 = vpop.f32.mrf.mxu3 }
0x179f   :  { %v2564_v11 = vadd.f32 %v2969_v7, %v2563_v10 }
0x17a1   :  { %v2569_v12 = vmax.f32 %v2564_v11, 0.0 }
0x17a3   :  { %2924 = vmatmul.msk.f32.vlgmr.msra.gmra.mxu0 %vm1292_vm7, %v2569_v12 }
0x17a6   :  { %v2566_v14 = vpop.f32.mrf.mxu3 }
0x17a7   :  { %v2567_v15 = vadd.f32 %v2969_v7, %v2566_v14 }
0x17a9   :  { %v2570_v16 = vmax.f32 %v2567_v15, 0.0 }
0x17ab   :  { %2925 = vmatmul.msk.f32.gmra.mxu0 %vm1292_vm7, %v2570_v16 }
0x1820   :  { %v2596_v18 = vpop.f32.mrf.mxu0 }
0x1821   :  { %v2597_v19 = vadd.f32 %v2970_v17, %v2596_v18 }
0x1823   :  { %v2602_v20 = vadd.f32 %v2597_v19, %v2524_v59 }
0x1825   :  { %v2606_v21 = vsel %vm103_vm4, %v2602_v20, 0.0 }
0x1826   :  { %2607 = vadd.xlane.f32.xlu0 %v2606_v21 }
0x1828   :  { %v2599_v22 = vpop.f32.mrf.mxu0 }
0x1829   :  { %v2600_v23 = vadd.f32 %v2970_v17, %v2599_v22 }
0x182b   :  { %v2603_v25 = vadd.f32 %v2600_v23, %v2525_v2 }
0x182d   :  { %v2609_v27 = vsel %vm103_vm4, %v2603_v25, 0.0 }
0x182e   :  { %2610 = vadd.xlane.f32.xlu1 %v2609_v27 }
0x1899   :  { %v2608_v26 = vpop.xlane.xlu0 %2607 }
0x189a   :  { %v2612_v32 = vmul.f32 %v2608_v26, %v3497_v31 }
0x189c   :  { %v2614_v24 = vsub.f32 %v2602_v20, %v2612_v32 }
0x189e   :  { %v2616_v30 = vmul.f32 %v2614_v24, %v2614_v24 }
0x18a0   :  { %v2618_v35 = vsel %vm103_vm4, %v2616_v30, 0.0 }
0x18a1   :  { %v2611_v36 = vpop.xlane.xlu1 %2610  ;;  %2619 = vadd.xlane.f32.xlu2 %v2618_v35 }
0x18a2   :  { %v2613_v28 = vmul.f32 %v2611_v36, %v3497_v31 }
0x18a4   :  { %v2615_v29 = vsub.f32 %v2603_v25, %v2613_v28 }
0x18a6   :  { %v2617_v37 = vmul.f32 %v2615_v29, %v2615_v29 }
0x18a8   :  { %v2621_v38 = vsel %vm103_vm4, %v2617_v37, 0.0 }
0x18a9   :  { %2622 = vadd.xlane.f32.xlu0 %v2621_v38 }
0x1914   :  { %v2620_v63 = vpop.xlane.xlu2 %2619 }
0x1915   :  { %v2624_v0 = vmul.f32 %v2620_v63, %v3497_v31 }
0x1917   :  { %v2626_v34 = vadd.f32 1e-05, %v2624_v0 }
0x1919   :  { %3051 = vrsqrt.f32 %v2626_v34  ;;  %vm2634_vm6 = vweird.f32 %v2626_v34 }
0x191c   :  { %v2623_v39 = vpop.xlane.xlu0 %2622 }
0x191d   :  { %v2625_v4 = vmul.f32 %v2623_v39, %v3497_v31 }
0x191f   :  { %v3052_v33 = vpop.eup %3051  ;;  %v2627_v40 = vadd.f32 1e-05, %v2625_v4 }
0x1920   :  { %v2629_v8 = vmul.f32 %v3052_v33, %v2626_v34  ;;  %vm2635_vm7 = vweird.f32 %v3052_v33 }
0x1921   :  { %3053 = vrsqrt.f32 %v2627_v40  ;;  %vm2636_vm14 = vmor %vm2634_vm6, %vm2635_vm7  ;;  %vm2644_vm0 = vweird.f32 %v2627_v40 }
0x1922   :  { %v2630_v9 = vmul.f32 %v3052_v33, %v2629_v8 }
0x1924   :  { %v2631_v41 = vmul.f32 0.5, %v2630_v9 }
0x1926   :  { %v2632_v42 = vsub.f32 1.5, %v2631_v41 }
0x1927   :  { %v3054_v13 = vpop.eup %3053 }
0x1928   :  { %v2633_v58 = vmul.f32 %v3052_v33, %v2632_v42  ;;  %v2639_v43 = vmul.f32 %v3054_v13, %v2627_v40  ;;  %vm2645_vm15 = vweird.f32 %v3054_v13 }
0x1929   :  { %vm2646_vm1 = vmor %vm2644_vm0, %vm2645_vm15 }
0x192a   :  { %v2637_v45 = vsel %vm2636_vm14, %v3052_v33, %v2633_v58  ;;  %v2640_v46 = vmul.f32 %v3054_v13, %v2639_v43 }
0x192b   :  { %v2648_v31 = vmul.f32 %v2637_v45, %v2614_v24 }
0x192c   :  { %v2641_v48 = vmul.f32 0.5, %v2640_v46 }
0x192d   :  { %v2651_v49 = vmul.f32 %v2971_v44, %v2648_v31 }
0x192e   :  { %v2642_v50 = vsub.f32 1.5, %v2641_v48 }
0x192f   :  { %v2654_v51 = vadd.f32 %v2972_v47, %v2651_v49 }
0x1930   :  { %v2643_v52 = vmul.f32 %v3054_v13, %v2642_v50 }
0x1931   :  { %2656 = vst.msk [vmem:[#allocation2] sm:$0xff] %vm103_vm4, %v2654_v51 }
0x1932   :  { %v2647_v53 = vsel %vm2646_vm1, %v3054_v13, %v2643_v52 }
0x1933   :  { %v2649_v54 = vmul.f32 %v2647_v53, %v2615_v29 }
0x1935   :  { %v2652_v55 = vmul.f32 %v2971_v44, %v2649_v54 }
0x1937   :  { %v2655_v56 = vadd.f32 %v2972_v47, %v2652_v55 }
0x1939   :  { %2657 = vst.msk [vmem:[#allocation2 + $0x8] sm:$0xff] %vm103_vm4, %v2655_v56 }
0x193a   :  { %2670 = dma.vmem_to_hbm [thread:$0]  %s2663_s1, 256, %s2665_s24, [#allocation3], %s3085_s4, %s3085_s4, %s3086_s25  }
0x193b   :  { %3079 = dma.done.wait [#allocation3], 256  }
0x193c   :  { %3080 = vsyncadd [#allocation3], 4294967040 }
0x193d   :  { %2675 = vsyncpa [#allocation3], 1 }

</bundles_post_ra>
